<compile_context>
chip_gen: v7x
topology: tpu7x:2x2x1
jax: 0.10.0
libtpu: 0.0.40
codegen_flags: <defaults>
</compile_context>

<pallas_src>
import math

import jax
import jax.numpy as jnp
from jax.experimental import pallas as pl
from jax.experimental.pallas import tpu as pltpu

H = 64        # LSTM hidden size (both layers, per direction)
D_IN = 16     # lstm1 input_size
D_OUT = 2     # classifier outputs


def _global_discriminator_kernel(
        x_ref,                                            # (T, Bt, D_IN)
        w1f_ih, w1f_hh, b1f, w1r_ih, w1r_hh, b1r,         # layer 1 fwd / rev
        w2f_ih_a, w2f_ih_b, w2f_hh, b2f,                  # layer 2 fwd
        w2r_ih_a, w2r_ih_b, b2r,                          # layer 2 rev (1 step)
        wo_a, wo_b, bo,                                    # output linear
        out_ref,                                           # (Bt, D_OUT)
        seq_f, seq_r, h_scr, c_scr):                       # VMEM scratch
    T, Bt, _ = x_ref.shape

    def cell(x_gates, h, c, w_hh, bias):
        # PyTorch gate order: i, f, g, o packed along the 4H lane axis.
        g = (x_gates
             + jnp.dot(h, w_hh[...], preferred_element_type=jnp.float32)
             + bias[...])
        i = jax.nn.sigmoid(g[:, 0 * H:1 * H])
        f = jax.nn.sigmoid(g[:, 1 * H:2 * H])
        gg = jnp.tanh(g[:, 2 * H:3 * H])
        o = jax.nn.sigmoid(g[:, 3 * H:4 * H])
        c_new = f * c + i * gg
        return o * jnp.tanh(c_new), c_new

    zeros = jnp.zeros((Bt, H), jnp.float32)

    def reset_state():
        h_scr[...] = zeros
        c_scr[...] = zeros

    # ---------------- layer 1, forward direction ----------------
    reset_state()

    def l1_fwd(t, carry):
        xg = jnp.dot(x_ref[t], w1f_ih[...], preferred_element_type=jnp.float32)
        h, c = cell(xg, h_scr[...], c_scr[...], w1f_hh, b1f)
        seq_f[t] = h
        h_scr[...] = h
        c_scr[...] = c
        return carry

    jax.lax.fori_loop(0, T, l1_fwd, 0, unroll=True)

    # ---------------- layer 1, reverse direction ----------------
    reset_state()

    def l1_rev(s, carry):
        t = T - 1 - s
        xg = jnp.dot(x_ref[t], w1r_ih[...], preferred_element_type=jnp.float32)
        h, c = cell(xg, h_scr[...], c_scr[...], w1r_hh, b1r)
        seq_r[t] = h
        h_scr[...] = h
        c_scr[...] = c
        return carry

    jax.lax.fori_loop(0, T, l1_rev, 0, unroll=True)

    # ------- layer 2, forward direction (only the final state feeds out) -------
    # Layer-2 input is concat(h1_fwd, h1_rev); the concat is folded into two
    # half-weight matmuls so no lane concatenation is ever materialized.
    reset_state()

    def l2_fwd(t, carry):
        xg = (jnp.dot(seq_f[t], w2f_ih_a[...], preferred_element_type=jnp.float32)
              + jnp.dot(seq_r[t], w2f_ih_b[...], preferred_element_type=jnp.float32))
        h, c = cell(xg, h_scr[...], c_scr[...], w2f_hh, b2f)
        h_scr[...] = h
        c_scr[...] = c
        return carry

    jax.lax.fori_loop(0, T, l2_fwd, 0, unroll=True)
    h2_fwd = h_scr[...]

    # ------- layer 2, reverse direction -------
    # output[-1]'s reverse component is the reverse LSTM's FIRST step: zero
    # initial (h, c), input = layer-1 output at t = T-1. The h @ W_hh and
    # f * c terms vanish, so they are skipped (verified against the full
    # reference scan in __main__).
    g = (jnp.dot(seq_f[T - 1], w2r_ih_a[...], preferred_element_type=jnp.float32)
         + jnp.dot(seq_r[T - 1], w2r_ih_b[...], preferred_element_type=jnp.float32)
         + b2r[...])
    i = jax.nn.sigmoid(g[:, 0 * H:1 * H])
    gg = jnp.tanh(g[:, 2 * H:3 * H])
    o = jax.nn.sigmoid(g[:, 3 * H:4 * H])
    h2_rev = o * jnp.tanh(i * gg)

    # ------- classifier head: out(concat(h2_fwd, h2_rev)) -------
    logits = (jnp.dot(h2_fwd, wo_a[...], preferred_element_type=jnp.float32)
              + jnp.dot(h2_rev, wo_b[...], preferred_element_type=jnp.float32)
              + bo[...])
    out_ref[...] = logits.astype(out_ref.dtype)


def _prep_lstm_dir(w_ih, w_hh, b_ih, b_hh):
    """torch layout (4H,in),(4H,H),(4H,),(4H,) -> row-major kernel layout."""
    return w_ih.T, w_hh.T, (b_ih + b_hh).reshape(1, -1)


def global_discriminator_forward(x, params, *, tile_b=None):
    """x: (B, T, 16) f32. params: dict of torch-layout weights. Returns (B, 2)."""
    B, T, d_in = x.shape
    assert d_in == D_IN

    # x.permute(1, 0, 2): done in the wrapper so the kernel walks timesteps on
    # the leading (untiled) axis with no in-kernel relayout.
    x_seq = jnp.transpose(x, (1, 0, 2))

    w1f_ih, w1f_hh, b1f = _prep_lstm_dir(*params["lstm1_f"])
    w1r_ih, w1r_hh, b1r = _prep_lstm_dir(*params["lstm1_r"])
    w2f_ih, w2f_hh, b2f = _prep_lstm_dir(*params["lstm2_f"])
    w2r_ih, _w2r_hh_unused, b2r = _prep_lstm_dir(*params["lstm2_r"])

    # Split layer-2 (and head) weights along their 128-wide input so the kernel
    # consumes the forward/backward 64-lane halves directly (no concat).
    w2f_ih_a, w2f_ih_b = w2f_ih[:H], w2f_ih[H:]
    w2r_ih_a, w2r_ih_b = w2r_ih[:H], w2r_ih[H:]
    wo_t = params["out_w"].T                       # (2H, 2)
    wo_a, wo_b = wo_t[:H], wo_t[H:]
    bo = params["out_b"].reshape(1, D_OUT)

    if tile_b is None:
        tile_b = B          # tiny demo batch -> one block; for large B pass a
                            # multiple of 8 dividing B (e.g. 256) to pipeline.
    assert B % tile_b == 0 and (tile_b == B or tile_b % 8 == 0)
    grid = (B // tile_b,)

    def w_spec(a):
        return pl.BlockSpec(a.shape, lambda b: (0, 0))

    return pl.pallas_call(
        _global_discriminator_kernel,
        out_shape=jax.ShapeDtypeStruct((B, D_OUT), jnp.float32),
        grid=grid,
        in_specs=[
            pl.BlockSpec((T, tile_b, D_IN), lambda b: (0, b, 0)),
            w_spec(w1f_ih), w_spec(w1f_hh), w_spec(b1f),
            w_spec(w1r_ih), w_spec(w1r_hh), w_spec(b1r),
            w_spec(w2f_ih_a), w_spec(w2f_ih_b), w_spec(w2f_hh), w_spec(b2f),
            w_spec(w2r_ih_a), w_spec(w2r_ih_b), w_spec(b2r),
            w_spec(wo_a), w_spec(wo_b), w_spec(bo),
        ],
        out_specs=pl.BlockSpec((tile_b, D_OUT), lambda b: (b, 0)),
        scratch_shapes=[
            pltpu.VMEM((T, tile_b, H), jnp.float32),   # layer-1 fwd outputs
            pltpu.VMEM((T, tile_b, H), jnp.float32),   # layer-1 rev outputs
            pltpu.VMEM((tile_b, H), jnp.float32),      # recurrent h
            pltpu.VMEM((tile_b, H), jnp.float32),      # recurrent c
        ],
        compiler_params=pltpu.CompilerParams(
            dimension_semantics=("parallel",)),
    )(x_seq,
      w1f_ih, w1f_hh, b1f, w1r_ih, w1r_hh, b1r,
      w2f_ih_a, w2f_ih_b, w2f_hh, b2f,
      w2r_ih_a, w2r_ih_b, b2r,
      wo_a, wo_b, bo)


# ----------------------------- pure-JAX reference -----------------------------
def _reference_forward(x, params):
    """Eval-mode reference: permute -> biLSTM -> biLSTM -> last step -> linear."""
    def lstm_dir(x_seq, w_ih, w_hh, b_ih, b_hh):
        B_, H_ = x_seq.shape[1], w_hh.shape[1]

        def step(carry, x_t):
            h, c = carry
            g = x_t @ w_ih.T + h @ w_hh.T + b_ih + b_hh
            i, f, gg, o = jnp.split(g, 4, axis=-1)
            c = jax.nn.sigmoid(f) * c + jax.nn.sigmoid(i) * jnp.tanh(gg)
            h = jax.nn.sigmoid(o) * jnp.tanh(c)
            return (h, c), h

        init = (jnp.zeros((B_, H_), jnp.float32), jnp.zeros((B_, H_), jnp.float32))
        return jax.lax.scan(step, init, x_seq)[1]

    def bilstm(x_seq, pf, pr):
        hf = lstm_dir(x_seq, *pf)
        hr = lstm_dir(x_seq[::-1], *pr)[::-1]
        return jnp.concatenate([hf, hr], axis=-1)

    x_seq = jnp.transpose(x, (1, 0, 2))
    y1 = bilstm(x_seq, params["lstm1_f"], params["lstm1_r"])
    y2 = bilstm(y1, params["lstm2_f"], params["lstm2_r"])
    return y2[-1] @ params["out_w"].T + params["out_b"]


# ----------------------------------- demo -------------------------------------
def _uniform(key, shape, bound):
    return jax.random.uniform(key, shape, jnp.float32, -bound, bound)


def _lstm_dir_params(key, in_features, hidden):
    k = 1.0 / math.sqrt(hidden)          # PyTorch LSTM init: U(-1/sqrt(H), 1/sqrt(H))
    k1, k2, k3, k4 = jax.random.split(key, 4)
    return (_uniform(k1, (4 * hidden, in_features), k),   # weight_ih
            _uniform(k2, (4 * hidden, hidden), k),        # weight_hh
            _uniform(k3, (4 * hidden,), k),               # bias_ih
            _uniform(k4, (4 * hidden,), k))               # bias_hh


if __name__ == "__main__":
    root = jax.random.PRNGKey(0)
    kx, k1f, k1r, k2f, k2r, kow, kob = jax.random.split(root, 7)

    B, T = 2, 8
    x = jax.random.normal(kx, (B, T, D_IN), jnp.float32)

    ko_bound = 1.0 / math.sqrt(2 * H)
    params = {
        "lstm1_f": _lstm_dir_params(k1f, D_IN, H),
        "lstm1_r": _lstm_dir_params(k1r, D_IN, H),
        "lstm2_f": _lstm_dir_params(k2f, 2 * H, H),
        "lstm2_r": _lstm_dir_params(k2r, 2 * H, H),
        "out_w": _uniform(kow, (D_OUT, 2 * H), ko_bound),
        "out_b": _uniform(kob, (D_OUT,), ko_bound),
    }

    y = global_discriminator_forward(x, params)
    y = jax.block_until_ready(y)

    y_ref = _reference_forward(x, params)
    assert y.shape == (B, D_OUT)
    assert jnp.allclose(y, y_ref, atol=1e-3, rtol=1e-3), (y, y_ref)

    print("KERNEL_OK")
</pallas_src>

<mosaic_0001>
module attributes {stable_mosaic.version = 11 : i64} {
  func.func @_global_discriminator_kernel(%arg0: i32, %arg1: memref<8x2x16xf32, #tpu.memory_space<vmem>>, %arg2: memref<16x256xf32, #tpu.memory_space<vmem>>, %arg3: memref<64x256xf32, #tpu.memory_space<vmem>>, %arg4: memref<1x256xf32, #tpu.memory_space<vmem>>, %arg5: memref<16x256xf32, #tpu.memory_space<vmem>>, %arg6: memref<64x256xf32, #tpu.memory_space<vmem>>, %arg7: memref<1x256xf32, #tpu.memory_space<vmem>>, %arg8: memref<64x256xf32, #tpu.memory_space<vmem>>, %arg9: memref<64x256xf32, #tpu.memory_space<vmem>>, %arg10: memref<64x256xf32, #tpu.memory_space<vmem>>, %arg11: memref<1x256xf32, #tpu.memory_space<vmem>>, %arg12: memref<64x256xf32, #tpu.memory_space<vmem>>, %arg13: memref<64x256xf32, #tpu.memory_space<vmem>>, %arg14: memref<1x256xf32, #tpu.memory_space<vmem>>, %arg15: memref<64x2xf32, #tpu.memory_space<vmem>>, %arg16: memref<64x2xf32, #tpu.memory_space<vmem>>, %arg17: memref<1x2xf32, #tpu.memory_space<vmem>>, %arg18: memref<2x2xf32, #tpu.memory_space<vmem>>, %arg19: memref<8x2x64xf32, #tpu.memory_space<vmem>>, %arg20: memref<8x2x64xf32, #tpu.memory_space<vmem>>, %arg21: memref<2x64xf32, #tpu.memory_space<vmem>>, %arg22: memref<2x64xf32, #tpu.memory_space<vmem>>) attributes {dimension_semantics = [#tpu.dimension_semantics<parallel>], iteration_bounds = array<i64: 1>, scalar_prefetch = 0 : i64, scratch_operands = 4 : i64, tpu.core_type = #tpu.core_type<tc>, window_params = [{transform_indices = @transform_0, window_bounds = array<i64: 8, 2, 16>}, {pipeline_mode = #tpu.pipeline_mode<synchronous>, transform_indices = @transform_1, window_bounds = array<i64: 16, 256>}, {pipeline_mode = #tpu.pipeline_mode<synchronous>, transform_indices = @transform_2, window_bounds = array<i64: 64, 256>}, {pipeline_mode = #tpu.pipeline_mode<synchronous>, transform_indices = @transform_3, window_bounds = array<i64: 1, 256>}, {pipeline_mode = #tpu.pipeline_mode<synchronous>, transform_indices = @transform_4, window_bounds = array<i64: 16, 256>}, {pipeline_mode = #tpu.pipeline_mode<synchronous>, transform_indices = @transform_5, window_bounds = array<i64: 64, 256>}, {pipeline_mode = #tpu.pipeline_mode<synchronous>, transform_indices = @transform_6, window_bounds = array<i64: 1, 256>}, {pipeline_mode = #tpu.pipeline_mode<synchronous>, transform_indices = @transform_7, window_bounds = array<i64: 64, 256>}, {pipeline_mode = #tpu.pipeline_mode<synchronous>, transform_indices = @transform_8, window_bounds = array<i64: 64, 256>}, {pipeline_mode = #tpu.pipeline_mode<synchronous>, transform_indices = @transform_9, window_bounds = array<i64: 64, 256>}, {pipeline_mode = #tpu.pipeline_mode<synchronous>, transform_indices = @transform_10, window_bounds = array<i64: 1, 256>}, {pipeline_mode = #tpu.pipeline_mode<synchronous>, transform_indices = @transform_11, window_bounds = array<i64: 64, 256>}, {pipeline_mode = #tpu.pipeline_mode<synchronous>, transform_indices = @transform_12, window_bounds = array<i64: 64, 256>}, {pipeline_mode = #tpu.pipeline_mode<synchronous>, transform_indices = @transform_13, window_bounds = array<i64: 1, 256>}, {pipeline_mode = #tpu.pipeline_mode<synchronous>, transform_indices = @transform_14, window_bounds = array<i64: 64, 2>}, {pipeline_mode = #tpu.pipeline_mode<synchronous>, transform_indices = @transform_15, window_bounds = array<i64: 64, 2>}, {pipeline_mode = #tpu.pipeline_mode<synchronous>, transform_indices = @transform_16, window_bounds = array<i64: 1, 2>}, {transform_indices = @transform_17, window_bounds = array<i64: 2, 2>}]} {
    %cst = arith.constant 0.000000e+00 : f32
    %0 = vector.broadcast %cst : f32 to vector<2x64xf32>
    %c0 = arith.constant 0 : index
    %c0_0 = arith.constant 0 : index
    %1 = vector.load %arg21[%c0, %c0_0] : memref<2x64xf32, #tpu.memory_space<vmem>>, vector<2x64xf32>
    tpu.vector_store %arg21[%c0, %c0_0], %0 {strides = array<i32>} : memref<2x64xf32, #tpu.memory_space<vmem>>, vector<2x64xf32>,
    %c0_1 = arith.constant 0 : index
    %c0_2 = arith.constant 0 : index
    %2 = vector.load %arg22[%c0_1, %c0_2] : memref<2x64xf32, #tpu.memory_space<vmem>>, vector<2x64xf32>
    tpu.vector_store %arg22[%c0_1, %c0_2], %0 {strides = array<i32>} : memref<2x64xf32, #tpu.memory_space<vmem>>, vector<2x64xf32>,
    %c0_i32 = arith.constant 0 : i32
    %3 = arith.index_cast %c0_i32 : i32 to index
    %c0_3 = arith.constant 0 : index
    %c0_4 = arith.constant 0 : index
    %4 = vector.load %arg1[%3, %c0_3, %c0_4] : memref<8x2x16xf32, #tpu.memory_space<vmem>>, vector<1x2x16xf32>
    %5 = vector.shape_cast %4 : vector<1x2x16xf32> to vector<2x16xf32>
    %c0_5 = arith.constant 0 : index
    %c0_6 = arith.constant 0 : index
    %6 = vector.load %arg2[%c0_5, %c0_6] : memref<16x256xf32, #tpu.memory_space<vmem>>, vector<16x256xf32>
    %cst_7 = arith.constant dense<0.000000e+00> : vector<2x256xf32>
    %7 = tpu.matmul %5, %6, %cst_7 {dimension_numbers = #tpu.dot_dimension_numbers<[1], [0], [0], [1], [0, 0, 1, 1], [], []>} : vector<2x16xf32>, vector<16x256xf32>, vector<2x256xf32> -> vector<2x256xf32>
    %c0_8 = arith.constant 0 : index
    %c0_9 = arith.constant 0 : index
    %8 = vector.load %arg21[%c0_8, %c0_9] : memref<2x64xf32, #tpu.memory_space<vmem>>, vector<2x64xf32>
    %c0_10 = arith.constant 0 : index
    %c0_11 = arith.constant 0 : index
    %9 = vector.load %arg22[%c0_10, %c0_11] : memref<2x64xf32, #tpu.memory_space<vmem>>, vector<2x64xf32>
    %c0_12 = arith.constant 0 : index
    %c0_13 = arith.constant 0 : index
    %10 = vector.load %arg3[%c0_12, %c0_13] : memref<64x256xf32, #tpu.memory_space<vmem>>, vector<64x256xf32>
    %cst_14 = arith.constant dense<0.000000e+00> : vector<2x256xf32>
    %11 = tpu.matmul %8, %10, %cst_14 {dimension_numbers = #tpu.dot_dimension_numbers<[1], [0], [0], [1], [0, 0, 1, 1], [], []>} : vector<2x64xf32>, vector<64x256xf32>, vector<2x256xf32> -> vector<2x256xf32>
    %12 = arith.addf %7, %11 : vector<2x256xf32>
    %c0_15 = arith.constant 0 : index
    %c0_16 = arith.constant 0 : index
    %13 = vector.load %arg4[%c0_15, %c0_16] : memref<1x256xf32, #tpu.memory_space<vmem>>, vector<1x256xf32>
    %14 = vector.broadcast %13 : vector<1x256xf32> to vector<2x256xf32>
    %15 = arith.addf %12, %14 : vector<2x256xf32>
    %16 = vector.extract_strided_slice %15 {offsets = [0, 0], sizes = [2, 64], strides = [1, 1]} : vector<2x256xf32> to vector<2x64xf32>
    %17 = arith.negf %16 : vector<2x64xf32>
    %18 = math.exp %17 : vector<2x64xf32>
    %cst_17 = arith.constant 1.000000e+00 : f32
    %19 = vector.broadcast %cst_17 : f32 to vector<2x64xf32>
    %20 = arith.addf %19, %18 : vector<2x64xf32>
    %21 = arith.divf %19, %20 : vector<2x64xf32>
    %22 = vector.extract_strided_slice %15 {offsets = [0, 64], sizes = [2, 64], strides = [1, 1]} : vector<2x256xf32> to vector<2x64xf32>
    %23 = arith.negf %22 : vector<2x64xf32>
    %24 = math.exp %23 : vector<2x64xf32>
    %cst_18 = arith.constant 1.000000e+00 : f32
    %25 = vector.broadcast %cst_18 : f32 to vector<2x64xf32>
    %26 = arith.addf %25, %24 : vector<2x64xf32>
    %27 = arith.divf %25, %26 : vector<2x64xf32>
    %28 = vector.extract_strided_slice %15 {offsets = [0, 128], sizes = [2, 64], strides = [1, 1]} : vector<2x256xf32> to vector<2x64xf32>
    %29 = math.tanh %28 : vector<2x64xf32>
    %30 = vector.extract_strided_slice %15 {offsets = [0, 192], sizes = [2, 64], strides = [1, 1]} : vector<2x256xf32> to vector<2x64xf32>
    %31 = arith.negf %30 : vector<2x64xf32>
    %32 = math.exp %31 : vector<2x64xf32>
    %cst_19 = arith.constant 1.000000e+00 : f32
    %33 = vector.broadcast %cst_19 : f32 to vector<2x64xf32>
    %34 = arith.addf %33, %32 : vector<2x64xf32>
    %35 = arith.divf %33, %34 : vector<2x64xf32>
    %36 = arith.mulf %27, %9 : vector<2x64xf32>
    %37 = arith.mulf %21, %29 : vector<2x64xf32>
    %38 = arith.addf %36, %37 : vector<2x64xf32>
    %39 = math.tanh %38 : vector<2x64xf32>
    %40 = arith.mulf %35, %39 : vector<2x64xf32>
    %41 = arith.index_cast %c0_i32 : i32 to index
    %c0_20 = arith.constant 0 : index
    %c0_21 = arith.constant 0 : index
    %42 = vector.load %arg19[%41, %c0_20, %c0_21] : memref<8x2x64xf32, #tpu.memory_space<vmem>>, vector<1x2x64xf32>
    %43 = vector.shape_cast %42 : vector<1x2x64xf32> to vector<2x64xf32>
    %44 = vector.shape_cast %40 : vector<2x64xf32> to vector<1x2x64xf32>
    tpu.vector_store %arg19[%41, %c0_20, %c0_21], %44 {strides = array<i32>} : memref<8x2x64xf32, #tpu.memory_space<vmem>>, vector<1x2x64xf32>,
    %c0_22 = arith.constant 0 : index
    %c0_23 = arith.constant 0 : index
    %45 = vector.load %arg21[%c0_22, %c0_23] : memref<2x64xf32, #tpu.memory_space<vmem>>, vector<2x64xf32>
    tpu.vector_store %arg21[%c0_22, %c0_23], %40 {strides = array<i32>} : memref<2x64xf32, #tpu.memory_space<vmem>>, vector<2x64xf32>,
    %c0_24 = arith.constant 0 : index
    %c0_25 = arith.constant 0 : index
    %46 = vector.load %arg22[%c0_24, %c0_25] : memref<2x64xf32, #tpu.memory_space<vmem>>, vector<2x64xf32>
    tpu.vector_store %arg22[%c0_24, %c0_25], %38 {strides = array<i32>} : memref<2x64xf32, #tpu.memory_space<vmem>>, vector<2x64xf32>,
    %c1_i32 = arith.constant 1 : i32
    %47 = arith.index_cast %c1_i32 : i32 to index
    %c0_26 = arith.constant 0 : index
    %c0_27 = arith.constant 0 : index
    %48 = vector.load %arg1[%47, %c0_26, %c0_27] : memref<8x2x16xf32, #tpu.memory_space<vmem>>, vector<1x2x16xf32>
    %49 = vector.shape_cast %48 : vector<1x2x16xf32> to vector<2x16xf32>
    %c0_28 = arith.constant 0 : index
    %c0_29 = arith.constant 0 : index
    %50 = vector.load %arg2[%c0_28, %c0_29] : memref<16x256xf32, #tpu.memory_space<vmem>>, vector<16x256xf32>
    %cst_30 = arith.constant dense<0.000000e+00> : vector<2x256xf32>
    %51 = tpu.matmul %49, %50, %cst_30 {dimension_numbers = #tpu.dot_dimension_numbers<[1], [0], [0], [1], [0, 0, 1, 1], [], []>} : vector<2x16xf32>, vector<16x256xf32>, vector<2x256xf32> -> vector<2x256xf32>
    %c0_31 = arith.constant 0 : index
    %c0_32 = arith.constant 0 : index
    %52 = vector.load %arg21[%c0_31, %c0_32] : memref<2x64xf32, #tpu.memory_space<vmem>>, vector<2x64xf32>
    %c0_33 = arith.constant 0 : index
    %c0_34 = arith.constant 0 : index
    %53 = vector.load %arg22[%c0_33, %c0_34] : memref<2x64xf32, #tpu.memory_space<vmem>>, vector<2x64xf32>
    %c0_35 = arith.constant 0 : index
    %c0_36 = arith.constant 0 : index
    %54 = vector.load %arg3[%c0_35, %c0_36] : memref<64x256xf32, #tpu.memory_space<vmem>>, vector<64x256xf32>
    %cst_37 = arith.constant dense<0.000000e+00> : vector<2x256xf32>
    %55 = tpu.matmul %52, %54, %cst_37 {dimension_numbers = #tpu.dot_dimension_numbers<[1], [0], [0], [1], [0, 0, 1, 1], [], []>} : vector<2x64xf32>, vector<64x256xf32>, vector<2x256xf32> -> vector<2x256xf32>
    %56 = arith.addf %51, %55 : vector<2x256xf32>
    %c0_38 = arith.constant 0 : index
    %c0_39 = arith.constant 0 : index
    %57 = vector.load %arg4[%c0_38, %c0_39] : memref<1x256xf32, #tpu.memory_space<vmem>>, vector<1x256xf32>
    %58 = vector.broadcast %57 : vector<1x256xf32> to vector<2x256xf32>
    %59 = arith.addf %56, %58 : vector<2x256xf32>
    %60 = vector.extract_strided_slice %59 {offsets = [0, 0], sizes = [2, 64], strides = [1, 1]} : vector<2x256xf32> to vector<2x64xf32>
    %61 = arith.negf %60 : vector<2x64xf32>
    %62 = math.exp %61 : vector<2x64xf32>
    %cst_40 = arith.constant 1.000000e+00 : f32
    %63 = vector.broadcast %cst_40 : f32 to vector<2x64xf32>
    %64 = arith.addf %63, %62 : vector<2x64xf32>
    %65 = arith.divf %63, %64 : vector<2x64xf32>
    %66 = vector.extract_strided_slice %59 {offsets = [0, 64], sizes = [2, 64], strides = [1, 1]} : vector<2x256xf32> to vector<2x64xf32>
    %67 = arith.negf %66 : vector<2x64xf32>
    %68 = math.exp %67 : vector<2x64xf32>
    %cst_41 = arith.constant 1.000000e+00 : f32
    %69 = vector.broadcast %cst_41 : f32 to vector<2x64xf32>
    %70 = arith.addf %69, %68 : vector<2x64xf32>
    %71 = arith.divf %69, %70 : vector<2x64xf32>
    %72 = vector.extract_strided_slice %59 {offsets = [0, 128], sizes = [2, 64], strides = [1, 1]} : vector<2x256xf32> to vector<2x64xf32>
    %73 = math.tanh %72 : vector<2x64xf32>
    %74 = vector.extract_strided_slice %59 {offsets = [0, 192], sizes = [2, 64], strides = [1, 1]} : vector<2x256xf32> to vector<2x64xf32>
    %75 = arith.negf %74 : vector<2x64xf32>
    %76 = math.exp %75 : vector<2x64xf32>
    %cst_42 = arith.constant 1.000000e+00 : f32
    %77 = vector.broadcast %cst_42 : f32 to vector<2x64xf32>
    %78 = arith.addf %77, %76 : vector<2x64xf32>
    %79 = arith.divf %77, %78 : vector<2x64xf32>
    %80 = arith.mulf %71, %53 : vector<2x64xf32>
    %81 = arith.mulf %65, %73 : vector<2x64xf32>
    %82 = arith.addf %80, %81 : vector<2x64xf32>
    %83 = math.tanh %82 : vector<2x64xf32>
    %84 = arith.mulf %79, %83 : vector<2x64xf32>
    %85 = arith.index_cast %c1_i32 : i32 to index
    %c0_43 = arith.constant 0 : index
    %c0_44 = arith.constant 0 : index
    %86 = vector.load %arg19[%85, %c0_43, %c0_44] : memref<8x2x64xf32, #tpu.memory_space<vmem>>, vector<1x2x64xf32>
    %87 = vector.shape_cast %86 : vector<1x2x64xf32> to vector<2x64xf32>
    %88 = vector.shape_cast %84 : vector<2x64xf32> to vector<1x2x64xf32>
    tpu.vector_store %arg19[%85, %c0_43, %c0_44], %88 {strides = array<i32>} : memref<8x2x64xf32, #tpu.memory_space<vmem>>, vector<1x2x64xf32>,
    %c0_45 = arith.constant 0 : index
    %c0_46 = arith.constant 0 : index
    %89 = vector.load %arg21[%c0_45, %c0_46] : memref<2x64xf32, #tpu.memory_space<vmem>>, vector<2x64xf32>
    tpu.vector_store %arg21[%c0_45, %c0_46], %84 {strides = array<i32>} : memref<2x64xf32, #tpu.memory_space<vmem>>, vector<2x64xf32>,
    %c0_47 = arith.constant 0 : index
    %c0_48 = arith.constant 0 : index
    %90 = vector.load %arg22[%c0_47, %c0_48] : memref<2x64xf32, #tpu.memory_space<vmem>>, vector<2x64xf32>
    tpu.vector_store %arg22[%c0_47, %c0_48], %82 {strides = array<i32>} : memref<2x64xf32, #tpu.memory_space<vmem>>, vector<2x64xf32>,
    %c2_i32 = arith.constant 2 : i32
    %91 = arith.index_cast %c2_i32 : i32 to index
    %c0_49 = arith.constant 0 : index
    %c0_50 = arith.constant 0 : index
    %92 = vector.load %arg1[%91, %c0_49, %c0_50] : memref<8x2x16xf32, #tpu.memory_space<vmem>>, vector<1x2x16xf32>
    %93 = vector.shape_cast %92 : vector<1x2x16xf32> to vector<2x16xf32>
    %c0_51 = arith.constant 0 : index
    %c0_52 = arith.constant 0 : index
    %94 = vector.load %arg2[%c0_51, %c0_52] : memref<16x256xf32, #tpu.memory_space<vmem>>, vector<16x256xf32>
    %cst_53 = arith.constant dense<0.000000e+00> : vector<2x256xf32>
    %95 = tpu.matmul %93, %94, %cst_53 {dimension_numbers = #tpu.dot_dimension_numbers<[1], [0], [0], [1], [0, 0, 1, 1], [], []>} : vector<2x16xf32>, vector<16x256xf32>, vector<2x256xf32> -> vector<2x256xf32>
    %c0_54 = arith.constant 0 : index
    %c0_55 = arith.constant 0 : index
    %96 = vector.load %arg21[%c0_54, %c0_55] : memref<2x64xf32, #tpu.memory_space<vmem>>, vector<2x64xf32>
    %c0_56 = arith.constant 0 : index
    %c0_57 = arith.constant 0 : index
    %97 = vector.load %arg22[%c0_56, %c0_57] : memref<2x64xf32, #tpu.memory_space<vmem>>, vector<2x64xf32>
    %c0_58 = arith.constant 0 : index
    %c0_59 = arith.constant 0 : index
    %98 = vector.load %arg3[%c0_58, %c0_59] : memref<64x256xf32, #tpu.memory_space<vmem>>, vector<64x256xf32>
    %cst_60 = arith.constant dense<0.000000e+00> : vector<2x256xf32>
    %99 = tpu.matmul %96, %98, %cst_60 {dimension_numbers = #tpu.dot_dimension_numbers<[1], [0], [0], [1], [0, 0, 1, 1], [], []>} : vector<2x64xf32>, vector<64x256xf32>, vector<2x256xf32> -> vector<2x256xf32>
    %100 = arith.addf %95, %99 : vector<2x256xf32>
    %c0_61 = arith.constant 0 : index
    %c0_62 = arith.constant 0 : index
    %101 = vector.load %arg4[%c0_61, %c0_62] : memref<1x256xf32, #tpu.memory_space<vmem>>, vector<1x256xf32>
    %102 = vector.broadcast %101 : vector<1x256xf32> to vector<2x256xf32>
    %103 = arith.addf %100, %102 : vector<2x256xf32>
    %104 = vector.extract_strided_slice %103 {offsets = [0, 0], sizes = [2, 64], strides = [1, 1]} : vector<2x256xf32> to vector<2x64xf32>
    %105 = arith.negf %104 : vector<2x64xf32>
    %106 = math.exp %105 : vector<2x64xf32>
    %cst_63 = arith.constant 1.000000e+00 : f32
    %107 = vector.broadcast %cst_63 : f32 to vector<2x64xf32>
    %108 = arith.addf %107, %106 : vector<2x64xf32>
    %109 = arith.divf %107, %108 : vector<2x64xf32>
    %110 = vector.extract_strided_slice %103 {offsets = [0, 64], sizes = [2, 64], strides = [1, 1]} : vector<2x256xf32> to vector<2x64xf32>
    %111 = arith.negf %110 : vector<2x64xf32>
    %112 = math.exp %111 : vector<2x64xf32>
    %cst_64 = arith.constant 1.000000e+00 : f32
    %113 = vector.broadcast %cst_64 : f32 to vector<2x64xf32>
    %114 = arith.addf %113, %112 : vector<2x64xf32>
    %115 = arith.divf %113, %114 : vector<2x64xf32>
    %116 = vector.extract_strided_slice %103 {offsets = [0, 128], sizes = [2, 64], strides = [1, 1]} : vector<2x256xf32> to vector<2x64xf32>
    %117 = math.tanh %116 : vector<2x64xf32>
    %118 = vector.extract_strided_slice %103 {offsets = [0, 192], sizes = [2, 64], strides = [1, 1]} : vector<2x256xf32> to vector<2x64xf32>
    %119 = arith.negf %118 : vector<2x64xf32>
    %120 = math.exp %119 : vector<2x64xf32>
    %cst_65 = arith.constant 1.000000e+00 : f32
    %121 = vector.broadcast %cst_65 : f32 to vector<2x64xf32>
    %122 = arith.addf %121, %120 : vector<2x64xf32>
    %123 = arith.divf %121, %122 : vector<2x64xf32>
    %124 = arith.mulf %115, %97 : vector<2x64xf32>
    %125 = arith.mulf %109, %117 : vector<2x64xf32>
    %126 = arith.addf %124, %125 : vector<2x64xf32>
    %127 = math.tanh %126 : vector<2x64xf32>
    %128 = arith.mulf %123, %127 : vector<2x64xf32>
    %129 = arith.index_cast %c2_i32 : i32 to index
    %c0_66 = arith.constant 0 : index
    %c0_67 = arith.constant 0 : index
    %130 = vector.load %arg19[%129, %c0_66, %c0_67] : memref<8x2x64xf32, #tpu.memory_space<vmem>>, vector<1x2x64xf32>
    %131 = vector.shape_cast %130 : vector<1x2x64xf32> to vector<2x64xf32>
    %132 = vector.shape_cast %128 : vector<2x64xf32> to vector<1x2x64xf32>
    tpu.vector_store %arg19[%129, %c0_66, %c0_67], %132 {strides = array<i32>} : memref<8x2x64xf32, #tpu.memory_space<vmem>>, vector<1x2x64xf32>,
    %c0_68 = arith.constant 0 : index
    %c0_69 = arith.constant 0 : index
    %133 = vector.load %arg21[%c0_68, %c0_69] : memref<2x64xf32, #tpu.memory_space<vmem>>, vector<2x64xf32>
    tpu.vector_store %arg21[%c0_68, %c0_69], %128 {strides = array<i32>} : memref<2x64xf32, #tpu.memory_space<vmem>>, vector<2x64xf32>,
    %c0_70 = arith.constant 0 : index
    %c0_71 = arith.constant 0 : index
    %134 = vector.load %arg22[%c0_70, %c0_71] : memref<2x64xf32, #tpu.memory_space<vmem>>, vector<2x64xf32>
    tpu.vector_store %arg22[%c0_70, %c0_71], %126 {strides = array<i32>} : memref<2x64xf32, #tpu.memory_space<vmem>>, vector<2x64xf32>,
    %c3_i32 = arith.constant 3 : i32
    %135 = arith.index_cast %c3_i32 : i32 to index
    %c0_72 = arith.constant 0 : index
    %c0_73 = arith.constant 0 : index
    %136 = vector.load %arg1[%135, %c0_72, %c0_73] : memref<8x2x16xf32, #tpu.memory_space<vmem>>, vector<1x2x16xf32>
    %137 = vector.shape_cast %136 : vector<1x2x16xf32> to vector<2x16xf32>
    %c0_74 = arith.constant 0 : index
    %c0_75 = arith.constant 0 : index
    %138 = vector.load %arg2[%c0_74, %c0_75] : memref<16x256xf32, #tpu.memory_space<vmem>>, vector<16x256xf32>
    %cst_76 = arith.constant dense<0.000000e+00> : vector<2x256xf32>
    %139 = tpu.matmul %137, %138, %cst_76 {dimension_numbers = #tpu.dot_dimension_numbers<[1], [0], [0], [1], [0, 0, 1, 1], [], []>} : vector<2x16xf32>, vector<16x256xf32>, vector<2x256xf32> -> vector<2x256xf32>
    %c0_77 = arith.constant 0 : index
    %c0_78 = arith.constant 0 : index
    %140 = vector.load %arg21[%c0_77, %c0_78] : memref<2x64xf32, #tpu.memory_space<vmem>>, vector<2x64xf32>
    %c0_79 = arith.constant 0 : index
    %c0_80 = arith.constant 0 : index
    %141 = vector.load %arg22[%c0_79, %c0_80] : memref<2x64xf32, #tpu.memory_space<vmem>>, vector<2x64xf32>
    %c0_81 = arith.constant 0 : index
    %c0_82 = arith.constant 0 : index
    %142 = vector.load %arg3[%c0_81, %c0_82] : memref<64x256xf32, #tpu.memory_space<vmem>>, vector<64x256xf32>
    %cst_83 = arith.constant dense<0.000000e+00> : vector<2x256xf32>
    %143 = tpu.matmul %140, %142, %cst_83 {dimension_numbers = #tpu.dot_dimension_numbers<[1], [0], [0], [1], [0, 0, 1, 1], [], []>} : vector<2x64xf32>, vector<64x256xf32>, vector<2x256xf32> -> vector<2x256xf32>
    %144 = arith.addf %139, %143 : vector<2x256xf32>
    %c0_84 = arith.constant 0 : index
    %c0_85 = arith.constant 0 : index
    %145 = vector.load %arg4[%c0_84, %c0_85] : memref<1x256xf32, #tpu.memory_space<vmem>>, vector<1x256xf32>
    %146 = vector.broadcast %145 : vector<1x256xf32> to vector<2x256xf32>
    %147 = arith.addf %144, %146 : vector<2x256xf32>
    %148 = vector.extract_strided_slice %147 {offsets = [0, 0], sizes = [2, 64], strides = [1, 1]} : vector<2x256xf32> to vector<2x64xf32>
    %149 = arith.negf %148 : vector<2x64xf32>
    %150 = math.exp %149 : vector<2x64xf32>
    %cst_86 = arith.constant 1.000000e+00 : f32
    %151 = vector.broadcast %cst_86 : f32 to vector<2x64xf32>
    %152 = arith.addf %151, %150 : vector<2x64xf32>
    %153 = arith.divf %151, %152 : vector<2x64xf32>
    %154 = vector.extract_strided_slice %147 {offsets = [0, 64], sizes = [2, 64], strides = [1, 1]} : vector<2x256xf32> to vector<2x64xf32>
    %155 = arith.negf %154 : vector<2x64xf32>
    %156 = math.exp %155 : vector<2x64xf32>
    %cst_87 = arith.constant 1.000000e+00 : f32
    %157 = vector.broadcast %cst_87 : f32 to vector<2x64xf32>
    %158 = arith.addf %157, %156 : vector<2x64xf32>
    %159 = arith.divf %157, %158 : vector<2x64xf32>
    %160 = vector.extract_strided_slice %147 {offsets = [0, 128], sizes = [2, 64], strides = [1, 1]} : vector<2x256xf32> to vector<2x64xf32>
    %161 = math.tanh %160 : vector<2x64xf32>
    %162 = vector.extract_strided_slice %147 {offsets = [0, 192], sizes = [2, 64], strides = [1, 1]} : vector<2x256xf32> to vector<2x64xf32>
    %163 = arith.negf %162 : vector<2x64xf32>
    %164 = math.exp %163 : vector<2x64xf32>
    %cst_88 = arith.constant 1.000000e+00 : f32
    %165 = vector.broadcast %cst_88 : f32 to vector<2x64xf32>
    %166 = arith.addf %165, %164 : vector<2x64xf32>
    %167 = arith.divf %165, %166 : vector<2x64xf32>
    %168 = arith.mulf %159, %141 : vector<2x64xf32>
    %169 = arith.mulf %153, %161 : vector<2x64xf32>
    %170 = arith.addf %168, %169 : vector<2x64xf32>
    %171 = math.tanh %170 : vector<2x64xf32>
    %172 = arith.mulf %167, %171 : vector<2x64xf32>
    %173 = arith.index_cast %c3_i32 : i32 to index
    %c0_89 = arith.constant 0 : index
    %c0_90 = arith.constant 0 : index
    %174 = vector.load %arg19[%173, %c0_89, %c0_90] : memref<8x2x64xf32, #tpu.memory_space<vmem>>, vector<1x2x64xf32>
    %175 = vector.shape_cast %174 : vector<1x2x64xf32> to vector<2x64xf32>
    %176 = vector.shape_cast %172 : vector<2x64xf32> to vector<1x2x64xf32>
    tpu.vector_store %arg19[%173, %c0_89, %c0_90], %176 {strides = array<i32>} : memref<8x2x64xf32, #tpu.memory_space<vmem>>, vector<1x2x64xf32>,
    %c0_91 = arith.constant 0 : index
    %c0_92 = arith.constant 0 : index
    %177 = vector.load %arg21[%c0_91, %c0_92] : memref<2x64xf32, #tpu.memory_space<vmem>>, vector<2x64xf32>
    tpu.vector_store %arg21[%c0_91, %c0_92], %172 {strides = array<i32>} : memref<2x64xf32, #tpu.memory_space<vmem>>, vector<2x64xf32>,
    %c0_93 = arith.constant 0 : index
    %c0_94 = arith.constant 0 : index
    %178 = vector.load %arg22[%c0_93, %c0_94] : memref<2x64xf32, #tpu.memory_space<vmem>>, vector<2x64xf32>
    tpu.vector_store %arg22[%c0_93, %c0_94], %170 {strides = array<i32>} : memref<2x64xf32, #tpu.memory_space<vmem>>, vector<2x64xf32>,
    %c4_i32 = arith.constant 4 : i32
    %179 = arith.index_cast %c4_i32 : i32 to index
    %c0_95 = arith.constant 0 : index
    %c0_96 = arith.constant 0 : index
    %180 = vector.load %arg1[%179, %c0_95, %c0_96] : memref<8x2x16xf32, #tpu.memory_space<vmem>>, vector<1x2x16xf32>
    %181 = vector.shape_cast %180 : vector<1x2x16xf32> to vector<2x16xf32>
    %c0_97 = arith.constant 0 : index
    %c0_98 = arith.constant 0 : index
    %182 = vector.load %arg2[%c0_97, %c0_98] : memref<16x256xf32, #tpu.memory_space<vmem>>, vector<16x256xf32>
    %cst_99 = arith.constant dense<0.000000e+00> : vector<2x256xf32>
    %183 = tpu.matmul %181, %182, %cst_99 {dimension_numbers = #tpu.dot_dimension_numbers<[1], [0], [0], [1], [0, 0, 1, 1], [], []>} : vector<2x16xf32>, vector<16x256xf32>, vector<2x256xf32> -> vector<2x256xf32>
    %c0_100 = arith.constant 0 : index
    %c0_101 = arith.constant 0 : index
    %184 = vector.load %arg21[%c0_100, %c0_101] : memref<2x64xf32, #tpu.memory_space<vmem>>, vector<2x64xf32>
    %c0_102 = arith.constant 0 : index
    %c0_103 = arith.constant 0 : index
    %185 = vector.load %arg22[%c0_102, %c0_103] : memref<2x64xf32, #tpu.memory_space<vmem>>, vector<2x64xf32>
    %c0_104 = arith.constant 0 : index
    %c0_105 = arith.constant 0 : index
    %186 = vector.load %arg3[%c0_104, %c0_105] : memref<64x256xf32, #tpu.memory_space<vmem>>, vector<64x256xf32>
    %cst_106 = arith.constant dense<0.000000e+00> : vector<2x256xf32>
    %187 = tpu.matmul %184, %186, %cst_106 {dimension_numbers = #tpu.dot_dimension_numbers<[1], [0], [0], [1], [0, 0, 1, 1], [], []>} : vector<2x64xf32>, vector<64x256xf32>, vector<2x256xf32> -> vector<2x256xf32>
    %188 = arith.addf %183, %187 : vector<2x256xf32>
    %c0_107 = arith.constant 0 : index
    %c0_108 = arith.constant 0 : index
    %189 = vector.load %arg4[%c0_107, %c0_108] : memref<1x256xf32, #tpu.memory_space<vmem>>, vector<1x256xf32>
    %190 = vector.broadcast %189 : vector<1x256xf32> to vector<2x256xf32>
    %191 = arith.addf %188, %190 : vector<2x256xf32>
    %192 = vector.extract_strided_slice %191 {offsets = [0, 0], sizes = [2, 64], strides = [1, 1]} : vector<2x256xf32> to vector<2x64xf32>
    %193 = arith.negf %192 : vector<2x64xf32>
    %194 = math.exp %193 : vector<2x64xf32>
    %cst_109 = arith.constant 1.000000e+00 : f32
    %195 = vector.broadcast %cst_109 : f32 to vector<2x64xf32>
    %196 = arith.addf %195, %194 : vector<2x64xf32>
    %197 = arith.divf %195, %196 : vector<2x64xf32>
    %198 = vector.extract_strided_slice %191 {offsets = [0, 64], sizes = [2, 64], strides = [1, 1]} : vector<2x256xf32> to vector<2x64xf32>
    %199 = arith.negf %198 : vector<2x64xf32>
    %200 = math.exp %199 : vector<2x64xf32>
    %cst_110 = arith.constant 1.000000e+00 : f32
    %201 = vector.broadcast %cst_110 : f32 to vector<2x64xf32>
    %202 = arith.addf %201, %200 : vector<2x64xf32>
    %203 = arith.divf %201, %202 : vector<2x64xf32>
    %204 = vector.extract_strided_slice %191 {offsets = [0, 128], sizes = [2, 64], strides = [1, 1]} : vector<2x256xf32> to vector<2x64xf32>
    %205 = math.tanh %204 : vector<2x64xf32>
    %206 = vector.extract_strided_slice %191 {offsets = [0, 192], sizes = [2, 64], strides = [1, 1]} : vector<2x256xf32> to vector<2x64xf32>
    %207 = arith.negf %206 : vector<2x64xf32>
    %208 = math.exp %207 : vector<2x64xf32>
    %cst_111 = arith.constant 1.000000e+00 : f32
    %209 = vector.broadcast %cst_111 : f32 to vector<2x64xf32>
    %210 = arith.addf %209, %208 : vector<2x64xf32>
    %211 = arith.divf %209, %210 : vector<2x64xf32>
    %212 = arith.mulf %203, %185 : vector<2x64xf32>
    %213 = arith.mulf %197, %205 : vector<2x64xf32>
    %214 = arith.addf %212, %213 : vector<2x64xf32>
    %215 = math.tanh %214 : vector<2x64xf32>
    %216 = arith.mulf %211, %215 : vector<2x64xf32>
    %217 = arith.index_cast %c4_i32 : i32 to index
    %c0_112 = arith.constant 0 : index
    %c0_113 = arith.constant 0 : index
    %218 = vector.load %arg19[%217, %c0_112, %c0_113] : memref<8x2x64xf32, #tpu.memory_space<vmem>>, vector<1x2x64xf32>
    %219 = vector.shape_cast %218 : vector<1x2x64xf32> to vector<2x64xf32>
    %220 = vector.shape_cast %216 : vector<2x64xf32> to vector<1x2x64xf32>
    tpu.vector_store %arg19[%217, %c0_112, %c0_113], %220 {strides = array<i32>} : memref<8x2x64xf32, #tpu.memory_space<vmem>>, vector<1x2x64xf32>,
    %c0_114 = arith.constant 0 : index
    %c0_115 = arith.constant 0 : index
    %221 = vector.load %arg21[%c0_114, %c0_115] : memref<2x64xf32, #tpu.memory_space<vmem>>, vector<2x64xf32>
    tpu.vector_store %arg21[%c0_114, %c0_115], %216 {strides = array<i32>} : memref<2x64xf32, #tpu.memory_space<vmem>>, vector<2x64xf32>,
    %c0_116 = arith.constant 0 : index
    %c0_117 = arith.constant 0 : index
    %222 = vector.load %arg22[%c0_116, %c0_117] : memref<2x64xf32, #tpu.memory_space<vmem>>, vector<2x64xf32>
    tpu.vector_store %arg22[%c0_116, %c0_117], %214 {strides = array<i32>} : memref<2x64xf32, #tpu.memory_space<vmem>>, vector<2x64xf32>,
    %c5_i32 = arith.constant 5 : i32
    %223 = arith.index_cast %c5_i32 : i32 to index
    %c0_118 = arith.constant 0 : index
    %c0_119 = arith.constant 0 : index
    %224 = vector.load %arg1[%223, %c0_118, %c0_119] : memref<8x2x16xf32, #tpu.memory_space<vmem>>, vector<1x2x16xf32>
    %225 = vector.shape_cast %224 : vector<1x2x16xf32> to vector<2x16xf32>
    %c0_120 = arith.constant 0 : index
    %c0_121 = arith.constant 0 : index
    %226 = vector.load %arg2[%c0_120, %c0_121] : memref<16x256xf32, #tpu.memory_space<vmem>>, vector<16x256xf32>
    %cst_122 = arith.constant dense<0.000000e+00> : vector<2x256xf32>
    %227 = tpu.matmul %225, %226, %cst_122 {dimension_numbers = #tpu.dot_dimension_numbers<[1], [0], [0], [1], [0, 0, 1, 1], [], []>} : vector<2x16xf32>, vector<16x256xf32>, vector<2x256xf32> -> vector<2x256xf32>
    %c0_123 = arith.constant 0 : index
    %c0_124 = arith.constant 0 : index
    %228 = vector.load %arg21[%c0_123, %c0_124] : memref<2x64xf32, #tpu.memory_space<vmem>>, vector<2x64xf32>
    %c0_125 = arith.constant 0 : index
    %c0_126 = arith.constant 0 : index
    %229 = vector.load %arg22[%c0_125, %c0_126] : memref<2x64xf32, #tpu.memory_space<vmem>>, vector<2x64xf32>
    %c0_127 = arith.constant 0 : index
    %c0_128 = arith.constant 0 : index
    %230 = vector.load %arg3[%c0_127, %c0_128] : memref<64x256xf32, #tpu.memory_space<vmem>>, vector<64x256xf32>
    %cst_129 = arith.constant dense<0.000000e+00> : vector<2x256xf32>
    %231 = tpu.matmul %228, %230, %cst_129 {dimension_numbers = #tpu.dot_dimension_numbers<[1], [0], [0], [1], [0, 0, 1, 1], [], []>} : vector<2x64xf32>, vector<64x256xf32>, vector<2x256xf32> -> vector<2x256xf32>
    %232 = arith.addf %227, %231 : vector<2x256xf32>
    %c0_130 = arith.constant 0 : index
    %c0_131 = arith.constant 0 : index
    %233 = vector.load %arg4[%c0_130, %c0_131] : memref<1x256xf32, #tpu.memory_space<vmem>>, vector<1x256xf32>
    %234 = vector.broadcast %233 : vector<1x256xf32> to vector<2x256xf32>
    %235 = arith.addf %232, %234 : vector<2x256xf32>
    %236 = vector.extract_strided_slice %235 {offsets = [0, 0], sizes = [2, 64], strides = [1, 1]} : vector<2x256xf32> to vector<2x64xf32>
    %237 = arith.negf %236 : vector<2x64xf32>
    %238 = math.exp %237 : vector<2x64xf32>
    %cst_132 = arith.constant 1.000000e+00 : f32
    %239 = vector.broadcast %cst_132 : f32 to vector<2x64xf32>
    %240 = arith.addf %239, %238 : vector<2x64xf32>
    %241 = arith.divf %239, %240 : vector<2x64xf32>
    %242 = vector.extract_strided_slice %235 {offsets = [0, 64], sizes = [2, 64], strides = [1, 1]} : vector<2x256xf32> to vector<2x64xf32>
    %243 = arith.negf %242 : vector<2x64xf32>
    %244 = math.exp %243 : vector<2x64xf32>
    %cst_133 = arith.constant 1.000000e+00 : f32
    %245 = vector.broadcast %cst_133 : f32 to vector<2x64xf32>
    %246 = arith.addf %245, %244 : vector<2x64xf32>
    %247 = arith.divf %245, %246 : vector<2x64xf32>
    %248 = vector.extract_strided_slice %235 {offsets = [0, 128], sizes = [2, 64], strides = [1, 1]} : vector<2x256xf32> to vector<2x64xf32>
    %249 = math.tanh %248 : vector<2x64xf32>
    %250 = vector.extract_strided_slice %235 {offsets = [0, 192], sizes = [2, 64], strides = [1, 1]} : vector<2x256xf32> to vector<2x64xf32>
    %251 = arith.negf %250 : vector<2x64xf32>
    %252 = math.exp %251 : vector<2x64xf32>
    %cst_134 = arith.constant 1.000000e+00 : f32
    %253 = vector.broadcast %cst_134 : f32 to vector<2x64xf32>
    %254 = arith.addf %253, %252 : vector<2x64xf32>
    %255 = arith.divf %253, %254 : vector<2x64xf32>
    %256 = arith.mulf %247, %229 : vector<2x64xf32>
    %257 = arith.mulf %241, %249 : vector<2x64xf32>
    %258 = arith.addf %256, %257 : vector<2x64xf32>
    %259 = math.tanh %258 : vector<2x64xf32>
    %260 = arith.mulf %255, %259 : vector<2x64xf32>
    %261 = arith.index_cast %c5_i32 : i32 to index
    %c0_135 = arith.constant 0 : index
    %c0_136 = arith.constant 0 : index
    %262 = vector.load %arg19[%261, %c0_135, %c0_136] : memref<8x2x64xf32, #tpu.memory_space<vmem>>, vector<1x2x64xf32>
    %263 = vector.shape_cast %262 : vector<1x2x64xf32> to vector<2x64xf32>
    %264 = vector.shape_cast %260 : vector<2x64xf32> to vector<1x2x64xf32>
    tpu.vector_store %arg19[%261, %c0_135, %c0_136], %264 {strides = array<i32>} : memref<8x2x64xf32, #tpu.memory_space<vmem>>, vector<1x2x64xf32>,
    %c0_137 = arith.constant 0 : index
    %c0_138 = arith.constant 0 : index
    %265 = vector.load %arg21[%c0_137, %c0_138] : memref<2x64xf32, #tpu.memory_space<vmem>>, vector<2x64xf32>
    tpu.vector_store %arg21[%c0_137, %c0_138], %260 {strides = array<i32>} : memref<2x64xf32, #tpu.memory_space<vmem>>, vector<2x64xf32>,
    %c0_139 = arith.constant 0 : index
    %c0_140 = arith.constant 0 : index
    %266 = vector.load %arg22[%c0_139, %c0_140] : memref<2x64xf32, #tpu.memory_space<vmem>>, vector<2x64xf32>
    tpu.vector_store %arg22[%c0_139, %c0_140], %258 {strides = array<i32>} : memref<2x64xf32, #tpu.memory_space<vmem>>, vector<2x64xf32>,
    %c6_i32 = arith.constant 6 : i32
    %267 = arith.index_cast %c6_i32 : i32 to index
    %c0_141 = arith.constant 0 : index
    %c0_142 = arith.constant 0 : index
    %268 = vector.load %arg1[%267, %c0_141, %c0_142] : memref<8x2x16xf32, #tpu.memory_space<vmem>>, vector<1x2x16xf32>
    %269 = vector.shape_cast %268 : vector<1x2x16xf32> to vector<2x16xf32>
    %c0_143 = arith.constant 0 : index
    %c0_144 = arith.constant 0 : index
    %270 = vector.load %arg2[%c0_143, %c0_144] : memref<16x256xf32, #tpu.memory_space<vmem>>, vector<16x256xf32>
    %cst_145 = arith.constant dense<0.000000e+00> : vector<2x256xf32>
    %271 = tpu.matmul %269, %270, %cst_145 {dimension_numbers = #tpu.dot_dimension_numbers<[1], [0], [0], [1], [0, 0, 1, 1], [], []>} : vector<2x16xf32>, vector<16x256xf32>, vector<2x256xf32> -> vector<2x256xf32>
    %c0_146 = arith.constant 0 : index
    %c0_147 = arith.constant 0 : index
    %272 = vector.load %arg21[%c0_146, %c0_147] : memref<2x64xf32, #tpu.memory_space<vmem>>, vector<2x64xf32>
    %c0_148 = arith.constant 0 : index
    %c0_149 = arith.constant 0 : index
    %273 = vector.load %arg22[%c0_148, %c0_149] : memref<2x64xf32, #tpu.memory_space<vmem>>, vector<2x64xf32>
    %c0_150 = arith.constant 0 : index
    %c0_151 = arith.constant 0 : index
    %274 = vector.load %arg3[%c0_150, %c0_151] : memref<64x256xf32, #tpu.memory_space<vmem>>, vector<64x256xf32>
    %cst_152 = arith.constant dense<0.000000e+00> : vector<2x256xf32>
    %275 = tpu.matmul %272, %274, %cst_152 {dimension_numbers = #tpu.dot_dimension_numbers<[1], [0], [0], [1], [0, 0, 1, 1], [], []>} : vector<2x64xf32>, vector<64x256xf32>, vector<2x256xf32> -> vector<2x256xf32>
    %276 = arith.addf %271, %275 : vector<2x256xf32>
    %c0_153 = arith.constant 0 : index
    %c0_154 = arith.constant 0 : index
    %277 = vector.load %arg4[%c0_153, %c0_154] : memref<1x256xf32, #tpu.memory_space<vmem>>, vector<1x256xf32>
    %278 = vector.broadcast %277 : vector<1x256xf32> to vector<2x256xf32>
    %279 = arith.addf %276, %278 : vector<2x256xf32>
    %280 = vector.extract_strided_slice %279 {offsets = [0, 0], sizes = [2, 64], strides = [1, 1]} : vector<2x256xf32> to vector<2x64xf32>
    %281 = arith.negf %280 : vector<2x64xf32>
    %282 = math.exp %281 : vector<2x64xf32>
    %cst_155 = arith.constant 1.000000e+00 : f32
    %283 = vector.broadcast %cst_155 : f32 to vector<2x64xf32>
    %284 = arith.addf %283, %282 : vector<2x64xf32>
    %285 = arith.divf %283, %284 : vector<2x64xf32>
    %286 = vector.extract_strided_slice %279 {offsets = [0, 64], sizes = [2, 64], strides = [1, 1]} : vector<2x256xf32> to vector<2x64xf32>
    %287 = arith.negf %286 : vector<2x64xf32>
    %288 = math.exp %287 : vector<2x64xf32>
    %cst_156 = arith.constant 1.000000e+00 : f32
    %289 = vector.broadcast %cst_156 : f32 to vector<2x64xf32>
    %290 = arith.addf %289, %288 : vector<2x64xf32>
    %291 = arith.divf %289, %290 : vector<2x64xf32>
    %292 = vector.extract_strided_slice %279 {offsets = [0, 128], sizes = [2, 64], strides = [1, 1]} : vector<2x256xf32> to vector<2x64xf32>
    %293 = math.tanh %292 : vector<2x64xf32>
    %294 = vector.extract_strided_slice %279 {offsets = [0, 192], sizes = [2, 64], strides = [1, 1]} : vector<2x256xf32> to vector<2x64xf32>
    %295 = arith.negf %294 : vector<2x64xf32>
    %296 = math.exp %295 : vector<2x64xf32>
    %cst_157 = arith.constant 1.000000e+00 : f32
    %297 = vector.broadcast %cst_157 : f32 to vector<2x64xf32>
    %298 = arith.addf %297, %296 : vector<2x64xf32>
    %299 = arith.divf %297, %298 : vector<2x64xf32>
    %300 = arith.mulf %291, %273 : vector<2x64xf32>
    %301 = arith.mulf %285, %293 : vector<2x64xf32>
    %302 = arith.addf %300, %301 : vector<2x64xf32>
    %303 = math.tanh %302 : vector<2x64xf32>
    %304 = arith.mulf %299, %303 : vector<2x64xf32>
    %305 = arith.index_cast %c6_i32 : i32 to index
    %c0_158 = arith.constant 0 : index
    %c0_159 = arith.constant 0 : index
    %306 = vector.load %arg19[%305, %c0_158, %c0_159] : memref<8x2x64xf32, #tpu.memory_space<vmem>>, vector<1x2x64xf32>
    %307 = vector.shape_cast %306 : vector<1x2x64xf32> to vector<2x64xf32>
    %308 = vector.shape_cast %304 : vector<2x64xf32> to vector<1x2x64xf32>
    tpu.vector_store %arg19[%305, %c0_158, %c0_159], %308 {strides = array<i32>} : memref<8x2x64xf32, #tpu.memory_space<vmem>>, vector<1x2x64xf32>,
    %c0_160 = arith.constant 0 : index
    %c0_161 = arith.constant 0 : index
    %309 = vector.load %arg21[%c0_160, %c0_161] : memref<2x64xf32, #tpu.memory_space<vmem>>, vector<2x64xf32>
    tpu.vector_store %arg21[%c0_160, %c0_161], %304 {strides = array<i32>} : memref<2x64xf32, #tpu.memory_space<vmem>>, vector<2x64xf32>,
    %c0_162 = arith.constant 0 : index
    %c0_163 = arith.constant 0 : index
    %310 = vector.load %arg22[%c0_162, %c0_163] : memref<2x64xf32, #tpu.memory_space<vmem>>, vector<2x64xf32>
    tpu.vector_store %arg22[%c0_162, %c0_163], %302 {strides = array<i32>} : memref<2x64xf32, #tpu.memory_space<vmem>>, vector<2x64xf32>,
    %c7_i32 = arith.constant 7 : i32
    %311 = arith.index_cast %c7_i32 : i32 to index
    %c0_164 = arith.constant 0 : index
    %c0_165 = arith.constant 0 : index
    %312 = vector.load %arg1[%311, %c0_164, %c0_165] : memref<8x2x16xf32, #tpu.memory_space<vmem>>, vector<1x2x16xf32>
    %313 = vector.shape_cast %312 : vector<1x2x16xf32> to vector<2x16xf32>
    %c0_166 = arith.constant 0 : index
    %c0_167 = arith.constant 0 : index
    %314 = vector.load %arg2[%c0_166, %c0_167] : memref<16x256xf32, #tpu.memory_space<vmem>>, vector<16x256xf32>
    %cst_168 = arith.constant dense<0.000000e+00> : vector<2x256xf32>
    %315 = tpu.matmul %313, %314, %cst_168 {dimension_numbers = #tpu.dot_dimension_numbers<[1], [0], [0], [1], [0, 0, 1, 1], [], []>} : vector<2x16xf32>, vector<16x256xf32>, vector<2x256xf32> -> vector<2x256xf32>
    %c0_169 = arith.constant 0 : index
    %c0_170 = arith.constant 0 : index
    %316 = vector.load %arg21[%c0_169, %c0_170] : memref<2x64xf32, #tpu.memory_space<vmem>>, vector<2x64xf32>
    %c0_171 = arith.constant 0 : index
    %c0_172 = arith.constant 0 : index
    %317 = vector.load %arg22[%c0_171, %c0_172] : memref<2x64xf32, #tpu.memory_space<vmem>>, vector<2x64xf32>
    %c0_173 = arith.constant 0 : index
    %c0_174 = arith.constant 0 : index
    %318 = vector.load %arg3[%c0_173, %c0_174] : memref<64x256xf32, #tpu.memory_space<vmem>>, vector<64x256xf32>
    %cst_175 = arith.constant dense<0.000000e+00> : vector<2x256xf32>
    %319 = tpu.matmul %316, %318, %cst_175 {dimension_numbers = #tpu.dot_dimension_numbers<[1], [0], [0], [1], [0, 0, 1, 1], [], []>} : vector<2x64xf32>, vector<64x256xf32>, vector<2x256xf32> -> vector<2x256xf32>
    %320 = arith.addf %315, %319 : vector<2x256xf32>
    %c0_176 = arith.constant 0 : index
    %c0_177 = arith.constant 0 : index
    %321 = vector.load %arg4[%c0_176, %c0_177] : memref<1x256xf32, #tpu.memory_space<vmem>>, vector<1x256xf32>
    %322 = vector.broadcast %321 : vector<1x256xf32> to vector<2x256xf32>
    %323 = arith.addf %320, %322 : vector<2x256xf32>
    %324 = vector.extract_strided_slice %323 {offsets = [0, 0], sizes = [2, 64], strides = [1, 1]} : vector<2x256xf32> to vector<2x64xf32>
    %325 = arith.negf %324 : vector<2x64xf32>
    %326 = math.exp %325 : vector<2x64xf32>
    %cst_178 = arith.constant 1.000000e+00 : f32
    %327 = vector.broadcast %cst_178 : f32 to vector<2x64xf32>
    %328 = arith.addf %327, %326 : vector<2x64xf32>
    %329 = arith.divf %327, %328 : vector<2x64xf32>
    %330 = vector.extract_strided_slice %323 {offsets = [0, 64], sizes = [2, 64], strides = [1, 1]} : vector<2x256xf32> to vector<2x64xf32>
    %331 = arith.negf %330 : vector<2x64xf32>
    %332 = math.exp %331 : vector<2x64xf32>
    %cst_179 = arith.constant 1.000000e+00 : f32
    %333 = vector.broadcast %cst_179 : f32 to vector<2x64xf32>
    %334 = arith.addf %333, %332 : vector<2x64xf32>
    %335 = arith.divf %333, %334 : vector<2x64xf32>
    %336 = vector.extract_strided_slice %323 {offsets = [0, 128], sizes = [2, 64], strides = [1, 1]} : vector<2x256xf32> to vector<2x64xf32>
    %337 = math.tanh %336 : vector<2x64xf32>
    %338 = vector.extract_strided_slice %323 {offsets = [0, 192], sizes = [2, 64], strides = [1, 1]} : vector<2x256xf32> to vector<2x64xf32>
    %339 = arith.negf %338 : vector<2x64xf32>
    %340 = math.exp %339 : vector<2x64xf32>
    %cst_180 = arith.constant 1.000000e+00 : f32
    %341 = vector.broadcast %cst_180 : f32 to vector<2x64xf32>
    %342 = arith.addf %341, %340 : vector<2x64xf32>
    %343 = arith.divf %341, %342 : vector<2x64xf32>
    %344 = arith.mulf %335, %317 : vector<2x64xf32>
    %345 = arith.mulf %329, %337 : vector<2x64xf32>
    %346 = arith.addf %344, %345 : vector<2x64xf32>
    %347 = math.tanh %346 : vector<2x64xf32>
    %348 = arith.mulf %343, %347 : vector<2x64xf32>
    %349 = arith.index_cast %c7_i32 : i32 to index
    %c0_181 = arith.constant 0 : index
    %c0_182 = arith.constant 0 : index
    %350 = vector.load %arg19[%349, %c0_181, %c0_182] : memref<8x2x64xf32, #tpu.memory_space<vmem>>, vector<1x2x64xf32>
    %351 = vector.shape_cast %350 : vector<1x2x64xf32> to vector<2x64xf32>
    %352 = vector.shape_cast %348 : vector<2x64xf32> to vector<1x2x64xf32>
    tpu.vector_store %arg19[%349, %c0_181, %c0_182], %352 {strides = array<i32>} : memref<8x2x64xf32, #tpu.memory_space<vmem>>, vector<1x2x64xf32>,
    %c0_183 = arith.constant 0 : index
    %c0_184 = arith.constant 0 : index
    %353 = vector.load %arg21[%c0_183, %c0_184] : memref<2x64xf32, #tpu.memory_space<vmem>>, vector<2x64xf32>
    tpu.vector_store %arg21[%c0_183, %c0_184], %348 {strides = array<i32>} : memref<2x64xf32, #tpu.memory_space<vmem>>, vector<2x64xf32>,
    %c0_185 = arith.constant 0 : index
    %c0_186 = arith.constant 0 : index
    %354 = vector.load %arg22[%c0_185, %c0_186] : memref<2x64xf32, #tpu.memory_space<vmem>>, vector<2x64xf32>
    tpu.vector_store %arg22[%c0_185, %c0_186], %346 {strides = array<i32>} : memref<2x64xf32, #tpu.memory_space<vmem>>, vector<2x64xf32>,
    %c8_i32 = arith.constant 8 : i32
    %c0_187 = arith.constant 0 : index
    %c0_188 = arith.constant 0 : index
    %355 = vector.load %arg21[%c0_187, %c0_188] : memref<2x64xf32, #tpu.memory_space<vmem>>, vector<2x64xf32>
    tpu.vector_store %arg21[%c0_187, %c0_188], %0 {strides = array<i32>} : memref<2x64xf32, #tpu.memory_space<vmem>>, vector<2x64xf32>,
    %c0_189 = arith.constant 0 : index
    %c0_190 = arith.constant 0 : index
    %356 = vector.load %arg22[%c0_189, %c0_190] : memref<2x64xf32, #tpu.memory_space<vmem>>, vector<2x64xf32>
    tpu.vector_store %arg22[%c0_189, %c0_190], %0 {strides = array<i32>} : memref<2x64xf32, #tpu.memory_space<vmem>>, vector<2x64xf32>,
    %c0_i32_191 = arith.constant 0 : i32
    %c7_i32_192 = arith.constant 7 : i32
    %357 = arith.subi %c7_i32_192, %c0_i32_191 : i32
    %358 = arith.index_cast %357 : i32 to index
    %c0_193 = arith.constant 0 : index
    %c0_194 = arith.constant 0 : index
    %359 = vector.load %arg1[%358, %c0_193, %c0_194] : memref<8x2x16xf32, #tpu.memory_space<vmem>>, vector<1x2x16xf32>
    %360 = vector.shape_cast %359 : vector<1x2x16xf32> to vector<2x16xf32>
    %c0_195 = arith.constant 0 : index
    %c0_196 = arith.constant 0 : index
    %361 = vector.load %arg5[%c0_195, %c0_196] : memref<16x256xf32, #tpu.memory_space<vmem>>, vector<16x256xf32>
    %cst_197 = arith.constant dense<0.000000e+00> : vector<2x256xf32>
    %362 = tpu.matmul %360, %361, %cst_197 {dimension_numbers = #tpu.dot_dimension_numbers<[1], [0], [0], [1], [0, 0, 1, 1], [], []>} : vector<2x16xf32>, vector<16x256xf32>, vector<2x256xf32> -> vector<2x256xf32>
    %c0_198 = arith.constant 0 : index
    %c0_199 = arith.constant 0 : index
    %363 = vector.load %arg21[%c0_198, %c0_199] : memref<2x64xf32, #tpu.memory_space<vmem>>, vector<2x64xf32>
    %c0_200 = arith.constant 0 : index
    %c0_201 = arith.constant 0 : index
    %364 = vector.load %arg22[%c0_200, %c0_201] : memref<2x64xf32, #tpu.memory_space<vmem>>, vector<2x64xf32>
    %c0_202 = arith.constant 0 : index
    %c0_203 = arith.constant 0 : index
    %365 = vector.load %arg6[%c0_202, %c0_203] : memref<64x256xf32, #tpu.memory_space<vmem>>, vector<64x256xf32>
    %cst_204 = arith.constant dense<0.000000e+00> : vector<2x256xf32>
    %366 = tpu.matmul %363, %365, %cst_204 {dimension_numbers = #tpu.dot_dimension_numbers<[1], [0], [0], [1], [0, 0, 1, 1], [], []>} : vector<2x64xf32>, vector<64x256xf32>, vector<2x256xf32> -> vector<2x256xf32>
    %367 = arith.addf %362, %366 : vector<2x256xf32>
    %c0_205 = arith.constant 0 : index
    %c0_206 = arith.constant 0 : index
    %368 = vector.load %arg7[%c0_205, %c0_206] : memref<1x256xf32, #tpu.memory_space<vmem>>, vector<1x256xf32>
    %369 = vector.broadcast %368 : vector<1x256xf32> to vector<2x256xf32>
    %370 = arith.addf %367, %369 : vector<2x256xf32>
    %371 = vector.extract_strided_slice %370 {offsets = [0, 0], sizes = [2, 64], strides = [1, 1]} : vector<2x256xf32> to vector<2x64xf32>
    %372 = arith.negf %371 : vector<2x64xf32>
    %373 = math.exp %372 : vector<2x64xf32>
    %cst_207 = arith.constant 1.000000e+00 : f32
    %374 = vector.broadcast %cst_207 : f32 to vector<2x64xf32>
    %375 = arith.addf %374, %373 : vector<2x64xf32>
    %376 = arith.divf %374, %375 : vector<2x64xf32>
    %377 = vector.extract_strided_slice %370 {offsets = [0, 64], sizes = [2, 64], strides = [1, 1]} : vector<2x256xf32> to vector<2x64xf32>
    %378 = arith.negf %377 : vector<2x64xf32>
    %379 = math.exp %378 : vector<2x64xf32>
    %cst_208 = arith.constant 1.000000e+00 : f32
    %380 = vector.broadcast %cst_208 : f32 to vector<2x64xf32>
    %381 = arith.addf %380, %379 : vector<2x64xf32>
    %382 = arith.divf %380, %381 : vector<2x64xf32>
    %383 = vector.extract_strided_slice %370 {offsets = [0, 128], sizes = [2, 64], strides = [1, 1]} : vector<2x256xf32> to vector<2x64xf32>
    %384 = math.tanh %383 : vector<2x64xf32>
    %385 = vector.extract_strided_slice %370 {offsets = [0, 192], sizes = [2, 64], strides = [1, 1]} : vector<2x256xf32> to vector<2x64xf32>
    %386 = arith.negf %385 : vector<2x64xf32>
    %387 = math.exp %386 : vector<2x64xf32>
    %cst_209 = arith.constant 1.000000e+00 : f32
    %388 = vector.broadcast %cst_209 : f32 to vector<2x64xf32>
    %389 = arith.addf %388, %387 : vector<2x64xf32>
    %390 = arith.divf %388, %389 : vector<2x64xf32>
    %391 = arith.mulf %382, %364 : vector<2x64xf32>
    %392 = arith.mulf %376, %384 : vector<2x64xf32>
    %393 = arith.addf %391, %392 : vector<2x64xf32>
    %394 = math.tanh %393 : vector<2x64xf32>
    %395 = arith.mulf %390, %394 : vector<2x64xf32>
    %396 = arith.index_cast %357 : i32 to index
    %c0_210 = arith.constant 0 : index
    %c0_211 = arith.constant 0 : index
    %397 = vector.load %arg20[%396, %c0_210, %c0_211] : memref<8x2x64xf32, #tpu.memory_space<vmem>>, vector<1x2x64xf32>
    %398 = vector.shape_cast %397 : vector<1x2x64xf32> to vector<2x64xf32>
    %399 = vector.shape_cast %395 : vector<2x64xf32> to vector<1x2x64xf32>
    tpu.vector_store %arg20[%396, %c0_210, %c0_211], %399 {strides = array<i32>} : memref<8x2x64xf32, #tpu.memory_space<vmem>>, vector<1x2x64xf32>,
    %c0_212 = arith.constant 0 : index
    %c0_213 = arith.constant 0 : index
    %400 = vector.load %arg21[%c0_212, %c0_213] : memref<2x64xf32, #tpu.memory_space<vmem>>, vector<2x64xf32>
    tpu.vector_store %arg21[%c0_212, %c0_213], %395 {strides = array<i32>} : memref<2x64xf32, #tpu.memory_space<vmem>>, vector<2x64xf32>,
    %c0_214 = arith.constant 0 : index
    %c0_215 = arith.constant 0 : index
    %401 = vector.load %arg22[%c0_214, %c0_215] : memref<2x64xf32, #tpu.memory_space<vmem>>, vector<2x64xf32>
    tpu.vector_store %arg22[%c0_214, %c0_215], %393 {strides = array<i32>} : memref<2x64xf32, #tpu.memory_space<vmem>>, vector<2x64xf32>,
    %c1_i32_216 = arith.constant 1 : i32
    %c7_i32_217 = arith.constant 7 : i32
    %402 = arith.subi %c7_i32_217, %c1_i32_216 : i32
    %403 = arith.index_cast %402 : i32 to index
    %c0_218 = arith.constant 0 : index
    %c0_219 = arith.constant 0 : index
    %404 = vector.load %arg1[%403, %c0_218, %c0_219] : memref<8x2x16xf32, #tpu.memory_space<vmem>>, vector<1x2x16xf32>
    %405 = vector.shape_cast %404 : vector<1x2x16xf32> to vector<2x16xf32>
    %c0_220 = arith.constant 0 : index
    %c0_221 = arith.constant 0 : index
    %406 = vector.load %arg5[%c0_220, %c0_221] : memref<16x256xf32, #tpu.memory_space<vmem>>, vector<16x256xf32>
    %cst_222 = arith.constant dense<0.000000e+00> : vector<2x256xf32>
    %407 = tpu.matmul %405, %406, %cst_222 {dimension_numbers = #tpu.dot_dimension_numbers<[1], [0], [0], [1], [0, 0, 1, 1], [], []>} : vector<2x16xf32>, vector<16x256xf32>, vector<2x256xf32> -> vector<2x256xf32>
    %c0_223 = arith.constant 0 : index
    %c0_224 = arith.constant 0 : index
    %408 = vector.load %arg21[%c0_223, %c0_224] : memref<2x64xf32, #tpu.memory_space<vmem>>, vector<2x64xf32>
    %c0_225 = arith.constant 0 : index
    %c0_226 = arith.constant 0 : index
    %409 = vector.load %arg22[%c0_225, %c0_226] : memref<2x64xf32, #tpu.memory_space<vmem>>, vector<2x64xf32>
    %c0_227 = arith.constant 0 : index
    %c0_228 = arith.constant 0 : index
    %410 = vector.load %arg6[%c0_227, %c0_228] : memref<64x256xf32, #tpu.memory_space<vmem>>, vector<64x256xf32>
    %cst_229 = arith.constant dense<0.000000e+00> : vector<2x256xf32>
    %411 = tpu.matmul %408, %410, %cst_229 {dimension_numbers = #tpu.dot_dimension_numbers<[1], [0], [0], [1], [0, 0, 1, 1], [], []>} : vector<2x64xf32>, vector<64x256xf32>, vector<2x256xf32> -> vector<2x256xf32>
    %412 = arith.addf %407, %411 : vector<2x256xf32>
    %c0_230 = arith.constant 0 : index
    %c0_231 = arith.constant 0 : index
    %413 = vector.load %arg7[%c0_230, %c0_231] : memref<1x256xf32, #tpu.memory_space<vmem>>, vector<1x256xf32>
    %414 = vector.broadcast %413 : vector<1x256xf32> to vector<2x256xf32>
    %415 = arith.addf %412, %414 : vector<2x256xf32>
    %416 = vector.extract_strided_slice %415 {offsets = [0, 0], sizes = [2, 64], strides = [1, 1]} : vector<2x256xf32> to vector<2x64xf32>
    %417 = arith.negf %416 : vector<2x64xf32>
    %418 = math.exp %417 : vector<2x64xf32>
    %cst_232 = arith.constant 1.000000e+00 : f32
    %419 = vector.broadcast %cst_232 : f32 to vector<2x64xf32>
    %420 = arith.addf %419, %418 : vector<2x64xf32>
    %421 = arith.divf %419, %420 : vector<2x64xf32>
    %422 = vector.extract_strided_slice %415 {offsets = [0, 64], sizes = [2, 64], strides = [1, 1]} : vector<2x256xf32> to vector<2x64xf32>
    %423 = arith.negf %422 : vector<2x64xf32>
    %424 = math.exp %423 : vector<2x64xf32>
    %cst_233 = arith.constant 1.000000e+00 : f32
    %425 = vector.broadcast %cst_233 : f32 to vector<2x64xf32>
    %426 = arith.addf %425, %424 : vector<2x64xf32>
    %427 = arith.divf %425, %426 : vector<2x64xf32>
    %428 = vector.extract_strided_slice %415 {offsets = [0, 128], sizes = [2, 64], strides = [1, 1]} : vector<2x256xf32> to vector<2x64xf32>
    %429 = math.tanh %428 : vector<2x64xf32>
    %430 = vector.extract_strided_slice %415 {offsets = [0, 192], sizes = [2, 64], strides = [1, 1]} : vector<2x256xf32> to vector<2x64xf32>
    %431 = arith.negf %430 : vector<2x64xf32>
    %432 = math.exp %431 : vector<2x64xf32>
    %cst_234 = arith.constant 1.000000e+00 : f32
    %433 = vector.broadcast %cst_234 : f32 to vector<2x64xf32>
    %434 = arith.addf %433, %432 : vector<2x64xf32>
    %435 = arith.divf %433, %434 : vector<2x64xf32>
    %436 = arith.mulf %427, %409 : vector<2x64xf32>
    %437 = arith.mulf %421, %429 : vector<2x64xf32>
    %438 = arith.addf %436, %437 : vector<2x64xf32>
    %439 = math.tanh %438 : vector<2x64xf32>
    %440 = arith.mulf %435, %439 : vector<2x64xf32>
    %441 = arith.index_cast %402 : i32 to index
    %c0_235 = arith.constant 0 : index
    %c0_236 = arith.constant 0 : index
    %442 = vector.load %arg20[%441, %c0_235, %c0_236] : memref<8x2x64xf32, #tpu.memory_space<vmem>>, vector<1x2x64xf32>
    %443 = vector.shape_cast %442 : vector<1x2x64xf32> to vector<2x64xf32>
    %444 = vector.shape_cast %440 : vector<2x64xf32> to vector<1x2x64xf32>
    tpu.vector_store %arg20[%441, %c0_235, %c0_236], %444 {strides = array<i32>} : memref<8x2x64xf32, #tpu.memory_space<vmem>>, vector<1x2x64xf32>,
    %c0_237 = arith.constant 0 : index
    %c0_238 = arith.constant 0 : index
    %445 = vector.load %arg21[%c0_237, %c0_238] : memref<2x64xf32, #tpu.memory_space<vmem>>, vector<2x64xf32>
    tpu.vector_store %arg21[%c0_237, %c0_238], %440 {strides = array<i32>} : memref<2x64xf32, #tpu.memory_space<vmem>>, vector<2x64xf32>,
    %c0_239 = arith.constant 0 : index
    %c0_240 = arith.constant 0 : index
    %446 = vector.load %arg22[%c0_239, %c0_240] : memref<2x64xf32, #tpu.memory_space<vmem>>, vector<2x64xf32>
    tpu.vector_store %arg22[%c0_239, %c0_240], %438 {strides = array<i32>} : memref<2x64xf32, #tpu.memory_space<vmem>>, vector<2x64xf32>,
    %c2_i32_241 = arith.constant 2 : i32
    %c7_i32_242 = arith.constant 7 : i32
    %447 = arith.subi %c7_i32_242, %c2_i32_241 : i32
    %448 = arith.index_cast %447 : i32 to index
    %c0_243 = arith.constant 0 : index
    %c0_244 = arith.constant 0 : index
    %449 = vector.load %arg1[%448, %c0_243, %c0_244] : memref<8x2x16xf32, #tpu.memory_space<vmem>>, vector<1x2x16xf32>
    %450 = vector.shape_cast %449 : vector<1x2x16xf32> to vector<2x16xf32>
    %c0_245 = arith.constant 0 : index
    %c0_246 = arith.constant 0 : index
    %451 = vector.load %arg5[%c0_245, %c0_246] : memref<16x256xf32, #tpu.memory_space<vmem>>, vector<16x256xf32>
    %cst_247 = arith.constant dense<0.000000e+00> : vector<2x256xf32>
    %452 = tpu.matmul %450, %451, %cst_247 {dimension_numbers = #tpu.dot_dimension_numbers<[1], [0], [0], [1], [0, 0, 1, 1], [], []>} : vector<2x16xf32>, vector<16x256xf32>, vector<2x256xf32> -> vector<2x256xf32>
    %c0_248 = arith.constant 0 : index
    %c0_249 = arith.constant 0 : index
    %453 = vector.load %arg21[%c0_248, %c0_249] : memref<2x64xf32, #tpu.memory_space<vmem>>, vector<2x64xf32>
    %c0_250 = arith.constant 0 : index
    %c0_251 = arith.constant 0 : index
    %454 = vector.load %arg22[%c0_250, %c0_251] : memref<2x64xf32, #tpu.memory_space<vmem>>, vector<2x64xf32>
    %c0_252 = arith.constant 0 : index
    %c0_253 = arith.constant 0 : index
    %455 = vector.load %arg6[%c0_252, %c0_253] : memref<64x256xf32, #tpu.memory_space<vmem>>, vector<64x256xf32>
    %cst_254 = arith.constant dense<0.000000e+00> : vector<2x256xf32>
    %456 = tpu.matmul %453, %455, %cst_254 {dimension_numbers = #tpu.dot_dimension_numbers<[1], [0], [0], [1], [0, 0, 1, 1], [], []>} : vector<2x64xf32>, vector<64x256xf32>, vector<2x256xf32> -> vector<2x256xf32>
    %457 = arith.addf %452, %456 : vector<2x256xf32>
    %c0_255 = arith.constant 0 : index
    %c0_256 = arith.constant 0 : index
    %458 = vector.load %arg7[%c0_255, %c0_256] : memref<1x256xf32, #tpu.memory_space<vmem>>, vector<1x256xf32>
    %459 = vector.broadcast %458 : vector<1x256xf32> to vector<2x256xf32>
    %460 = arith.addf %457, %459 : vector<2x256xf32>
    %461 = vector.extract_strided_slice %460 {offsets = [0, 0], sizes = [2, 64], strides = [1, 1]} : vector<2x256xf32> to vector<2x64xf32>
    %462 = arith.negf %461 : vector<2x64xf32>
    %463 = math.exp %462 : vector<2x64xf32>
    %cst_257 = arith.constant 1.000000e+00 : f32
    %464 = vector.broadcast %cst_257 : f32 to vector<2x64xf32>
    %465 = arith.addf %464, %463 : vector<2x64xf32>
    %466 = arith.divf %464, %465 : vector<2x64xf32>
    %467 = vector.extract_strided_slice %460 {offsets = [0, 64], sizes = [2, 64], strides = [1, 1]} : vector<2x256xf32> to vector<2x64xf32>
    %468 = arith.negf %467 : vector<2x64xf32>
    %469 = math.exp %468 : vector<2x64xf32>
    %cst_258 = arith.constant 1.000000e+00 : f32
    %470 = vector.broadcast %cst_258 : f32 to vector<2x64xf32>
    %471 = arith.addf %470, %469 : vector<2x64xf32>
    %472 = arith.divf %470, %471 : vector<2x64xf32>
    %473 = vector.extract_strided_slice %460 {offsets = [0, 128], sizes = [2, 64], strides = [1, 1]} : vector<2x256xf32> to vector<2x64xf32>
    %474 = math.tanh %473 : vector<2x64xf32>
    %475 = vector.extract_strided_slice %460 {offsets = [0, 192], sizes = [2, 64], strides = [1, 1]} : vector<2x256xf32> to vector<2x64xf32>
    %476 = arith.negf %475 : vector<2x64xf32>
    %477 = math.exp %476 : vector<2x64xf32>
    %cst_259 = arith.constant 1.000000e+00 : f32
    %478 = vector.broadcast %cst_259 : f32 to vector<2x64xf32>
    %479 = arith.addf %478, %477 : vector<2x64xf32>
    %480 = arith.divf %478, %479 : vector<2x64xf32>
    %481 = arith.mulf %472, %454 : vector<2x64xf32>
    %482 = arith.mulf %466, %474 : vector<2x64xf32>
    %483 = arith.addf %481, %482 : vector<2x64xf32>
    %484 = math.tanh %483 : vector<2x64xf32>
    %485 = arith.mulf %480, %484 : vector<2x64xf32>
    %486 = arith.index_cast %447 : i32 to index
    %c0_260 = arith.constant 0 : index
    %c0_261 = arith.constant 0 : index
    %487 = vector.load %arg20[%486, %c0_260, %c0_261] : memref<8x2x64xf32, #tpu.memory_space<vmem>>, vector<1x2x64xf32>
    %488 = vector.shape_cast %487 : vector<1x2x64xf32> to vector<2x64xf32>
    %489 = vector.shape_cast %485 : vector<2x64xf32> to vector<1x2x64xf32>
    tpu.vector_store %arg20[%486, %c0_260, %c0_261], %489 {strides = array<i32>} : memref<8x2x64xf32, #tpu.memory_space<vmem>>, vector<1x2x64xf32>,
    %c0_262 = arith.constant 0 : index
    %c0_263 = arith.constant 0 : index
    %490 = vector.load %arg21[%c0_262, %c0_263] : memref<2x64xf32, #tpu.memory_space<vmem>>, vector<2x64xf32>
    tpu.vector_store %arg21[%c0_262, %c0_263], %485 {strides = array<i32>} : memref<2x64xf32, #tpu.memory_space<vmem>>, vector<2x64xf32>,
    %c0_264 = arith.constant 0 : index
    %c0_265 = arith.constant 0 : index
    %491 = vector.load %arg22[%c0_264, %c0_265] : memref<2x64xf32, #tpu.memory_space<vmem>>, vector<2x64xf32>
    tpu.vector_store %arg22[%c0_264, %c0_265], %483 {strides = array<i32>} : memref<2x64xf32, #tpu.memory_space<vmem>>, vector<2x64xf32>,
    %c3_i32_266 = arith.constant 3 : i32
    %c7_i32_267 = arith.constant 7 : i32
    %492 = arith.subi %c7_i32_267, %c3_i32_266 : i32
    %493 = arith.index_cast %492 : i32 to index
    %c0_268 = arith.constant 0 : index
    %c0_269 = arith.constant 0 : index
    %494 = vector.load %arg1[%493, %c0_268, %c0_269] : memref<8x2x16xf32, #tpu.memory_space<vmem>>, vector<1x2x16xf32>
    %495 = vector.shape_cast %494 : vector<1x2x16xf32> to vector<2x16xf32>
    %c0_270 = arith.constant 0 : index
    %c0_271 = arith.constant 0 : index
    %496 = vector.load %arg5[%c0_270, %c0_271] : memref<16x256xf32, #tpu.memory_space<vmem>>, vector<16x256xf32>
    %cst_272 = arith.constant dense<0.000000e+00> : vector<2x256xf32>
    %497 = tpu.matmul %495, %496, %cst_272 {dimension_numbers = #tpu.dot_dimension_numbers<[1], [0], [0], [1], [0, 0, 1, 1], [], []>} : vector<2x16xf32>, vector<16x256xf32>, vector<2x256xf32> -> vector<2x256xf32>
    %c0_273 = arith.constant 0 : index
    %c0_274 = arith.constant 0 : index
    %498 = vector.load %arg21[%c0_273, %c0_274] : memref<2x64xf32, #tpu.memory_space<vmem>>, vector<2x64xf32>
    %c0_275 = arith.constant 0 : index
    %c0_276 = arith.constant 0 : index
    %499 = vector.load %arg22[%c0_275, %c0_276] : memref<2x64xf32, #tpu.memory_space<vmem>>, vector<2x64xf32>
    %c0_277 = arith.constant 0 : index
    %c0_278 = arith.constant 0 : index
    %500 = vector.load %arg6[%c0_277, %c0_278] : memref<64x256xf32, #tpu.memory_space<vmem>>, vector<64x256xf32>
    %cst_279 = arith.constant dense<0.000000e+00> : vector<2x256xf32>
    %501 = tpu.matmul %498, %500, %cst_279 {dimension_numbers = #tpu.dot_dimension_numbers<[1], [0], [0], [1], [0, 0, 1, 1], [], []>} : vector<2x64xf32>, vector<64x256xf32>, vector<2x256xf32> -> vector<2x256xf32>
    %502 = arith.addf %497, %501 : vector<2x256xf32>
    %c0_280 = arith.constant 0 : index
    %c0_281 = arith.constant 0 : index
    %503 = vector.load %arg7[%c0_280, %c0_281] : memref<1x256xf32, #tpu.memory_space<vmem>>, vector<1x256xf32>
    %504 = vector.broadcast %503 : vector<1x256xf32> to vector<2x256xf32>
    %505 = arith.addf %502, %504 : vector<2x256xf32>
    %506 = vector.extract_strided_slice %505 {offsets = [0, 0], sizes = [2, 64], strides = [1, 1]} : vector<2x256xf32> to vector<2x64xf32>
    %507 = arith.negf %506 : vector<2x64xf32>
    %508 = math.exp %507 : vector<2x64xf32>
    %cst_282 = arith.constant 1.000000e+00 : f32
    %509 = vector.broadcast %cst_282 : f32 to vector<2x64xf32>
    %510 = arith.addf %509, %508 : vector<2x64xf32>
    %511 = arith.divf %509, %510 : vector<2x64xf32>
    %512 = vector.extract_strided_slice %505 {offsets = [0, 64], sizes = [2, 64], strides = [1, 1]} : vector<2x256xf32> to vector<2x64xf32>
    %513 = arith.negf %512 : vector<2x64xf32>
    %514 = math.exp %513 : vector<2x64xf32>
    %cst_283 = arith.constant 1.000000e+00 : f32
    %515 = vector.broadcast %cst_283 : f32 to vector<2x64xf32>
    %516 = arith.addf %515, %514 : vector<2x64xf32>
    %517 = arith.divf %515, %516 : vector<2x64xf32>
    %518 = vector.extract_strided_slice %505 {offsets = [0, 128], sizes = [2, 64], strides = [1, 1]} : vector<2x256xf32> to vector<2x64xf32>
    %519 = math.tanh %518 : vector<2x64xf32>
    %520 = vector.extract_strided_slice %505 {offsets = [0, 192], sizes = [2, 64], strides = [1, 1]} : vector<2x256xf32> to vector<2x64xf32>
    %521 = arith.negf %520 : vector<2x64xf32>
    %522 = math.exp %521 : vector<2x64xf32>
    %cst_284 = arith.constant 1.000000e+00 : f32
    %523 = vector.broadcast %cst_284 : f32 to vector<2x64xf32>
    %524 = arith.addf %523, %522 : vector<2x64xf32>
    %525 = arith.divf %523, %524 : vector<2x64xf32>
    %526 = arith.mulf %517, %499 : vector<2x64xf32>
    %527 = arith.mulf %511, %519 : vector<2x64xf32>
    %528 = arith.addf %526, %527 : vector<2x64xf32>
    %529 = math.tanh %528 : vector<2x64xf32>
    %530 = arith.mulf %525, %529 : vector<2x64xf32>
    %531 = arith.index_cast %492 : i32 to index
    %c0_285 = arith.constant 0 : index
    %c0_286 = arith.constant 0 : index
    %532 = vector.load %arg20[%531, %c0_285, %c0_286] : memref<8x2x64xf32, #tpu.memory_space<vmem>>, vector<1x2x64xf32>
    %533 = vector.shape_cast %532 : vector<1x2x64xf32> to vector<2x64xf32>
    %534 = vector.shape_cast %530 : vector<2x64xf32> to vector<1x2x64xf32>
    tpu.vector_store %arg20[%531, %c0_285, %c0_286], %534 {strides = array<i32>} : memref<8x2x64xf32, #tpu.memory_space<vmem>>, vector<1x2x64xf32>,
    %c0_287 = arith.constant 0 : index
    %c0_288 = arith.constant 0 : index
    %535 = vector.load %arg21[%c0_287, %c0_288] : memref<2x64xf32, #tpu.memory_space<vmem>>, vector<2x64xf32>
    tpu.vector_store %arg21[%c0_287, %c0_288], %530 {strides = array<i32>} : memref<2x64xf32, #tpu.memory_space<vmem>>, vector<2x64xf32>,
    %c0_289 = arith.constant 0 : index
    %c0_290 = arith.constant 0 : index
    %536 = vector.load %arg22[%c0_289, %c0_290] : memref<2x64xf32, #tpu.memory_space<vmem>>, vector<2x64xf32>
    tpu.vector_store %arg22[%c0_289, %c0_290], %528 {strides = array<i32>} : memref<2x64xf32, #tpu.memory_space<vmem>>, vector<2x64xf32>,
    %c4_i32_291 = arith.constant 4 : i32
    %c7_i32_292 = arith.constant 7 : i32
    %537 = arith.subi %c7_i32_292, %c4_i32_291 : i32
    %538 = arith.index_cast %537 : i32 to index
    %c0_293 = arith.constant 0 : index
    %c0_294 = arith.constant 0 : index
    %539 = vector.load %arg1[%538, %c0_293, %c0_294] : memref<8x2x16xf32, #tpu.memory_space<vmem>>, vector<1x2x16xf32>
    %540 = vector.shape_cast %539 : vector<1x2x16xf32> to vector<2x16xf32>
    %c0_295 = arith.constant 0 : index
    %c0_296 = arith.constant 0 : index
    %541 = vector.load %arg5[%c0_295, %c0_296] : memref<16x256xf32, #tpu.memory_space<vmem>>, vector<16x256xf32>
    %cst_297 = arith.constant dense<0.000000e+00> : vector<2x256xf32>
    %542 = tpu.matmul %540, %541, %cst_297 {dimension_numbers = #tpu.dot_dimension_numbers<[1], [0], [0], [1], [0, 0, 1, 1], [], []>} : vector<2x16xf32>, vector<16x256xf32>, vector<2x256xf32> -> vector<2x256xf32>
    %c0_298 = arith.constant 0 : index
    %c0_299 = arith.constant 0 : index
    %543 = vector.load %arg21[%c0_298, %c0_299] : memref<2x64xf32, #tpu.memory_space<vmem>>, vector<2x64xf32>
    %c0_300 = arith.constant 0 : index
    %c0_301 = arith.constant 0 : index
    %544 = vector.load %arg22[%c0_300, %c0_301] : memref<2x64xf32, #tpu.memory_space<vmem>>, vector<2x64xf32>
    %c0_302 = arith.constant 0 : index
    %c0_303 = arith.constant 0 : index
    %545 = vector.load %arg6[%c0_302, %c0_303] : memref<64x256xf32, #tpu.memory_space<vmem>>, vector<64x256xf32>
    %cst_304 = arith.constant dense<0.000000e+00> : vector<2x256xf32>
    %546 = tpu.matmul %543, %545, %cst_304 {dimension_numbers = #tpu.dot_dimension_numbers<[1], [0], [0], [1], [0, 0, 1, 1], [], []>} : vector<2x64xf32>, vector<64x256xf32>, vector<2x256xf32> -> vector<2x256xf32>
    %547 = arith.addf %542, %546 : vector<2x256xf32>
    %c0_305 = arith.constant 0 : index
    %c0_306 = arith.constant 0 : index
    %548 = vector.load %arg7[%c0_305, %c0_306] : memref<1x256xf32, #tpu.memory_space<vmem>>, vector<1x256xf32>
    %549 = vector.broadcast %548 : vector<1x256xf32> to vector<2x256xf32>
    %550 = arith.addf %547, %549 : vector<2x256xf32>
    %551 = vector.extract_strided_slice %550 {offsets = [0, 0], sizes = [2, 64], strides = [1, 1]} : vector<2x256xf32> to vector<2x64xf32>
    %552 = arith.negf %551 : vector<2x64xf32>
    %553 = math.exp %552 : vector<2x64xf32>
    %cst_307 = arith.constant 1.000000e+00 : f32
    %554 = vector.broadcast %cst_307 : f32 to vector<2x64xf32>
    %555 = arith.addf %554, %553 : vector<2x64xf32>
    %556 = arith.divf %554, %555 : vector<2x64xf32>
    %557 = vector.extract_strided_slice %550 {offsets = [0, 64], sizes = [2, 64], strides = [1, 1]} : vector<2x256xf32> to vector<2x64xf32>
    %558 = arith.negf %557 : vector<2x64xf32>
    %559 = math.exp %558 : vector<2x64xf32>
    %cst_308 = arith.constant 1.000000e+00 : f32
    %560 = vector.broadcast %cst_308 : f32 to vector<2x64xf32>
    %561 = arith.addf %560, %559 : vector<2x64xf32>
    %562 = arith.divf %560, %561 : vector<2x64xf32>
    %563 = vector.extract_strided_slice %550 {offsets = [0, 128], sizes = [2, 64], strides = [1, 1]} : vector<2x256xf32> to vector<2x64xf32>
    %564 = math.tanh %563 : vector<2x64xf32>
    %565 = vector.extract_strided_slice %550 {offsets = [0, 192], sizes = [2, 64], strides = [1, 1]} : vector<2x256xf32> to vector<2x64xf32>
    %566 = arith.negf %565 : vector<2x64xf32>
    %567 = math.exp %566 : vector<2x64xf32>
    %cst_309 = arith.constant 1.000000e+00 : f32
    %568 = vector.broadcast %cst_309 : f32 to vector<2x64xf32>
    %569 = arith.addf %568, %567 : vector<2x64xf32>
    %570 = arith.divf %568, %569 : vector<2x64xf32>
    %571 = arith.mulf %562, %544 : vector<2x64xf32>
    %572 = arith.mulf %556, %564 : vector<2x64xf32>
    %573 = arith.addf %571, %572 : vector<2x64xf32>
    %574 = math.tanh %573 : vector<2x64xf32>
    %575 = arith.mulf %570, %574 : vector<2x64xf32>
    %576 = arith.index_cast %537 : i32 to index
    %c0_310 = arith.constant 0 : index
    %c0_311 = arith.constant 0 : index
    %577 = vector.load %arg20[%576, %c0_310, %c0_311] : memref<8x2x64xf32, #tpu.memory_space<vmem>>, vector<1x2x64xf32>
    %578 = vector.shape_cast %577 : vector<1x2x64xf32> to vector<2x64xf32>
    %579 = vector.shape_cast %575 : vector<2x64xf32> to vector<1x2x64xf32>
    tpu.vector_store %arg20[%576, %c0_310, %c0_311], %579 {strides = array<i32>} : memref<8x2x64xf32, #tpu.memory_space<vmem>>, vector<1x2x64xf32>,
    %c0_312 = arith.constant 0 : index
    %c0_313 = arith.constant 0 : index
    %580 = vector.load %arg21[%c0_312, %c0_313] : memref<2x64xf32, #tpu.memory_space<vmem>>, vector<2x64xf32>
    tpu.vector_store %arg21[%c0_312, %c0_313], %575 {strides = array<i32>} : memref<2x64xf32, #tpu.memory_space<vmem>>, vector<2x64xf32>,
    %c0_314 = arith.constant 0 : index
    %c0_315 = arith.constant 0 : index
    %581 = vector.load %arg22[%c0_314, %c0_315] : memref<2x64xf32, #tpu.memory_space<vmem>>, vector<2x64xf32>
    tpu.vector_store %arg22[%c0_314, %c0_315], %573 {strides = array<i32>} : memref<2x64xf32, #tpu.memory_space<vmem>>, vector<2x64xf32>,
    %c5_i32_316 = arith.constant 5 : i32
    %c7_i32_317 = arith.constant 7 : i32
    %582 = arith.subi %c7_i32_317, %c5_i32_316 : i32
    %583 = arith.index_cast %582 : i32 to index
    %c0_318 = arith.constant 0 : index
    %c0_319 = arith.constant 0 : index
    %584 = vector.load %arg1[%583, %c0_318, %c0_319] : memref<8x2x16xf32, #tpu.memory_space<vmem>>, vector<1x2x16xf32>
    %585 = vector.shape_cast %584 : vector<1x2x16xf32> to vector<2x16xf32>
    %c0_320 = arith.constant 0 : index
    %c0_321 = arith.constant 0 : index
    %586 = vector.load %arg5[%c0_320, %c0_321] : memref<16x256xf32, #tpu.memory_space<vmem>>, vector<16x256xf32>
    %cst_322 = arith.constant dense<0.000000e+00> : vector<2x256xf32>
    %587 = tpu.matmul %585, %586, %cst_322 {dimension_numbers = #tpu.dot_dimension_numbers<[1], [0], [0], [1], [0, 0, 1, 1], [], []>} : vector<2x16xf32>, vector<16x256xf32>, vector<2x256xf32> -> vector<2x256xf32>
    %c0_323 = arith.constant 0 : index
    %c0_324 = arith.constant 0 : index
    %588 = vector.load %arg21[%c0_323, %c0_324] : memref<2x64xf32, #tpu.memory_space<vmem>>, vector<2x64xf32>
    %c0_325 = arith.constant 0 : index
    %c0_326 = arith.constant 0 : index
    %589 = vector.load %arg22[%c0_325, %c0_326] : memref<2x64xf32, #tpu.memory_space<vmem>>, vector<2x64xf32>
    %c0_327 = arith.constant 0 : index
    %c0_328 = arith.constant 0 : index
    %590 = vector.load %arg6[%c0_327, %c0_328] : memref<64x256xf32, #tpu.memory_space<vmem>>, vector<64x256xf32>
    %cst_329 = arith.constant dense<0.000000e+00> : vector<2x256xf32>
    %591 = tpu.matmul %588, %590, %cst_329 {dimension_numbers = #tpu.dot_dimension_numbers<[1], [0], [0], [1], [0, 0, 1, 1], [], []>} : vector<2x64xf32>, vector<64x256xf32>, vector<2x256xf32> -> vector<2x256xf32>
    %592 = arith.addf %587, %591 : vector<2x256xf32>
    %c0_330 = arith.constant 0 : index
    %c0_331 = arith.constant 0 : index
    %593 = vector.load %arg7[%c0_330, %c0_331] : memref<1x256xf32, #tpu.memory_space<vmem>>, vector<1x256xf32>
    %594 = vector.broadcast %593 : vector<1x256xf32> to vector<2x256xf32>
    %595 = arith.addf %592, %594 : vector<2x256xf32>
    %596 = vector.extract_strided_slice %595 {offsets = [0, 0], sizes = [2, 64], strides = [1, 1]} : vector<2x256xf32> to vector<2x64xf32>
    %597 = arith.negf %596 : vector<2x64xf32>
    %598 = math.exp %597 : vector<2x64xf32>
    %cst_332 = arith.constant 1.000000e+00 : f32
    %599 = vector.broadcast %cst_332 : f32 to vector<2x64xf32>
    %600 = arith.addf %599, %598 : vector<2x64xf32>
    %601 = arith.divf %599, %600 : vector<2x64xf32>
    %602 = vector.extract_strided_slice %595 {offsets = [0, 64], sizes = [2, 64], strides = [1, 1]} : vector<2x256xf32> to vector<2x64xf32>
    %603 = arith.negf %602 : vector<2x64xf32>
    %604 = math.exp %603 : vector<2x64xf32>
    %cst_333 = arith.constant 1.000000e+00 : f32
    %605 = vector.broadcast %cst_333 : f32 to vector<2x64xf32>
    %606 = arith.addf %605, %604 : vector<2x64xf32>
    %607 = arith.divf %605, %606 : vector<2x64xf32>
    %608 = vector.extract_strided_slice %595 {offsets = [0, 128], sizes = [2, 64], strides = [1, 1]} : vector<2x256xf32> to vector<2x64xf32>
    %609 = math.tanh %608 : vector<2x64xf32>
    %610 = vector.extract_strided_slice %595 {offsets = [0, 192], sizes = [2, 64], strides = [1, 1]} : vector<2x256xf32> to vector<2x64xf32>
    %611 = arith.negf %610 : vector<2x64xf32>
    %612 = math.exp %611 : vector<2x64xf32>
    %cst_334 = arith.constant 1.000000e+00 : f32
    %613 = vector.broadcast %cst_334 : f32 to vector<2x64xf32>
    %614 = arith.addf %613, %612 : vector<2x64xf32>
    %615 = arith.divf %613, %614 : vector<2x64xf32>
    %616 = arith.mulf %607, %589 : vector<2x64xf32>
    %617 = arith.mulf %601, %609 : vector<2x64xf32>
    %618 = arith.addf %616, %617 : vector<2x64xf32>
    %619 = math.tanh %618 : vector<2x64xf32>
    %620 = arith.mulf %615, %619 : vector<2x64xf32>
    %621 = arith.index_cast %582 : i32 to index
    %c0_335 = arith.constant 0 : index
    %c0_336 = arith.constant 0 : index
    %622 = vector.load %arg20[%621, %c0_335, %c0_336] : memref<8x2x64xf32, #tpu.memory_space<vmem>>, vector<1x2x64xf32>
    %623 = vector.shape_cast %622 : vector<1x2x64xf32> to vector<2x64xf32>
    %624 = vector.shape_cast %620 : vector<2x64xf32> to vector<1x2x64xf32>
    tpu.vector_store %arg20[%621, %c0_335, %c0_336], %624 {strides = array<i32>} : memref<8x2x64xf32, #tpu.memory_space<vmem>>, vector<1x2x64xf32>,
    %c0_337 = arith.constant 0 : index
    %c0_338 = arith.constant 0 : index
    %625 = vector.load %arg21[%c0_337, %c0_338] : memref<2x64xf32, #tpu.memory_space<vmem>>, vector<2x64xf32>
    tpu.vector_store %arg21[%c0_337, %c0_338], %620 {strides = array<i32>} : memref<2x64xf32, #tpu.memory_space<vmem>>, vector<2x64xf32>,
    %c0_339 = arith.constant 0 : index
    %c0_340 = arith.constant 0 : index
    %626 = vector.load %arg22[%c0_339, %c0_340] : memref<2x64xf32, #tpu.memory_space<vmem>>, vector<2x64xf32>
    tpu.vector_store %arg22[%c0_339, %c0_340], %618 {strides = array<i32>} : memref<2x64xf32, #tpu.memory_space<vmem>>, vector<2x64xf32>,
    %c6_i32_341 = arith.constant 6 : i32
    %c7_i32_342 = arith.constant 7 : i32
    %627 = arith.subi %c7_i32_342, %c6_i32_341 : i32
    %628 = arith.index_cast %627 : i32 to index
    %c0_343 = arith.constant 0 : index
    %c0_344 = arith.constant 0 : index
    %629 = vector.load %arg1[%628, %c0_343, %c0_344] : memref<8x2x16xf32, #tpu.memory_space<vmem>>, vector<1x2x16xf32>
    %630 = vector.shape_cast %629 : vector<1x2x16xf32> to vector<2x16xf32>
    %c0_345 = arith.constant 0 : index
    %c0_346 = arith.constant 0 : index
    %631 = vector.load %arg5[%c0_345, %c0_346] : memref<16x256xf32, #tpu.memory_space<vmem>>, vector<16x256xf32>
    %cst_347 = arith.constant dense<0.000000e+00> : vector<2x256xf32>
    %632 = tpu.matmul %630, %631, %cst_347 {dimension_numbers = #tpu.dot_dimension_numbers<[1], [0], [0], [1], [0, 0, 1, 1], [], []>} : vector<2x16xf32>, vector<16x256xf32>, vector<2x256xf32> -> vector<2x256xf32>
    %c0_348 = arith.constant 0 : index
    %c0_349 = arith.constant 0 : index
    %633 = vector.load %arg21[%c0_348, %c0_349] : memref<2x64xf32, #tpu.memory_space<vmem>>, vector<2x64xf32>
    %c0_350 = arith.constant 0 : index
    %c0_351 = arith.constant 0 : index
    %634 = vector.load %arg22[%c0_350, %c0_351] : memref<2x64xf32, #tpu.memory_space<vmem>>, vector<2x64xf32>
    %c0_352 = arith.constant 0 : index
    %c0_353 = arith.constant 0 : index
    %635 = vector.load %arg6[%c0_352, %c0_353] : memref<64x256xf32, #tpu.memory_space<vmem>>, vector<64x256xf32>
    %cst_354 = arith.constant dense<0.000000e+00> : vector<2x256xf32>
    %636 = tpu.matmul %633, %635, %cst_354 {dimension_numbers = #tpu.dot_dimension_numbers<[1], [0], [0], [1], [0, 0, 1, 1], [], []>} : vector<2x64xf32>, vector<64x256xf32>, vector<2x256xf32> -> vector<2x256xf32>
    %637 = arith.addf %632, %636 : vector<2x256xf32>
    %c0_355 = arith.constant 0 : index
    %c0_356 = arith.constant 0 : index
    %638 = vector.load %arg7[%c0_355, %c0_356] : memref<1x256xf32, #tpu.memory_space<vmem>>, vector<1x256xf32>
    %639 = vector.broadcast %638 : vector<1x256xf32> to vector<2x256xf32>
    %640 = arith.addf %637, %639 : vector<2x256xf32>
    %641 = vector.extract_strided_slice %640 {offsets = [0, 0], sizes = [2, 64], strides = [1, 1]} : vector<2x256xf32> to vector<2x64xf32>
    %642 = arith.negf %641 : vector<2x64xf32>
    %643 = math.exp %642 : vector<2x64xf32>
    %cst_357 = arith.constant 1.000000e+00 : f32
    %644 = vector.broadcast %cst_357 : f32 to vector<2x64xf32>
    %645 = arith.addf %644, %643 : vector<2x64xf32>
    %646 = arith.divf %644, %645 : vector<2x64xf32>
    %647 = vector.extract_strided_slice %640 {offsets = [0, 64], sizes = [2, 64], strides = [1, 1]} : vector<2x256xf32> to vector<2x64xf32>
    %648 = arith.negf %647 : vector<2x64xf32>
    %649 = math.exp %648 : vector<2x64xf32>
    %cst_358 = arith.constant 1.000000e+00 : f32
    %650 = vector.broadcast %cst_358 : f32 to vector<2x64xf32>
    %651 = arith.addf %650, %649 : vector<2x64xf32>
    %652 = arith.divf %650, %651 : vector<2x64xf32>
    %653 = vector.extract_strided_slice %640 {offsets = [0, 128], sizes = [2, 64], strides = [1, 1]} : vector<2x256xf32> to vector<2x64xf32>
    %654 = math.tanh %653 : vector<2x64xf32>
    %655 = vector.extract_strided_slice %640 {offsets = [0, 192], sizes = [2, 64], strides = [1, 1]} : vector<2x256xf32> to vector<2x64xf32>
    %656 = arith.negf %655 : vector<2x64xf32>
    %657 = math.exp %656 : vector<2x64xf32>
    %cst_359 = arith.constant 1.000000e+00 : f32
    %658 = vector.broadcast %cst_359 : f32 to vector<2x64xf32>
    %659 = arith.addf %658, %657 : vector<2x64xf32>
    %660 = arith.divf %658, %659 : vector<2x64xf32>
    %661 = arith.mulf %652, %634 : vector<2x64xf32>
    %662 = arith.mulf %646, %654 : vector<2x64xf32>
    %663 = arith.addf %661, %662 : vector<2x64xf32>
    %664 = math.tanh %663 : vector<2x64xf32>
    %665 = arith.mulf %660, %664 : vector<2x64xf32>
    %666 = arith.index_cast %627 : i32 to index
    %c0_360 = arith.constant 0 : index
    %c0_361 = arith.constant 0 : index
    %667 = vector.load %arg20[%666, %c0_360, %c0_361] : memref<8x2x64xf32, #tpu.memory_space<vmem>>, vector<1x2x64xf32>
    %668 = vector.shape_cast %667 : vector<1x2x64xf32> to vector<2x64xf32>
    %669 = vector.shape_cast %665 : vector<2x64xf32> to vector<1x2x64xf32>
    tpu.vector_store %arg20[%666, %c0_360, %c0_361], %669 {strides = array<i32>} : memref<8x2x64xf32, #tpu.memory_space<vmem>>, vector<1x2x64xf32>,
    %c0_362 = arith.constant 0 : index
    %c0_363 = arith.constant 0 : index
    %670 = vector.load %arg21[%c0_362, %c0_363] : memref<2x64xf32, #tpu.memory_space<vmem>>, vector<2x64xf32>
    tpu.vector_store %arg21[%c0_362, %c0_363], %665 {strides = array<i32>} : memref<2x64xf32, #tpu.memory_space<vmem>>, vector<2x64xf32>,
    %c0_364 = arith.constant 0 : index
    %c0_365 = arith.constant 0 : index
    %671 = vector.load %arg22[%c0_364, %c0_365] : memref<2x64xf32, #tpu.memory_space<vmem>>, vector<2x64xf32>
    tpu.vector_store %arg22[%c0_364, %c0_365], %663 {strides = array<i32>} : memref<2x64xf32, #tpu.memory_space<vmem>>, vector<2x64xf32>,
    %c7_i32_366 = arith.constant 7 : i32
    %c7_i32_367 = arith.constant 7 : i32
    %672 = arith.subi %c7_i32_367, %c7_i32_366 : i32
    %673 = arith.index_cast %672 : i32 to index
    %c0_368 = arith.constant 0 : index
    %c0_369 = arith.constant 0 : index
    %674 = vector.load %arg1[%673, %c0_368, %c0_369] : memref<8x2x16xf32, #tpu.memory_space<vmem>>, vector<1x2x16xf32>
    %675 = vector.shape_cast %674 : vector<1x2x16xf32> to vector<2x16xf32>
    %c0_370 = arith.constant 0 : index
    %c0_371 = arith.constant 0 : index
    %676 = vector.load %arg5[%c0_370, %c0_371] : memref<16x256xf32, #tpu.memory_space<vmem>>, vector<16x256xf32>
    %cst_372 = arith.constant dense<0.000000e+00> : vector<2x256xf32>
    %677 = tpu.matmul %675, %676, %cst_372 {dimension_numbers = #tpu.dot_dimension_numbers<[1], [0], [0], [1], [0, 0, 1, 1], [], []>} : vector<2x16xf32>, vector<16x256xf32>, vector<2x256xf32> -> vector<2x256xf32>
    %c0_373 = arith.constant 0 : index
    %c0_374 = arith.constant 0 : index
    %678 = vector.load %arg21[%c0_373, %c0_374] : memref<2x64xf32, #tpu.memory_space<vmem>>, vector<2x64xf32>
    %c0_375 = arith.constant 0 : index
    %c0_376 = arith.constant 0 : index
    %679 = vector.load %arg22[%c0_375, %c0_376] : memref<2x64xf32, #tpu.memory_space<vmem>>, vector<2x64xf32>
    %c0_377 = arith.constant 0 : index
    %c0_378 = arith.constant 0 : index
    %680 = vector.load %arg6[%c0_377, %c0_378] : memref<64x256xf32, #tpu.memory_space<vmem>>, vector<64x256xf32>
    %cst_379 = arith.constant dense<0.000000e+00> : vector<2x256xf32>
    %681 = tpu.matmul %678, %680, %cst_379 {dimension_numbers = #tpu.dot_dimension_numbers<[1], [0], [0], [1], [0, 0, 1, 1], [], []>} : vector<2x64xf32>, vector<64x256xf32>, vector<2x256xf32> -> vector<2x256xf32>
    %682 = arith.addf %677, %681 : vector<2x256xf32>
    %c0_380 = arith.constant 0 : index
    %c0_381 = arith.constant 0 : index
    %683 = vector.load %arg7[%c0_380, %c0_381] : memref<1x256xf32, #tpu.memory_space<vmem>>, vector<1x256xf32>
    %684 = vector.broadcast %683 : vector<1x256xf32> to vector<2x256xf32>
    %685 = arith.addf %682, %684 : vector<2x256xf32>
    %686 = vector.extract_strided_slice %685 {offsets = [0, 0], sizes = [2, 64], strides = [1, 1]} : vector<2x256xf32> to vector<2x64xf32>
    %687 = arith.negf %686 : vector<2x64xf32>
    %688 = math.exp %687 : vector<2x64xf32>
    %cst_382 = arith.constant 1.000000e+00 : f32
    %689 = vector.broadcast %cst_382 : f32 to vector<2x64xf32>
    %690 = arith.addf %689, %688 : vector<2x64xf32>
    %691 = arith.divf %689, %690 : vector<2x64xf32>
    %692 = vector.extract_strided_slice %685 {offsets = [0, 64], sizes = [2, 64], strides = [1, 1]} : vector<2x256xf32> to vector<2x64xf32>
    %693 = arith.negf %692 : vector<2x64xf32>
    %694 = math.exp %693 : vector<2x64xf32>
    %cst_383 = arith.constant 1.000000e+00 : f32
    %695 = vector.broadcast %cst_383 : f32 to vector<2x64xf32>
    %696 = arith.addf %695, %694 : vector<2x64xf32>
    %697 = arith.divf %695, %696 : vector<2x64xf32>
    %698 = vector.extract_strided_slice %685 {offsets = [0, 128], sizes = [2, 64], strides = [1, 1]} : vector<2x256xf32> to vector<2x64xf32>
    %699 = math.tanh %698 : vector<2x64xf32>
    %700 = vector.extract_strided_slice %685 {offsets = [0, 192], sizes = [2, 64], strides = [1, 1]} : vector<2x256xf32> to vector<2x64xf32>
    %701 = arith.negf %700 : vector<2x64xf32>
    %702 = math.exp %701 : vector<2x64xf32>
    %cst_384 = arith.constant 1.000000e+00 : f32
    %703 = vector.broadcast %cst_384 : f32 to vector<2x64xf32>
    %704 = arith.addf %703, %702 : vector<2x64xf32>
    %705 = arith.divf %703, %704 : vector<2x64xf32>
    %706 = arith.mulf %697, %679 : vector<2x64xf32>
    %707 = arith.mulf %691, %699 : vector<2x64xf32>
    %708 = arith.addf %706, %707 : vector<2x64xf32>
    %709 = math.tanh %708 : vector<2x64xf32>
    %710 = arith.mulf %705, %709 : vector<2x64xf32>
    %711 = arith.index_cast %672 : i32 to index
    %c0_385 = arith.constant 0 : index
    %c0_386 = arith.constant 0 : index
    %712 = vector.load %arg20[%711, %c0_385, %c0_386] : memref<8x2x64xf32, #tpu.memory_space<vmem>>, vector<1x2x64xf32>
    %713 = vector.shape_cast %712 : vector<1x2x64xf32> to vector<2x64xf32>
    %714 = vector.shape_cast %710 : vector<2x64xf32> to vector<1x2x64xf32>
    tpu.vector_store %arg20[%711, %c0_385, %c0_386], %714 {strides = array<i32>} : memref<8x2x64xf32, #tpu.memory_space<vmem>>, vector<1x2x64xf32>,
    %c0_387 = arith.constant 0 : index
    %c0_388 = arith.constant 0 : index
    %715 = vector.load %arg21[%c0_387, %c0_388] : memref<2x64xf32, #tpu.memory_space<vmem>>, vector<2x64xf32>
    tpu.vector_store %arg21[%c0_387, %c0_388], %710 {strides = array<i32>} : memref<2x64xf32, #tpu.memory_space<vmem>>, vector<2x64xf32>,
    %c0_389 = arith.constant 0 : index
    %c0_390 = arith.constant 0 : index
    %716 = vector.load %arg22[%c0_389, %c0_390] : memref<2x64xf32, #tpu.memory_space<vmem>>, vector<2x64xf32>
    tpu.vector_store %arg22[%c0_389, %c0_390], %708 {strides = array<i32>} : memref<2x64xf32, #tpu.memory_space<vmem>>, vector<2x64xf32>,
    %c8_i32_391 = arith.constant 8 : i32
    %c0_392 = arith.constant 0 : index
    %c0_393 = arith.constant 0 : index
    %717 = vector.load %arg21[%c0_392, %c0_393] : memref<2x64xf32, #tpu.memory_space<vmem>>, vector<2x64xf32>
    tpu.vector_store %arg21[%c0_392, %c0_393], %0 {strides = array<i32>} : memref<2x64xf32, #tpu.memory_space<vmem>>, vector<2x64xf32>,
    %c0_394 = arith.constant 0 : index
    %c0_395 = arith.constant 0 : index
    %718 = vector.load %arg22[%c0_394, %c0_395] : memref<2x64xf32, #tpu.memory_space<vmem>>, vector<2x64xf32>
    tpu.vector_store %arg22[%c0_394, %c0_395], %0 {strides = array<i32>} : memref<2x64xf32, #tpu.memory_space<vmem>>, vector<2x64xf32>,
    %c0_i32_396 = arith.constant 0 : i32
    %719 = arith.index_cast %c0_i32_396 : i32 to index
    %c0_397 = arith.constant 0 : index
    %c0_398 = arith.constant 0 : index
    %720 = vector.load %arg19[%719, %c0_397, %c0_398] : memref<8x2x64xf32, #tpu.memory_space<vmem>>, vector<1x2x64xf32>
    %721 = vector.shape_cast %720 : vector<1x2x64xf32> to vector<2x64xf32>
    %c0_399 = arith.constant 0 : index
    %c0_400 = arith.constant 0 : index
    %722 = vector.load %arg8[%c0_399, %c0_400] : memref<64x256xf32, #tpu.memory_space<vmem>>, vector<64x256xf32>
    %cst_401 = arith.constant dense<0.000000e+00> : vector<2x256xf32>
    %723 = tpu.matmul %721, %722, %cst_401 {dimension_numbers = #tpu.dot_dimension_numbers<[1], [0], [0], [1], [0, 0, 1, 1], [], []>} : vector<2x64xf32>, vector<64x256xf32>, vector<2x256xf32> -> vector<2x256xf32>
    %724 = arith.index_cast %c0_i32_396 : i32 to index
    %c0_402 = arith.constant 0 : index
    %c0_403 = arith.constant 0 : index
    %725 = vector.load %arg20[%724, %c0_402, %c0_403] : memref<8x2x64xf32, #tpu.memory_space<vmem>>, vector<1x2x64xf32>
    %726 = vector.shape_cast %725 : vector<1x2x64xf32> to vector<2x64xf32>
    %c0_404 = arith.constant 0 : index
    %c0_405 = arith.constant 0 : index
    %727 = vector.load %arg9[%c0_404, %c0_405] : memref<64x256xf32, #tpu.memory_space<vmem>>, vector<64x256xf32>
    %cst_406 = arith.constant dense<0.000000e+00> : vector<2x256xf32>
    %728 = tpu.matmul %726, %727, %cst_406 {dimension_numbers = #tpu.dot_dimension_numbers<[1], [0], [0], [1], [0, 0, 1, 1], [], []>} : vector<2x64xf32>, vector<64x256xf32>, vector<2x256xf32> -> vector<2x256xf32>
    %729 = arith.addf %723, %728 : vector<2x256xf32>
    %c0_407 = arith.constant 0 : index
    %c0_408 = arith.constant 0 : index
    %730 = vector.load %arg21[%c0_407, %c0_408] : memref<2x64xf32, #tpu.memory_space<vmem>>, vector<2x64xf32>
    %c0_409 = arith.constant 0 : index
    %c0_410 = arith.constant 0 : index
    %731 = vector.load %arg22[%c0_409, %c0_410] : memref<2x64xf32, #tpu.memory_space<vmem>>, vector<2x64xf32>
    %c0_411 = arith.constant 0 : index
    %c0_412 = arith.constant 0 : index
    %732 = vector.load %arg10[%c0_411, %c0_412] : memref<64x256xf32, #tpu.memory_space<vmem>>, vector<64x256xf32>
    %cst_413 = arith.constant dense<0.000000e+00> : vector<2x256xf32>
    %733 = tpu.matmul %730, %732, %cst_413 {dimension_numbers = #tpu.dot_dimension_numbers<[1], [0], [0], [1], [0, 0, 1, 1], [], []>} : vector<2x64xf32>, vector<64x256xf32>, vector<2x256xf32> -> vector<2x256xf32>
    %734 = arith.addf %729, %733 : vector<2x256xf32>
    %c0_414 = arith.constant 0 : index
    %c0_415 = arith.constant 0 : index
    %735 = vector.load %arg11[%c0_414, %c0_415] : memref<1x256xf32, #tpu.memory_space<vmem>>, vector<1x256xf32>
    %736 = vector.broadcast %735 : vector<1x256xf32> to vector<2x256xf32>
    %737 = arith.addf %734, %736 : vector<2x256xf32>
    %738 = vector.extract_strided_slice %737 {offsets = [0, 0], sizes = [2, 64], strides = [1, 1]} : vector<2x256xf32> to vector<2x64xf32>
    %739 = arith.negf %738 : vector<2x64xf32>
    %740 = math.exp %739 : vector<2x64xf32>
    %cst_416 = arith.constant 1.000000e+00 : f32
    %741 = vector.broadcast %cst_416 : f32 to vector<2x64xf32>
    %742 = arith.addf %741, %740 : vector<2x64xf32>
    %743 = arith.divf %741, %742 : vector<2x64xf32>
    %744 = vector.extract_strided_slice %737 {offsets = [0, 64], sizes = [2, 64], strides = [1, 1]} : vector<2x256xf32> to vector<2x64xf32>
    %745 = arith.negf %744 : vector<2x64xf32>
    %746 = math.exp %745 : vector<2x64xf32>
    %cst_417 = arith.constant 1.000000e+00 : f32
    %747 = vector.broadcast %cst_417 : f32 to vector<2x64xf32>
    %748 = arith.addf %747, %746 : vector<2x64xf32>
    %749 = arith.divf %747, %748 : vector<2x64xf32>
    %750 = vector.extract_strided_slice %737 {offsets = [0, 128], sizes = [2, 64], strides = [1, 1]} : vector<2x256xf32> to vector<2x64xf32>
    %751 = math.tanh %750 : vector<2x64xf32>
    %752 = vector.extract_strided_slice %737 {offsets = [0, 192], sizes = [2, 64], strides = [1, 1]} : vector<2x256xf32> to vector<2x64xf32>
    %753 = arith.negf %752 : vector<2x64xf32>
    %754 = math.exp %753 : vector<2x64xf32>
    %cst_418 = arith.constant 1.000000e+00 : f32
    %755 = vector.broadcast %cst_418 : f32 to vector<2x64xf32>
    %756 = arith.addf %755, %754 : vector<2x64xf32>
    %757 = arith.divf %755, %756 : vector<2x64xf32>
    %758 = arith.mulf %749, %731 : vector<2x64xf32>
    %759 = arith.mulf %743, %751 : vector<2x64xf32>
    %760 = arith.addf %758, %759 : vector<2x64xf32>
    %761 = math.tanh %760 : vector<2x64xf32>
    %762 = arith.mulf %757, %761 : vector<2x64xf32>
    %c0_419 = arith.constant 0 : index
    %c0_420 = arith.constant 0 : index
    %763 = vector.load %arg21[%c0_419, %c0_420] : memref<2x64xf32, #tpu.memory_space<vmem>>, vector<2x64xf32>
    tpu.vector_store %arg21[%c0_419, %c0_420], %762 {strides = array<i32>} : memref<2x64xf32, #tpu.memory_space<vmem>>, vector<2x64xf32>,
    %c0_421 = arith.constant 0 : index
    %c0_422 = arith.constant 0 : index
    %764 = vector.load %arg22[%c0_421, %c0_422] : memref<2x64xf32, #tpu.memory_space<vmem>>, vector<2x64xf32>
    tpu.vector_store %arg22[%c0_421, %c0_422], %760 {strides = array<i32>} : memref<2x64xf32, #tpu.memory_space<vmem>>, vector<2x64xf32>,
    %c1_i32_423 = arith.constant 1 : i32
    %765 = arith.index_cast %c1_i32_423 : i32 to index
    %c0_424 = arith.constant 0 : index
    %c0_425 = arith.constant 0 : index
    %766 = vector.load %arg19[%765, %c0_424, %c0_425] : memref<8x2x64xf32, #tpu.memory_space<vmem>>, vector<1x2x64xf32>
    %767 = vector.shape_cast %766 : vector<1x2x64xf32> to vector<2x64xf32>
    %c0_426 = arith.constant 0 : index
    %c0_427 = arith.constant 0 : index
    %768 = vector.load %arg8[%c0_426, %c0_427] : memref<64x256xf32, #tpu.memory_space<vmem>>, vector<64x256xf32>
    %cst_428 = arith.constant dense<0.000000e+00> : vector<2x256xf32>
    %769 = tpu.matmul %767, %768, %cst_428 {dimension_numbers = #tpu.dot_dimension_numbers<[1], [0], [0], [1], [0, 0, 1, 1], [], []>} : vector<2x64xf32>, vector<64x256xf32>, vector<2x256xf32> -> vector<2x256xf32>
    %770 = arith.index_cast %c1_i32_423 : i32 to index
    %c0_429 = arith.constant 0 : index
    %c0_430 = arith.constant 0 : index
    %771 = vector.load %arg20[%770, %c0_429, %c0_430] : memref<8x2x64xf32, #tpu.memory_space<vmem>>, vector<1x2x64xf32>
    %772 = vector.shape_cast %771 : vector<1x2x64xf32> to vector<2x64xf32>
    %c0_431 = arith.constant 0 : index
    %c0_432 = arith.constant 0 : index
    %773 = vector.load %arg9[%c0_431, %c0_432] : memref<64x256xf32, #tpu.memory_space<vmem>>, vector<64x256xf32>
    %cst_433 = arith.constant dense<0.000000e+00> : vector<2x256xf32>
    %774 = tpu.matmul %772, %773, %cst_433 {dimension_numbers = #tpu.dot_dimension_numbers<[1], [0], [0], [1], [0, 0, 1, 1], [], []>} : vector<2x64xf32>, vector<64x256xf32>, vector<2x256xf32> -> vector<2x256xf32>
    %775 = arith.addf %769, %774 : vector<2x256xf32>
    %c0_434 = arith.constant 0 : index
    %c0_435 = arith.constant 0 : index
    %776 = vector.load %arg21[%c0_434, %c0_435] : memref<2x64xf32, #tpu.memory_space<vmem>>, vector<2x64xf32>
    %c0_436 = arith.constant 0 : index
    %c0_437 = arith.constant 0 : index
    %777 = vector.load %arg22[%c0_436, %c0_437] : memref<2x64xf32, #tpu.memory_space<vmem>>, vector<2x64xf32>
    %c0_438 = arith.constant 0 : index
    %c0_439 = arith.constant 0 : index
    %778 = vector.load %arg10[%c0_438, %c0_439] : memref<64x256xf32, #tpu.memory_space<vmem>>, vector<64x256xf32>
    %cst_440 = arith.constant dense<0.000000e+00> : vector<2x256xf32>
    %779 = tpu.matmul %776, %778, %cst_440 {dimension_numbers = #tpu.dot_dimension_numbers<[1], [0], [0], [1], [0, 0, 1, 1], [], []>} : vector<2x64xf32>, vector<64x256xf32>, vector<2x256xf32> -> vector<2x256xf32>
    %780 = arith.addf %775, %779 : vector<2x256xf32>
    %c0_441 = arith.constant 0 : index
    %c0_442 = arith.constant 0 : index
    %781 = vector.load %arg11[%c0_441, %c0_442] : memref<1x256xf32, #tpu.memory_space<vmem>>, vector<1x256xf32>
    %782 = vector.broadcast %781 : vector<1x256xf32> to vector<2x256xf32>
    %783 = arith.addf %780, %782 : vector<2x256xf32>
    %784 = vector.extract_strided_slice %783 {offsets = [0, 0], sizes = [2, 64], strides = [1, 1]} : vector<2x256xf32> to vector<2x64xf32>
    %785 = arith.negf %784 : vector<2x64xf32>
    %786 = math.exp %785 : vector<2x64xf32>
    %cst_443 = arith.constant 1.000000e+00 : f32
    %787 = vector.broadcast %cst_443 : f32 to vector<2x64xf32>
    %788 = arith.addf %787, %786 : vector<2x64xf32>
    %789 = arith.divf %787, %788 : vector<2x64xf32>
    %790 = vector.extract_strided_slice %783 {offsets = [0, 64], sizes = [2, 64], strides = [1, 1]} : vector<2x256xf32> to vector<2x64xf32>
    %791 = arith.negf %790 : vector<2x64xf32>
    %792 = math.exp %791 : vector<2x64xf32>
    %cst_444 = arith.constant 1.000000e+00 : f32
    %793 = vector.broadcast %cst_444 : f32 to vector<2x64xf32>
    %794 = arith.addf %793, %792 : vector<2x64xf32>
    %795 = arith.divf %793, %794 : vector<2x64xf32>
    %796 = vector.extract_strided_slice %783 {offsets = [0, 128], sizes = [2, 64], strides = [1, 1]} : vector<2x256xf32> to vector<2x64xf32>
    %797 = math.tanh %796 : vector<2x64xf32>
    %798 = vector.extract_strided_slice %783 {offsets = [0, 192], sizes = [2, 64], strides = [1, 1]} : vector<2x256xf32> to vector<2x64xf32>
    %799 = arith.negf %798 : vector<2x64xf32>
    %800 = math.exp %799 : vector<2x64xf32>
    %cst_445 = arith.constant 1.000000e+00 : f32
    %801 = vector.broadcast %cst_445 : f32 to vector<2x64xf32>
    %802 = arith.addf %801, %800 : vector<2x64xf32>
    %803 = arith.divf %801, %802 : vector<2x64xf32>
    %804 = arith.mulf %795, %777 : vector<2x64xf32>
    %805 = arith.mulf %789, %797 : vector<2x64xf32>
    %806 = arith.addf %804, %805 : vector<2x64xf32>
    %807 = math.tanh %806 : vector<2x64xf32>
    %808 = arith.mulf %803, %807 : vector<2x64xf32>
    %c0_446 = arith.constant 0 : index
    %c0_447 = arith.constant 0 : index
    %809 = vector.load %arg21[%c0_446, %c0_447] : memref<2x64xf32, #tpu.memory_space<vmem>>, vector<2x64xf32>
    tpu.vector_store %arg21[%c0_446, %c0_447], %808 {strides = array<i32>} : memref<2x64xf32, #tpu.memory_space<vmem>>, vector<2x64xf32>,
    %c0_448 = arith.constant 0 : index
    %c0_449 = arith.constant 0 : index
    %810 = vector.load %arg22[%c0_448, %c0_449] : memref<2x64xf32, #tpu.memory_space<vmem>>, vector<2x64xf32>
    tpu.vector_store %arg22[%c0_448, %c0_449], %806 {strides = array<i32>} : memref<2x64xf32, #tpu.memory_space<vmem>>, vector<2x64xf32>,
    %c2_i32_450 = arith.constant 2 : i32
    %811 = arith.index_cast %c2_i32_450 : i32 to index
    %c0_451 = arith.constant 0 : index
    %c0_452 = arith.constant 0 : index
    %812 = vector.load %arg19[%811, %c0_451, %c0_452] : memref<8x2x64xf32, #tpu.memory_space<vmem>>, vector<1x2x64xf32>
    %813 = vector.shape_cast %812 : vector<1x2x64xf32> to vector<2x64xf32>
    %c0_453 = arith.constant 0 : index
    %c0_454 = arith.constant 0 : index
    %814 = vector.load %arg8[%c0_453, %c0_454] : memref<64x256xf32, #tpu.memory_space<vmem>>, vector<64x256xf32>
    %cst_455 = arith.constant dense<0.000000e+00> : vector<2x256xf32>
    %815 = tpu.matmul %813, %814, %cst_455 {dimension_numbers = #tpu.dot_dimension_numbers<[1], [0], [0], [1], [0, 0, 1, 1], [], []>} : vector<2x64xf32>, vector<64x256xf32>, vector<2x256xf32> -> vector<2x256xf32>
    %816 = arith.index_cast %c2_i32_450 : i32 to index
    %c0_456 = arith.constant 0 : index
    %c0_457 = arith.constant 0 : index
    %817 = vector.load %arg20[%816, %c0_456, %c0_457] : memref<8x2x64xf32, #tpu.memory_space<vmem>>, vector<1x2x64xf32>
    %818 = vector.shape_cast %817 : vector<1x2x64xf32> to vector<2x64xf32>
    %c0_458 = arith.constant 0 : index
    %c0_459 = arith.constant 0 : index
    %819 = vector.load %arg9[%c0_458, %c0_459] : memref<64x256xf32, #tpu.memory_space<vmem>>, vector<64x256xf32>
    %cst_460 = arith.constant dense<0.000000e+00> : vector<2x256xf32>
    %820 = tpu.matmul %818, %819, %cst_460 {dimension_numbers = #tpu.dot_dimension_numbers<[1], [0], [0], [1], [0, 0, 1, 1], [], []>} : vector<2x64xf32>, vector<64x256xf32>, vector<2x256xf32> -> vector<2x256xf32>
    %821 = arith.addf %815, %820 : vector<2x256xf32>
    %c0_461 = arith.constant 0 : index
    %c0_462 = arith.constant 0 : index
    %822 = vector.load %arg21[%c0_461, %c0_462] : memref<2x64xf32, #tpu.memory_space<vmem>>, vector<2x64xf32>
    %c0_463 = arith.constant 0 : index
    %c0_464 = arith.constant 0 : index
    %823 = vector.load %arg22[%c0_463, %c0_464] : memref<2x64xf32, #tpu.memory_space<vmem>>, vector<2x64xf32>
    %c0_465 = arith.constant 0 : index
    %c0_466 = arith.constant 0 : index
    %824 = vector.load %arg10[%c0_465, %c0_466] : memref<64x256xf32, #tpu.memory_space<vmem>>, vector<64x256xf32>
    %cst_467 = arith.constant dense<0.000000e+00> : vector<2x256xf32>
    %825 = tpu.matmul %822, %824, %cst_467 {dimension_numbers = #tpu.dot_dimension_numbers<[1], [0], [0], [1], [0, 0, 1, 1], [], []>} : vector<2x64xf32>, vector<64x256xf32>, vector<2x256xf32> -> vector<2x256xf32>
    %826 = arith.addf %821, %825 : vector<2x256xf32>
    %c0_468 = arith.constant 0 : index
    %c0_469 = arith.constant 0 : index
    %827 = vector.load %arg11[%c0_468, %c0_469] : memref<1x256xf32, #tpu.memory_space<vmem>>, vector<1x256xf32>
    %828 = vector.broadcast %827 : vector<1x256xf32> to vector<2x256xf32>
    %829 = arith.addf %826, %828 : vector<2x256xf32>
    %830 = vector.extract_strided_slice %829 {offsets = [0, 0], sizes = [2, 64], strides = [1, 1]} : vector<2x256xf32> to vector<2x64xf32>
    %831 = arith.negf %830 : vector<2x64xf32>
    %832 = math.exp %831 : vector<2x64xf32>
    %cst_470 = arith.constant 1.000000e+00 : f32
    %833 = vector.broadcast %cst_470 : f32 to vector<2x64xf32>
    %834 = arith.addf %833, %832 : vector<2x64xf32>
    %835 = arith.divf %833, %834 : vector<2x64xf32>
    %836 = vector.extract_strided_slice %829 {offsets = [0, 64], sizes = [2, 64], strides = [1, 1]} : vector<2x256xf32> to vector<2x64xf32>
    %837 = arith.negf %836 : vector<2x64xf32>
    %838 = math.exp %837 : vector<2x64xf32>
    %cst_471 = arith.constant 1.000000e+00 : f32
    %839 = vector.broadcast %cst_471 : f32 to vector<2x64xf32>
    %840 = arith.addf %839, %838 : vector<2x64xf32>
    %841 = arith.divf %839, %840 : vector<2x64xf32>
    %842 = vector.extract_strided_slice %829 {offsets = [0, 128], sizes = [2, 64], strides = [1, 1]} : vector<2x256xf32> to vector<2x64xf32>
    %843 = math.tanh %842 : vector<2x64xf32>
    %844 = vector.extract_strided_slice %829 {offsets = [0, 192], sizes = [2, 64], strides = [1, 1]} : vector<2x256xf32> to vector<2x64xf32>
    %845 = arith.negf %844 : vector<2x64xf32>
    %846 = math.exp %845 : vector<2x64xf32>
    %cst_472 = arith.constant 1.000000e+00 : f32
    %847 = vector.broadcast %cst_472 : f32 to vector<2x64xf32>
    %848 = arith.addf %847, %846 : vector<2x64xf32>
    %849 = arith.divf %847, %848 : vector<2x64xf32>
    %850 = arith.mulf %841, %823 : vector<2x64xf32>
    %851 = arith.mulf %835, %843 : vector<2x64xf32>
    %852 = arith.addf %850, %851 : vector<2x64xf32>
    %853 = math.tanh %852 : vector<2x64xf32>
    %854 = arith.mulf %849, %853 : vector<2x64xf32>
    %c0_473 = arith.constant 0 : index
    %c0_474 = arith.constant 0 : index
    %855 = vector.load %arg21[%c0_473, %c0_474] : memref<2x64xf32, #tpu.memory_space<vmem>>, vector<2x64xf32>
    tpu.vector_store %arg21[%c0_473, %c0_474], %854 {strides = array<i32>} : memref<2x64xf32, #tpu.memory_space<vmem>>, vector<2x64xf32>,
    %c0_475 = arith.constant 0 : index
    %c0_476 = arith.constant 0 : index
    %856 = vector.load %arg22[%c0_475, %c0_476] : memref<2x64xf32, #tpu.memory_space<vmem>>, vector<2x64xf32>
    tpu.vector_store %arg22[%c0_475, %c0_476], %852 {strides = array<i32>} : memref<2x64xf32, #tpu.memory_space<vmem>>, vector<2x64xf32>,
    %c3_i32_477 = arith.constant 3 : i32
    %857 = arith.index_cast %c3_i32_477 : i32 to index
    %c0_478 = arith.constant 0 : index
    %c0_479 = arith.constant 0 : index
    %858 = vector.load %arg19[%857, %c0_478, %c0_479] : memref<8x2x64xf32, #tpu.memory_space<vmem>>, vector<1x2x64xf32>
    %859 = vector.shape_cast %858 : vector<1x2x64xf32> to vector<2x64xf32>
    %c0_480 = arith.constant 0 : index
    %c0_481 = arith.constant 0 : index
    %860 = vector.load %arg8[%c0_480, %c0_481] : memref<64x256xf32, #tpu.memory_space<vmem>>, vector<64x256xf32>
    %cst_482 = arith.constant dense<0.000000e+00> : vector<2x256xf32>
    %861 = tpu.matmul %859, %860, %cst_482 {dimension_numbers = #tpu.dot_dimension_numbers<[1], [0], [0], [1], [0, 0, 1, 1], [], []>} : vector<2x64xf32>, vector<64x256xf32>, vector<2x256xf32> -> vector<2x256xf32>
    %862 = arith.index_cast %c3_i32_477 : i32 to index
    %c0_483 = arith.constant 0 : index
    %c0_484 = arith.constant 0 : index
    %863 = vector.load %arg20[%862, %c0_483, %c0_484] : memref<8x2x64xf32, #tpu.memory_space<vmem>>, vector<1x2x64xf32>
    %864 = vector.shape_cast %863 : vector<1x2x64xf32> to vector<2x64xf32>
    %c0_485 = arith.constant 0 : index
    %c0_486 = arith.constant 0 : index
    %865 = vector.load %arg9[%c0_485, %c0_486] : memref<64x256xf32, #tpu.memory_space<vmem>>, vector<64x256xf32>
    %cst_487 = arith.constant dense<0.000000e+00> : vector<2x256xf32>
    %866 = tpu.matmul %864, %865, %cst_487 {dimension_numbers = #tpu.dot_dimension_numbers<[1], [0], [0], [1], [0, 0, 1, 1], [], []>} : vector<2x64xf32>, vector<64x256xf32>, vector<2x256xf32> -> vector<2x256xf32>
    %867 = arith.addf %861, %866 : vector<2x256xf32>
    %c0_488 = arith.constant 0 : index
    %c0_489 = arith.constant 0 : index
    %868 = vector.load %arg21[%c0_488, %c0_489] : memref<2x64xf32, #tpu.memory_space<vmem>>, vector<2x64xf32>
    %c0_490 = arith.constant 0 : index
    %c0_491 = arith.constant 0 : index
    %869 = vector.load %arg22[%c0_490, %c0_491] : memref<2x64xf32, #tpu.memory_space<vmem>>, vector<2x64xf32>
    %c0_492 = arith.constant 0 : index
    %c0_493 = arith.constant 0 : index
    %870 = vector.load %arg10[%c0_492, %c0_493] : memref<64x256xf32, #tpu.memory_space<vmem>>, vector<64x256xf32>
    %cst_494 = arith.constant dense<0.000000e+00> : vector<2x256xf32>
    %871 = tpu.matmul %868, %870, %cst_494 {dimension_numbers = #tpu.dot_dimension_numbers<[1], [0], [0], [1], [0, 0, 1, 1], [], []>} : vector<2x64xf32>, vector<64x256xf32>, vector<2x256xf32> -> vector<2x256xf32>
    %872 = arith.addf %867, %871 : vector<2x256xf32>
    %c0_495 = arith.constant 0 : index
    %c0_496 = arith.constant 0 : index
    %873 = vector.load %arg11[%c0_495, %c0_496] : memref<1x256xf32, #tpu.memory_space<vmem>>, vector<1x256xf32>
    %874 = vector.broadcast %873 : vector<1x256xf32> to vector<2x256xf32>
    %875 = arith.addf %872, %874 : vector<2x256xf32>
    %876 = vector.extract_strided_slice %875 {offsets = [0, 0], sizes = [2, 64], strides = [1, 1]} : vector<2x256xf32> to vector<2x64xf32>
    %877 = arith.negf %876 : vector<2x64xf32>
    %878 = math.exp %877 : vector<2x64xf32>
    %cst_497 = arith.constant 1.000000e+00 : f32
    %879 = vector.broadcast %cst_497 : f32 to vector<2x64xf32>
    %880 = arith.addf %879, %878 : vector<2x64xf32>
    %881 = arith.divf %879, %880 : vector<2x64xf32>
    %882 = vector.extract_strided_slice %875 {offsets = [0, 64], sizes = [2, 64], strides = [1, 1]} : vector<2x256xf32> to vector<2x64xf32>
    %883 = arith.negf %882 : vector<2x64xf32>
    %884 = math.exp %883 : vector<2x64xf32>
    %cst_498 = arith.constant 1.000000e+00 : f32
    %885 = vector.broadcast %cst_498 : f32 to vector<2x64xf32>
    %886 = arith.addf %885, %884 : vector<2x64xf32>
    %887 = arith.divf %885, %886 : vector<2x64xf32>
    %888 = vector.extract_strided_slice %875 {offsets = [0, 128], sizes = [2, 64], strides = [1, 1]} : vector<2x256xf32> to vector<2x64xf32>
    %889 = math.tanh %888 : vector<2x64xf32>
    %890 = vector.extract_strided_slice %875 {offsets = [0, 192], sizes = [2, 64], strides = [1, 1]} : vector<2x256xf32> to vector<2x64xf32>
    %891 = arith.negf %890 : vector<2x64xf32>
    %892 = math.exp %891 : vector<2x64xf32>
    %cst_499 = arith.constant 1.000000e+00 : f32
    %893 = vector.broadcast %cst_499 : f32 to vector<2x64xf32>
    %894 = arith.addf %893, %892 : vector<2x64xf32>
    %895 = arith.divf %893, %894 : vector<2x64xf32>
    %896 = arith.mulf %887, %869 : vector<2x64xf32>
    %897 = arith.mulf %881, %889 : vector<2x64xf32>
    %898 = arith.addf %896, %897 : vector<2x64xf32>
    %899 = math.tanh %898 : vector<2x64xf32>
    %900 = arith.mulf %895, %899 : vector<2x64xf32>
    %c0_500 = arith.constant 0 : index
    %c0_501 = arith.constant 0 : index
    %901 = vector.load %arg21[%c0_500, %c0_501] : memref<2x64xf32, #tpu.memory_space<vmem>>, vector<2x64xf32>
    tpu.vector_store %arg21[%c0_500, %c0_501], %900 {strides = array<i32>} : memref<2x64xf32, #tpu.memory_space<vmem>>, vector<2x64xf32>,
    %c0_502 = arith.constant 0 : index
    %c0_503 = arith.constant 0 : index
    %902 = vector.load %arg22[%c0_502, %c0_503] : memref<2x64xf32, #tpu.memory_space<vmem>>, vector<2x64xf32>
    tpu.vector_store %arg22[%c0_502, %c0_503], %898 {strides = array<i32>} : memref<2x64xf32, #tpu.memory_space<vmem>>, vector<2x64xf32>,
    %c4_i32_504 = arith.constant 4 : i32
    %903 = arith.index_cast %c4_i32_504 : i32 to index
    %c0_505 = arith.constant 0 : index
    %c0_506 = arith.constant 0 : index
    %904 = vector.load %arg19[%903, %c0_505, %c0_506] : memref<8x2x64xf32, #tpu.memory_space<vmem>>, vector<1x2x64xf32>
    %905 = vector.shape_cast %904 : vector<1x2x64xf32> to vector<2x64xf32>
    %c0_507 = arith.constant 0 : index
    %c0_508 = arith.constant 0 : index
    %906 = vector.load %arg8[%c0_507, %c0_508] : memref<64x256xf32, #tpu.memory_space<vmem>>, vector<64x256xf32>
    %cst_509 = arith.constant dense<0.000000e+00> : vector<2x256xf32>
    %907 = tpu.matmul %905, %906, %cst_509 {dimension_numbers = #tpu.dot_dimension_numbers<[1], [0], [0], [1], [0, 0, 1, 1], [], []>} : vector<2x64xf32>, vector<64x256xf32>, vector<2x256xf32> -> vector<2x256xf32>
    %908 = arith.index_cast %c4_i32_504 : i32 to index
    %c0_510 = arith.constant 0 : index
    %c0_511 = arith.constant 0 : index
    %909 = vector.load %arg20[%908, %c0_510, %c0_511] : memref<8x2x64xf32, #tpu.memory_space<vmem>>, vector<1x2x64xf32>
    %910 = vector.shape_cast %909 : vector<1x2x64xf32> to vector<2x64xf32>
    %c0_512 = arith.constant 0 : index
    %c0_513 = arith.constant 0 : index
    %911 = vector.load %arg9[%c0_512, %c0_513] : memref<64x256xf32, #tpu.memory_space<vmem>>, vector<64x256xf32>
    %cst_514 = arith.constant dense<0.000000e+00> : vector<2x256xf32>
    %912 = tpu.matmul %910, %911, %cst_514 {dimension_numbers = #tpu.dot_dimension_numbers<[1], [0], [0], [1], [0, 0, 1, 1], [], []>} : vector<2x64xf32>, vector<64x256xf32>, vector<2x256xf32> -> vector<2x256xf32>
    %913 = arith.addf %907, %912 : vector<2x256xf32>
    %c0_515 = arith.constant 0 : index
    %c0_516 = arith.constant 0 : index
    %914 = vector.load %arg21[%c0_515, %c0_516] : memref<2x64xf32, #tpu.memory_space<vmem>>, vector<2x64xf32>
    %c0_517 = arith.constant 0 : index
    %c0_518 = arith.constant 0 : index
    %915 = vector.load %arg22[%c0_517, %c0_518] : memref<2x64xf32, #tpu.memory_space<vmem>>, vector<2x64xf32>
    %c0_519 = arith.constant 0 : index
    %c0_520 = arith.constant 0 : index
    %916 = vector.load %arg10[%c0_519, %c0_520] : memref<64x256xf32, #tpu.memory_space<vmem>>, vector<64x256xf32>
    %cst_521 = arith.constant dense<0.000000e+00> : vector<2x256xf32>
    %917 = tpu.matmul %914, %916, %cst_521 {dimension_numbers = #tpu.dot_dimension_numbers<[1], [0], [0], [1], [0, 0, 1, 1], [], []>} : vector<2x64xf32>, vector<64x256xf32>, vector<2x256xf32> -> vector<2x256xf32>
    %918 = arith.addf %913, %917 : vector<2x256xf32>
    %c0_522 = arith.constant 0 : index
    %c0_523 = arith.constant 0 : index
    %919 = vector.load %arg11[%c0_522, %c0_523] : memref<1x256xf32, #tpu.memory_space<vmem>>, vector<1x256xf32>
    %920 = vector.broadcast %919 : vector<1x256xf32> to vector<2x256xf32>
    %921 = arith.addf %918, %920 : vector<2x256xf32>
    %922 = vector.extract_strided_slice %921 {offsets = [0, 0], sizes = [2, 64], strides = [1, 1]} : vector<2x256xf32> to vector<2x64xf32>
    %923 = arith.negf %922 : vector<2x64xf32>
    %924 = math.exp %923 : vector<2x64xf32>
    %cst_524 = arith.constant 1.000000e+00 : f32
    %925 = vector.broadcast %cst_524 : f32 to vector<2x64xf32>
    %926 = arith.addf %925, %924 : vector<2x64xf32>
    %927 = arith.divf %925, %926 : vector<2x64xf32>
    %928 = vector.extract_strided_slice %921 {offsets = [0, 64], sizes = [2, 64], strides = [1, 1]} : vector<2x256xf32> to vector<2x64xf32>
    %929 = arith.negf %928 : vector<2x64xf32>
    %930 = math.exp %929 : vector<2x64xf32>
    %cst_525 = arith.constant 1.000000e+00 : f32
    %931 = vector.broadcast %cst_525 : f32 to vector<2x64xf32>
    %932 = arith.addf %931, %930 : vector<2x64xf32>
    %933 = arith.divf %931, %932 : vector<2x64xf32>
    %934 = vector.extract_strided_slice %921 {offsets = [0, 128], sizes = [2, 64], strides = [1, 1]} : vector<2x256xf32> to vector<2x64xf32>
    %935 = math.tanh %934 : vector<2x64xf32>
    %936 = vector.extract_strided_slice %921 {offsets = [0, 192], sizes = [2, 64], strides = [1, 1]} : vector<2x256xf32> to vector<2x64xf32>
    %937 = arith.negf %936 : vector<2x64xf32>
    %938 = math.exp %937 : vector<2x64xf32>
    %cst_526 = arith.constant 1.000000e+00 : f32
    %939 = vector.broadcast %cst_526 : f32 to vector<2x64xf32>
    %940 = arith.addf %939, %938 : vector<2x64xf32>
    %941 = arith.divf %939, %940 : vector<2x64xf32>
    %942 = arith.mulf %933, %915 : vector<2x64xf32>
    %943 = arith.mulf %927, %935 : vector<2x64xf32>
    %944 = arith.addf %942, %943 : vector<2x64xf32>
    %945 = math.tanh %944 : vector<2x64xf32>
    %946 = arith.mulf %941, %945 : vector<2x64xf32>
    %c0_527 = arith.constant 0 : index
    %c0_528 = arith.constant 0 : index
    %947 = vector.load %arg21[%c0_527, %c0_528] : memref<2x64xf32, #tpu.memory_space<vmem>>, vector<2x64xf32>
    tpu.vector_store %arg21[%c0_527, %c0_528], %946 {strides = array<i32>} : memref<2x64xf32, #tpu.memory_space<vmem>>, vector<2x64xf32>,
    %c0_529 = arith.constant 0 : index
    %c0_530 = arith.constant 0 : index
    %948 = vector.load %arg22[%c0_529, %c0_530] : memref<2x64xf32, #tpu.memory_space<vmem>>, vector<2x64xf32>
    tpu.vector_store %arg22[%c0_529, %c0_530], %944 {strides = array<i32>} : memref<2x64xf32, #tpu.memory_space<vmem>>, vector<2x64xf32>,
    %c5_i32_531 = arith.constant 5 : i32
    %949 = arith.index_cast %c5_i32_531 : i32 to index
    %c0_532 = arith.constant 0 : index
    %c0_533 = arith.constant 0 : index
    %950 = vector.load %arg19[%949, %c0_532, %c0_533] : memref<8x2x64xf32, #tpu.memory_space<vmem>>, vector<1x2x64xf32>
    %951 = vector.shape_cast %950 : vector<1x2x64xf32> to vector<2x64xf32>
    %c0_534 = arith.constant 0 : index
    %c0_535 = arith.constant 0 : index
    %952 = vector.load %arg8[%c0_534, %c0_535] : memref<64x256xf32, #tpu.memory_space<vmem>>, vector<64x256xf32>
    %cst_536 = arith.constant dense<0.000000e+00> : vector<2x256xf32>
    %953 = tpu.matmul %951, %952, %cst_536 {dimension_numbers = #tpu.dot_dimension_numbers<[1], [0], [0], [1], [0, 0, 1, 1], [], []>} : vector<2x64xf32>, vector<64x256xf32>, vector<2x256xf32> -> vector<2x256xf32>
    %954 = arith.index_cast %c5_i32_531 : i32 to index
    %c0_537 = arith.constant 0 : index
    %c0_538 = arith.constant 0 : index
    %955 = vector.load %arg20[%954, %c0_537, %c0_538] : memref<8x2x64xf32, #tpu.memory_space<vmem>>, vector<1x2x64xf32>
    %956 = vector.shape_cast %955 : vector<1x2x64xf32> to vector<2x64xf32>
    %c0_539 = arith.constant 0 : index
    %c0_540 = arith.constant 0 : index
    %957 = vector.load %arg9[%c0_539, %c0_540] : memref<64x256xf32, #tpu.memory_space<vmem>>, vector<64x256xf32>
    %cst_541 = arith.constant dense<0.000000e+00> : vector<2x256xf32>
    %958 = tpu.matmul %956, %957, %cst_541 {dimension_numbers = #tpu.dot_dimension_numbers<[1], [0], [0], [1], [0, 0, 1, 1], [], []>} : vector<2x64xf32>, vector<64x256xf32>, vector<2x256xf32> -> vector<2x256xf32>
    %959 = arith.addf %953, %958 : vector<2x256xf32>
    %c0_542 = arith.constant 0 : index
    %c0_543 = arith.constant 0 : index
    %960 = vector.load %arg21[%c0_542, %c0_543] : memref<2x64xf32, #tpu.memory_space<vmem>>, vector<2x64xf32>
    %c0_544 = arith.constant 0 : index
    %c0_545 = arith.constant 0 : index
    %961 = vector.load %arg22[%c0_544, %c0_545] : memref<2x64xf32, #tpu.memory_space<vmem>>, vector<2x64xf32>
    %c0_546 = arith.constant 0 : index
    %c0_547 = arith.constant 0 : index
    %962 = vector.load %arg10[%c0_546, %c0_547] : memref<64x256xf32, #tpu.memory_space<vmem>>, vector<64x256xf32>
    %cst_548 = arith.constant dense<0.000000e+00> : vector<2x256xf32>
    %963 = tpu.matmul %960, %962, %cst_548 {dimension_numbers = #tpu.dot_dimension_numbers<[1], [0], [0], [1], [0, 0, 1, 1], [], []>} : vector<2x64xf32>, vector<64x256xf32>, vector<2x256xf32> -> vector<2x256xf32>
    %964 = arith.addf %959, %963 : vector<2x256xf32>
    %c0_549 = arith.constant 0 : index
    %c0_550 = arith.constant 0 : index
    %965 = vector.load %arg11[%c0_549, %c0_550] : memref<1x256xf32, #tpu.memory_space<vmem>>, vector<1x256xf32>
    %966 = vector.broadcast %965 : vector<1x256xf32> to vector<2x256xf32>
    %967 = arith.addf %964, %966 : vector<2x256xf32>
    %968 = vector.extract_strided_slice %967 {offsets = [0, 0], sizes = [2, 64], strides = [1, 1]} : vector<2x256xf32> to vector<2x64xf32>
    %969 = arith.negf %968 : vector<2x64xf32>
    %970 = math.exp %969 : vector<2x64xf32>
    %cst_551 = arith.constant 1.000000e+00 : f32
    %971 = vector.broadcast %cst_551 : f32 to vector<2x64xf32>
    %972 = arith.addf %971, %970 : vector<2x64xf32>
    %973 = arith.divf %971, %972 : vector<2x64xf32>
    %974 = vector.extract_strided_slice %967 {offsets = [0, 64], sizes = [2, 64], strides = [1, 1]} : vector<2x256xf32> to vector<2x64xf32>
    %975 = arith.negf %974 : vector<2x64xf32>
    %976 = math.exp %975 : vector<2x64xf32>
    %cst_552 = arith.constant 1.000000e+00 : f32
    %977 = vector.broadcast %cst_552 : f32 to vector<2x64xf32>
    %978 = arith.addf %977, %976 : vector<2x64xf32>
    %979 = arith.divf %977, %978 : vector<2x64xf32>
    %980 = vector.extract_strided_slice %967 {offsets = [0, 128], sizes = [2, 64], strides = [1, 1]} : vector<2x256xf32> to vector<2x64xf32>
    %981 = math.tanh %980 : vector<2x64xf32>
    %982 = vector.extract_strided_slice %967 {offsets = [0, 192], sizes = [2, 64], strides = [1, 1]} : vector<2x256xf32> to vector<2x64xf32>
    %983 = arith.negf %982 : vector<2x64xf32>
    %984 = math.exp %983 : vector<2x64xf32>
    %cst_553 = arith.constant 1.000000e+00 : f32
    %985 = vector.broadcast %cst_553 : f32 to vector<2x64xf32>
    %986 = arith.addf %985, %984 : vector<2x64xf32>
    %987 = arith.divf %985, %986 : vector<2x64xf32>
    %988 = arith.mulf %979, %961 : vector<2x64xf32>
    %989 = arith.mulf %973, %981 : vector<2x64xf32>
    %990 = arith.addf %988, %989 : vector<2x64xf32>
    %991 = math.tanh %990 : vector<2x64xf32>
    %992 = arith.mulf %987, %991 : vector<2x64xf32>
    %c0_554 = arith.constant 0 : index
    %c0_555 = arith.constant 0 : index
    %993 = vector.load %arg21[%c0_554, %c0_555] : memref<2x64xf32, #tpu.memory_space<vmem>>, vector<2x64xf32>
    tpu.vector_store %arg21[%c0_554, %c0_555], %992 {strides = array<i32>} : memref<2x64xf32, #tpu.memory_space<vmem>>, vector<2x64xf32>,
    %c0_556 = arith.constant 0 : index
    %c0_557 = arith.constant 0 : index
    %994 = vector.load %arg22[%c0_556, %c0_557] : memref<2x64xf32, #tpu.memory_space<vmem>>, vector<2x64xf32>
    tpu.vector_store %arg22[%c0_556, %c0_557], %990 {strides = array<i32>} : memref<2x64xf32, #tpu.memory_space<vmem>>, vector<2x64xf32>,
    %c6_i32_558 = arith.constant 6 : i32
    %995 = arith.index_cast %c6_i32_558 : i32 to index
    %c0_559 = arith.constant 0 : index
    %c0_560 = arith.constant 0 : index
    %996 = vector.load %arg19[%995, %c0_559, %c0_560] : memref<8x2x64xf32, #tpu.memory_space<vmem>>, vector<1x2x64xf32>
    %997 = vector.shape_cast %996 : vector<1x2x64xf32> to vector<2x64xf32>
    %c0_561 = arith.constant 0 : index
    %c0_562 = arith.constant 0 : index
    %998 = vector.load %arg8[%c0_561, %c0_562] : memref<64x256xf32, #tpu.memory_space<vmem>>, vector<64x256xf32>
    %cst_563 = arith.constant dense<0.000000e+00> : vector<2x256xf32>
    %999 = tpu.matmul %997, %998, %cst_563 {dimension_numbers = #tpu.dot_dimension_numbers<[1], [0], [0], [1], [0, 0, 1, 1], [], []>} : vector<2x64xf32>, vector<64x256xf32>, vector<2x256xf32> -> vector<2x256xf32>
    %1000 = arith.index_cast %c6_i32_558 : i32 to index
    %c0_564 = arith.constant 0 : index
    %c0_565 = arith.constant 0 : index
    %1001 = vector.load %arg20[%1000, %c0_564, %c0_565] : memref<8x2x64xf32, #tpu.memory_space<vmem>>, vector<1x2x64xf32>
    %1002 = vector.shape_cast %1001 : vector<1x2x64xf32> to vector<2x64xf32>
    %c0_566 = arith.constant 0 : index
    %c0_567 = arith.constant 0 : index
    %1003 = vector.load %arg9[%c0_566, %c0_567] : memref<64x256xf32, #tpu.memory_space<vmem>>, vector<64x256xf32>
    %cst_568 = arith.constant dense<0.000000e+00> : vector<2x256xf32>
    %1004 = tpu.matmul %1002, %1003, %cst_568 {dimension_numbers = #tpu.dot_dimension_numbers<[1], [0], [0], [1], [0, 0, 1, 1], [], []>} : vector<2x64xf32>, vector<64x256xf32>, vector<2x256xf32> -> vector<2x256xf32>
    %1005 = arith.addf %999, %1004 : vector<2x256xf32>
    %c0_569 = arith.constant 0 : index
    %c0_570 = arith.constant 0 : index
    %1006 = vector.load %arg21[%c0_569, %c0_570] : memref<2x64xf32, #tpu.memory_space<vmem>>, vector<2x64xf32>
    %c0_571 = arith.constant 0 : index
    %c0_572 = arith.constant 0 : index
    %1007 = vector.load %arg22[%c0_571, %c0_572] : memref<2x64xf32, #tpu.memory_space<vmem>>, vector<2x64xf32>
    %c0_573 = arith.constant 0 : index
    %c0_574 = arith.constant 0 : index
    %1008 = vector.load %arg10[%c0_573, %c0_574] : memref<64x256xf32, #tpu.memory_space<vmem>>, vector<64x256xf32>
    %cst_575 = arith.constant dense<0.000000e+00> : vector<2x256xf32>
    %1009 = tpu.matmul %1006, %1008, %cst_575 {dimension_numbers = #tpu.dot_dimension_numbers<[1], [0], [0], [1], [0, 0, 1, 1], [], []>} : vector<2x64xf32>, vector<64x256xf32>, vector<2x256xf32> -> vector<2x256xf32>
    %1010 = arith.addf %1005, %1009 : vector<2x256xf32>
    %c0_576 = arith.constant 0 : index
    %c0_577 = arith.constant 0 : index
    %1011 = vector.load %arg11[%c0_576, %c0_577] : memref<1x256xf32, #tpu.memory_space<vmem>>, vector<1x256xf32>
    %1012 = vector.broadcast %1011 : vector<1x256xf32> to vector<2x256xf32>
    %1013 = arith.addf %1010, %1012 : vector<2x256xf32>
    %1014 = vector.extract_strided_slice %1013 {offsets = [0, 0], sizes = [2, 64], strides = [1, 1]} : vector<2x256xf32> to vector<2x64xf32>
    %1015 = arith.negf %1014 : vector<2x64xf32>
    %1016 = math.exp %1015 : vector<2x64xf32>
    %cst_578 = arith.constant 1.000000e+00 : f32
    %1017 = vector.broadcast %cst_578 : f32 to vector<2x64xf32>
    %1018 = arith.addf %1017, %1016 : vector<2x64xf32>
    %1019 = arith.divf %1017, %1018 : vector<2x64xf32>
    %1020 = vector.extract_strided_slice %1013 {offsets = [0, 64], sizes = [2, 64], strides = [1, 1]} : vector<2x256xf32> to vector<2x64xf32>
    %1021 = arith.negf %1020 : vector<2x64xf32>
    %1022 = math.exp %1021 : vector<2x64xf32>
    %cst_579 = arith.constant 1.000000e+00 : f32
    %1023 = vector.broadcast %cst_579 : f32 to vector<2x64xf32>
    %1024 = arith.addf %1023, %1022 : vector<2x64xf32>
    %1025 = arith.divf %1023, %1024 : vector<2x64xf32>
    %1026 = vector.extract_strided_slice %1013 {offsets = [0, 128], sizes = [2, 64], strides = [1, 1]} : vector<2x256xf32> to vector<2x64xf32>
    %1027 = math.tanh %1026 : vector<2x64xf32>
    %1028 = vector.extract_strided_slice %1013 {offsets = [0, 192], sizes = [2, 64], strides = [1, 1]} : vector<2x256xf32> to vector<2x64xf32>
    %1029 = arith.negf %1028 : vector<2x64xf32>
    %1030 = math.exp %1029 : vector<2x64xf32>
    %cst_580 = arith.constant 1.000000e+00 : f32
    %1031 = vector.broadcast %cst_580 : f32 to vector<2x64xf32>
    %1032 = arith.addf %1031, %1030 : vector<2x64xf32>
    %1033 = arith.divf %1031, %1032 : vector<2x64xf32>
    %1034 = arith.mulf %1025, %1007 : vector<2x64xf32>
    %1035 = arith.mulf %1019, %1027 : vector<2x64xf32>
    %1036 = arith.addf %1034, %1035 : vector<2x64xf32>
    %1037 = math.tanh %1036 : vector<2x64xf32>
    %1038 = arith.mulf %1033, %1037 : vector<2x64xf32>
    %c0_581 = arith.constant 0 : index
    %c0_582 = arith.constant 0 : index
    %1039 = vector.load %arg21[%c0_581, %c0_582] : memref<2x64xf32, #tpu.memory_space<vmem>>, vector<2x64xf32>
    tpu.vector_store %arg21[%c0_581, %c0_582], %1038 {strides = array<i32>} : memref<2x64xf32, #tpu.memory_space<vmem>>, vector<2x64xf32>,
    %c0_583 = arith.constant 0 : index
    %c0_584 = arith.constant 0 : index
    %1040 = vector.load %arg22[%c0_583, %c0_584] : memref<2x64xf32, #tpu.memory_space<vmem>>, vector<2x64xf32>
    tpu.vector_store %arg22[%c0_583, %c0_584], %1036 {strides = array<i32>} : memref<2x64xf32, #tpu.memory_space<vmem>>, vector<2x64xf32>,
    %c7_i32_585 = arith.constant 7 : i32
    %1041 = arith.index_cast %c7_i32_585 : i32 to index
    %c0_586 = arith.constant 0 : index
    %c0_587 = arith.constant 0 : index
    %1042 = vector.load %arg19[%1041, %c0_586, %c0_587] : memref<8x2x64xf32, #tpu.memory_space<vmem>>, vector<1x2x64xf32>
    %1043 = vector.shape_cast %1042 : vector<1x2x64xf32> to vector<2x64xf32>
    %c0_588 = arith.constant 0 : index
    %c0_589 = arith.constant 0 : index
    %1044 = vector.load %arg8[%c0_588, %c0_589] : memref<64x256xf32, #tpu.memory_space<vmem>>, vector<64x256xf32>
    %cst_590 = arith.constant dense<0.000000e+00> : vector<2x256xf32>
    %1045 = tpu.matmul %1043, %1044, %cst_590 {dimension_numbers = #tpu.dot_dimension_numbers<[1], [0], [0], [1], [0, 0, 1, 1], [], []>} : vector<2x64xf32>, vector<64x256xf32>, vector<2x256xf32> -> vector<2x256xf32>
    %1046 = arith.index_cast %c7_i32_585 : i32 to index
    %c0_591 = arith.constant 0 : index
    %c0_592 = arith.constant 0 : index
    %1047 = vector.load %arg20[%1046, %c0_591, %c0_592] : memref<8x2x64xf32, #tpu.memory_space<vmem>>, vector<1x2x64xf32>
    %1048 = vector.shape_cast %1047 : vector<1x2x64xf32> to vector<2x64xf32>
    %c0_593 = arith.constant 0 : index
    %c0_594 = arith.constant 0 : index
    %1049 = vector.load %arg9[%c0_593, %c0_594] : memref<64x256xf32, #tpu.memory_space<vmem>>, vector<64x256xf32>
    %cst_595 = arith.constant dense<0.000000e+00> : vector<2x256xf32>
    %1050 = tpu.matmul %1048, %1049, %cst_595 {dimension_numbers = #tpu.dot_dimension_numbers<[1], [0], [0], [1], [0, 0, 1, 1], [], []>} : vector<2x64xf32>, vector<64x256xf32>, vector<2x256xf32> -> vector<2x256xf32>
    %1051 = arith.addf %1045, %1050 : vector<2x256xf32>
    %c0_596 = arith.constant 0 : index
    %c0_597 = arith.constant 0 : index
    %1052 = vector.load %arg21[%c0_596, %c0_597] : memref<2x64xf32, #tpu.memory_space<vmem>>, vector<2x64xf32>
    %c0_598 = arith.constant 0 : index
    %c0_599 = arith.constant 0 : index
    %1053 = vector.load %arg22[%c0_598, %c0_599] : memref<2x64xf32, #tpu.memory_space<vmem>>, vector<2x64xf32>
    %c0_600 = arith.constant 0 : index
    %c0_601 = arith.constant 0 : index
    %1054 = vector.load %arg10[%c0_600, %c0_601] : memref<64x256xf32, #tpu.memory_space<vmem>>, vector<64x256xf32>
    %cst_602 = arith.constant dense<0.000000e+00> : vector<2x256xf32>
    %1055 = tpu.matmul %1052, %1054, %cst_602 {dimension_numbers = #tpu.dot_dimension_numbers<[1], [0], [0], [1], [0, 0, 1, 1], [], []>} : vector<2x64xf32>, vector<64x256xf32>, vector<2x256xf32> -> vector<2x256xf32>
    %1056 = arith.addf %1051, %1055 : vector<2x256xf32>
    %c0_603 = arith.constant 0 : index
    %c0_604 = arith.constant 0 : index
    %1057 = vector.load %arg11[%c0_603, %c0_604] : memref<1x256xf32, #tpu.memory_space<vmem>>, vector<1x256xf32>
    %1058 = vector.broadcast %1057 : vector<1x256xf32> to vector<2x256xf32>
    %1059 = arith.addf %1056, %1058 : vector<2x256xf32>
    %1060 = vector.extract_strided_slice %1059 {offsets = [0, 0], sizes = [2, 64], strides = [1, 1]} : vector<2x256xf32> to vector<2x64xf32>
    %1061 = arith.negf %1060 : vector<2x64xf32>
    %1062 = math.exp %1061 : vector<2x64xf32>
    %cst_605 = arith.constant 1.000000e+00 : f32
    %1063 = vector.broadcast %cst_605 : f32 to vector<2x64xf32>
    %1064 = arith.addf %1063, %1062 : vector<2x64xf32>
    %1065 = arith.divf %1063, %1064 : vector<2x64xf32>
    %1066 = vector.extract_strided_slice %1059 {offsets = [0, 64], sizes = [2, 64], strides = [1, 1]} : vector<2x256xf32> to vector<2x64xf32>
    %1067 = arith.negf %1066 : vector<2x64xf32>
    %1068 = math.exp %1067 : vector<2x64xf32>
    %cst_606 = arith.constant 1.000000e+00 : f32
    %1069 = vector.broadcast %cst_606 : f32 to vector<2x64xf32>
    %1070 = arith.addf %1069, %1068 : vector<2x64xf32>
    %1071 = arith.divf %1069, %1070 : vector<2x64xf32>
    %1072 = vector.extract_strided_slice %1059 {offsets = [0, 128], sizes = [2, 64], strides = [1, 1]} : vector<2x256xf32> to vector<2x64xf32>
    %1073 = math.tanh %1072 : vector<2x64xf32>
    %1074 = vector.extract_strided_slice %1059 {offsets = [0, 192], sizes = [2, 64], strides = [1, 1]} : vector<2x256xf32> to vector<2x64xf32>
    %1075 = arith.negf %1074 : vector<2x64xf32>
    %1076 = math.exp %1075 : vector<2x64xf32>
    %cst_607 = arith.constant 1.000000e+00 : f32
    %1077 = vector.broadcast %cst_607 : f32 to vector<2x64xf32>
    %1078 = arith.addf %1077, %1076 : vector<2x64xf32>
    %1079 = arith.divf %1077, %1078 : vector<2x64xf32>
    %1080 = arith.mulf %1071, %1053 : vector<2x64xf32>
    %1081 = arith.mulf %1065, %1073 : vector<2x64xf32>
    %1082 = arith.addf %1080, %1081 : vector<2x64xf32>
    %1083 = math.tanh %1082 : vector<2x64xf32>
    %1084 = arith.mulf %1079, %1083 : vector<2x64xf32>
    %c0_608 = arith.constant 0 : index
    %c0_609 = arith.constant 0 : index
    %1085 = vector.load %arg21[%c0_608, %c0_609] : memref<2x64xf32, #tpu.memory_space<vmem>>, vector<2x64xf32>
    tpu.vector_store %arg21[%c0_608, %c0_609], %1084 {strides = array<i32>} : memref<2x64xf32, #tpu.memory_space<vmem>>, vector<2x64xf32>,
    %c0_610 = arith.constant 0 : index
    %c0_611 = arith.constant 0 : index
    %1086 = vector.load %arg22[%c0_610, %c0_611] : memref<2x64xf32, #tpu.memory_space<vmem>>, vector<2x64xf32>
    tpu.vector_store %arg22[%c0_610, %c0_611], %1082 {strides = array<i32>} : memref<2x64xf32, #tpu.memory_space<vmem>>, vector<2x64xf32>,
    %c8_i32_612 = arith.constant 8 : i32
    %c0_613 = arith.constant 0 : index
    %c0_614 = arith.constant 0 : index
    %1087 = vector.load %arg21[%c0_613, %c0_614] : memref<2x64xf32, #tpu.memory_space<vmem>>, vector<2x64xf32>
    %c7 = arith.constant 7 : index
    %c0_615 = arith.constant 0 : index
    %c0_616 = arith.constant 0 : index
    %1088 = vector.load %arg19[%c7, %c0_615, %c0_616] : memref<8x2x64xf32, #tpu.memory_space<vmem>>, vector<1x2x64xf32>
    %1089 = vector.shape_cast %1088 : vector<1x2x64xf32> to vector<2x64xf32>
    %c0_617 = arith.constant 0 : index
    %c0_618 = arith.constant 0 : index
    %1090 = vector.load %arg12[%c0_617, %c0_618] : memref<64x256xf32, #tpu.memory_space<vmem>>, vector<64x256xf32>
    %cst_619 = arith.constant dense<0.000000e+00> : vector<2x256xf32>
    %1091 = tpu.matmul %1089, %1090, %cst_619 {dimension_numbers = #tpu.dot_dimension_numbers<[1], [0], [0], [1], [0, 0, 1, 1], [], []>} : vector<2x64xf32>, vector<64x256xf32>, vector<2x256xf32> -> vector<2x256xf32>
    %c7_620 = arith.constant 7 : index
    %c0_621 = arith.constant 0 : index
    %c0_622 = arith.constant 0 : index
    %1092 = vector.load %arg20[%c7_620, %c0_621, %c0_622] : memref<8x2x64xf32, #tpu.memory_space<vmem>>, vector<1x2x64xf32>
    %1093 = vector.shape_cast %1092 : vector<1x2x64xf32> to vector<2x64xf32>
    %c0_623 = arith.constant 0 : index
    %c0_624 = arith.constant 0 : index
    %1094 = vector.load %arg13[%c0_623, %c0_624] : memref<64x256xf32, #tpu.memory_space<vmem>>, vector<64x256xf32>
    %cst_625 = arith.constant dense<0.000000e+00> : vector<2x256xf32>
    %1095 = tpu.matmul %1093, %1094, %cst_625 {dimension_numbers = #tpu.dot_dimension_numbers<[1], [0], [0], [1], [0, 0, 1, 1], [], []>} : vector<2x64xf32>, vector<64x256xf32>, vector<2x256xf32> -> vector<2x256xf32>
    %1096 = arith.addf %1091, %1095 : vector<2x256xf32>
    %c0_626 = arith.constant 0 : index
    %c0_627 = arith.constant 0 : index
    %1097 = vector.load %arg14[%c0_626, %c0_627] : memref<1x256xf32, #tpu.memory_space<vmem>>, vector<1x256xf32>
    %1098 = vector.broadcast %1097 : vector<1x256xf32> to vector<2x256xf32>
    %1099 = arith.addf %1096, %1098 : vector<2x256xf32>
    %1100 = vector.extract_strided_slice %1099 {offsets = [0, 0], sizes = [2, 64], strides = [1, 1]} : vector<2x256xf32> to vector<2x64xf32>
    %1101 = arith.negf %1100 : vector<2x64xf32>
    %1102 = math.exp %1101 : vector<2x64xf32>
    %cst_628 = arith.constant 1.000000e+00 : f32
    %1103 = vector.broadcast %cst_628 : f32 to vector<2x64xf32>
    %1104 = arith.addf %1103, %1102 : vector<2x64xf32>
    %1105 = arith.divf %1103, %1104 : vector<2x64xf32>
    %1106 = vector.extract_strided_slice %1099 {offsets = [0, 128], sizes = [2, 64], strides = [1, 1]} : vector<2x256xf32> to vector<2x64xf32>
    %1107 = math.tanh %1106 : vector<2x64xf32>
    %1108 = vector.extract_strided_slice %1099 {offsets = [0, 192], sizes = [2, 64], strides = [1, 1]} : vector<2x256xf32> to vector<2x64xf32>
    %1109 = arith.negf %1108 : vector<2x64xf32>
    %1110 = math.exp %1109 : vector<2x64xf32>
    %cst_629 = arith.constant 1.000000e+00 : f32
    %1111 = vector.broadcast %cst_629 : f32 to vector<2x64xf32>
    %1112 = arith.addf %1111, %1110 : vector<2x64xf32>
    %1113 = arith.divf %1111, %1112 : vector<2x64xf32>
    %1114 = arith.mulf %1105, %1107 : vector<2x64xf32>
    %1115 = math.tanh %1114 : vector<2x64xf32>
    %1116 = arith.mulf %1113, %1115 : vector<2x64xf32>
    %c0_630 = arith.constant 0 : index
    %c0_631 = arith.constant 0 : index
    %1117 = vector.load %arg15[%c0_630, %c0_631] : memref<64x2xf32, #tpu.memory_space<vmem>>, vector<64x2xf32>
    %cst_632 = arith.constant dense<0.000000e+00> : vector<2x2xf32>
    %1118 = tpu.matmul %1087, %1117, %cst_632 {dimension_numbers = #tpu.dot_dimension_numbers<[1], [0], [0], [1], [0, 0, 1, 1], [], []>} : vector<2x64xf32>, vector<64x2xf32>, vector<2x2xf32> -> vector<2x2xf32>
    %c0_633 = arith.constant 0 : index
    %c0_634 = arith.constant 0 : index
    %1119 = vector.load %arg16[%c0_633, %c0_634] : memref<64x2xf32, #tpu.memory_space<vmem>>, vector<64x2xf32>
    %cst_635 = arith.constant dense<0.000000e+00> : vector<2x2xf32>
    %1120 = tpu.matmul %1116, %1119, %cst_635 {dimension_numbers = #tpu.dot_dimension_numbers<[1], [0], [0], [1], [0, 0, 1, 1], [], []>} : vector<2x64xf32>, vector<64x2xf32>, vector<2x2xf32> -> vector<2x2xf32>
    %1121 = arith.addf %1118, %1120 : vector<2x2xf32>
    %c0_636 = arith.constant 0 : index
    %c0_637 = arith.constant 0 : index
    %1122 = vector.load %arg17[%c0_636, %c0_637] : memref<1x2xf32, #tpu.memory_space<vmem>>, vector<1x2xf32>
    %1123 = vector.broadcast %1122 : vector<1x2xf32> to vector<2x2xf32>
    %1124 = arith.addf %1121, %1123 : vector<2x2xf32>
    %c0_638 = arith.constant 0 : index
    %c0_639 = arith.constant 0 : index
    %1125 = vector.load %arg18[%c0_638, %c0_639] : memref<2x2xf32, #tpu.memory_space<vmem>>, vector<2x2xf32>
    tpu.vector_store %arg18[%c0_638, %c0_639], %1124 {strides = array<i32>} : memref<2x2xf32, #tpu.memory_space<vmem>>, vector<2x2xf32>,
    return
  }
  func.func @transform_0(%arg0: i32) -> (i32, i32, i32) {
    %c0_i32 = arith.constant 0 : i32
    %c0_i32_0 = arith.constant 0 : i32
    %c0_i32_1 = arith.constant 0 : i32
    return %c0_i32, %arg0, %c0_i32_0 : i32, i32, i32
  }
  func.func @transform_1(%arg0: i32) -> (i32, i32) {
    %c0_i32 = arith.constant 0 : i32
    %c0_i32_0 = arith.constant 0 : i32
    %c0_i32_1 = arith.constant 0 : i32
    return %c0_i32, %c0_i32_0 : i32, i32
  }
  func.func @transform_2(%arg0: i32) -> (i32, i32) {
    %c0_i32 = arith.constant 0 : i32
    %c0_i32_0 = arith.constant 0 : i32
    %c0_i32_1 = arith.constant 0 : i32
    return %c0_i32, %c0_i32_0 : i32, i32
  }
  func.func @transform_3(%arg0: i32) -> (i32, i32) {
    %c0_i32 = arith.constant 0 : i32
    %c0_i32_0 = arith.constant 0 : i32
    %c0_i32_1 = arith.constant 0 : i32
    return %c0_i32, %c0_i32_0 : i32, i32
  }
  func.func @transform_4(%arg0: i32) -> (i32, i32) {
    %c0_i32 = arith.constant 0 : i32
    %c0_i32_0 = arith.constant 0 : i32
    %c0_i32_1 = arith.constant 0 : i32
    return %c0_i32, %c0_i32_0 : i32, i32
  }
  func.func @transform_5(%arg0: i32) -> (i32, i32) {
    %c0_i32 = arith.constant 0 : i32
    %c0_i32_0 = arith.constant 0 : i32
    %c0_i32_1 = arith.constant 0 : i32
    return %c0_i32, %c0_i32_0 : i32, i32
  }
  func.func @transform_6(%arg0: i32) -> (i32, i32) {
    %c0_i32 = arith.constant 0 : i32
    %c0_i32_0 = arith.constant 0 : i32
    %c0_i32_1 = arith.constant 0 : i32
    return %c0_i32, %c0_i32_0 : i32, i32
  }
  func.func @transform_7(%arg0: i32) -> (i32, i32) {
    %c0_i32 = arith.constant 0 : i32
    %c0_i32_0 = arith.constant 0 : i32
    %c0_i32_1 = arith.constant 0 : i32
    return %c0_i32, %c0_i32_0 : i32, i32
  }
  func.func @transform_8(%arg0: i32) -> (i32, i32) {
    %c0_i32 = arith.constant 0 : i32
    %c0_i32_0 = arith.constant 0 : i32
    %c0_i32_1 = arith.constant 0 : i32
    return %c0_i32, %c0_i32_0 : i32, i32
  }
  func.func @transform_9(%arg0: i32) -> (i32, i32) {
    %c0_i32 = arith.constant 0 : i32
    %c0_i32_0 = arith.constant 0 : i32
    %c0_i32_1 = arith.constant 0 : i32
    return %c0_i32, %c0_i32_0 : i32, i32
  }
  func.func @transform_10(%arg0: i32) -> (i32, i32) {
    %c0_i32 = arith.constant 0 : i32
    %c0_i32_0 = arith.constant 0 : i32
    %c0_i32_1 = arith.constant 0 : i32
    return %c0_i32, %c0_i32_0 : i32, i32
  }
  func.func @transform_11(%arg0: i32) -> (i32, i32) {
    %c0_i32 = arith.constant 0 : i32
    %c0_i32_0 = arith.constant 0 : i32
    %c0_i32_1 = arith.constant 0 : i32
    return %c0_i32, %c0_i32_0 : i32, i32
  }
  func.func @transform_12(%arg0: i32) -> (i32, i32) {
    %c0_i32 = arith.constant 0 : i32
    %c0_i32_0 = arith.constant 0 : i32
    %c0_i32_1 = arith.constant 0 : i32
    return %c0_i32, %c0_i32_0 : i32, i32
  }
  func.func @transform_13(%arg0: i32) -> (i32, i32) {
    %c0_i32 = arith.constant 0 : i32
    %c0_i32_0 = arith.constant 0 : i32
    %c0_i32_1 = arith.constant 0 : i32
    return %c0_i32, %c0_i32_0 : i32, i32
  }
  func.func @transform_14(%arg0: i32) -> (i32, i32) {
    %c0_i32 = arith.constant 0 : i32
    %c0_i32_0 = arith.constant 0 : i32
    %c0_i32_1 = arith.constant 0 : i32
    return %c0_i32, %c0_i32_0 : i32, i32
  }
  func.func @transform_15(%arg0: i32) -> (i32, i32) {
    %c0_i32 = arith.constant 0 : i32
    %c0_i32_0 = arith.constant 0 : i32
    %c0_i32_1 = arith.constant 0 : i32
    return %c0_i32, %c0_i32_0 : i32, i32
  }
  func.func @transform_16(%arg0: i32) -> (i32, i32) {
    %c0_i32 = arith.constant 0 : i32
    %c0_i32_0 = arith.constant 0 : i32
    %c0_i32_1 = arith.constant 0 : i32
    return %c0_i32, %c0_i32_0 : i32, i32
  }
  func.func @transform_17(%arg0: i32) -> (i32, i32) {
    %c0_i32 = arith.constant 0 : i32
    %c0_i32_0 = arith.constant 0 : i32
    return %arg0, %c0_i32 : i32, i32
  }
}

</mosaic_0001>

<bundles_post_ra>
// kernel: tpu_custom_call.1
= control target key start
LH: loop header
LB: loop body
LE: loop exit
PB: predicated region body
PF: predicated region fallthrough
CT: control target
= control target key end

     0   :  { %s9622_s0 = inlined_call_operand.hbm [shape: f32[8,2,16], index: 0, kind: input, shape index: {}]   ;;  %s9623_s1 = inlined_call_operand.hbm [shape: f32[16,256], index: 1, kind: input, shape index: {}]   ;;  %s9624_s2 = inlined_call_operand.vmem [shape: f32[64,256], index: 2, kind: input, shape index: {}]   ;;  %s9625_s3 = inlined_call_operand.vmem [shape: f32[1,256], index: 3, kind: input, shape index: {}]   ;;  %s9626_s4 = inlined_call_operand.hbm [shape: f32[16,256], index: 4, kind: input, shape index: {}]   ;;  %s9627_s5 = inlined_call_operand.hbm [shape: f32[64,256], index: 5, kind: input, shape index: {}]   ;;  %s9628_s6 = inlined_call_operand.vmem [shape: f32[1,256], index: 6, kind: input, shape index: {}]   ;;  %s9629_s7 = inlined_call_operand.hbm [shape: f32[64,256], index: 7, kind: input, shape index: {}]   ;;  %s9630_s8 = inlined_call_operand.hbm [shape: f32[64,256], index: 8, kind: input, shape index: {}]   ;;  %s9631_s9 = inlined_call_operand.hbm [shape: f32[64,256], index: 9, kind: input, shape index: {}]   ;;  %s9632_s10 = inlined_call_operand.vmem [shape: f32[1,256], index: 10, kind: input, shape index: {}]   ;;  %s9633_s11 = inlined_call_operand.hbm [shape: f32[64,256], index: 11, kind: input, shape index: {}]   ;;  %s9634_s12 = inlined_call_operand.hbm [shape: f32[64,256], index: 12, kind: input, shape index: {}]   ;;  %s9635_s13 = inlined_call_operand.vmem [shape: f32[1,256], index: 13, kind: input, shape index: {}]   ;;  %s9636_s14 = inlined_call_operand.vmem [shape: f32[64,2], index: 14, kind: input, shape index: {}]   ;;  %s9637_s15 = inlined_call_operand.vmem [shape: f32[64,2], index: 15, kind: input, shape index: {}]   ;;  %s9638_s16 = inlined_call_operand.vmem [shape: f32[1,2], index: 16, kind: input, shape index: {}]   ;;  %s9639_s17 = inlined_call_operand.hbm [shape: f32[2,2], index: 17, kind: output, shape index: {}]  }
   0x1   :  { %9643 = sst [smem:[#allocation28_spill]] %s9622_s0 }
   0x2   :  { %9644 = sst [smem:[#allocation29_spill]] %s9623_s1 }
   0x3   :  { %9645 = sst [smem:[#allocation30_spill]] %s9638_s16 }
   0x4   :  { %9646 = sst [smem:[#allocation31_spill]] %s9639_s17 }
   0x5   :  { %22 = vsyncpa [#allocation7], 0 }
   0x6   :  { %23 = vsyncpa [#allocation10], 0 }
   0x7   :  { %24 = vsyncpa [#allocation13], 0 }
   0x8   :  { %25 = vsyncpa [#allocation16], 0 }
   0x9   :  { %26 = vsyncpa [#allocation19], 0 }
   0xa   :  { %27 = vsyncpa [#allocation8], 0  ;;  %s8322_s24 = smov [#allocation9]   ;;  %s9647_s28 = sld [smem:[#allocation29_spill]] }
   0xb   :  { %s45_s25 = sshll.u32 %s8322_s24, 4  ;;  %s46_s25 = int_to_ptr.vmem [resolvable:$true] %s45_s25 }
  0x10   :  { %s8090_s29 = scalar_lea.hbm %s9647_s28, 512 }
  0x11   :  { %p8091_p0 = scmp.ne.s32.totalorder %s9647_s28, %s8090_s29  ;;  %p8094_p1 = scmp.lt.u32.totalorder %s8090_s29, %s9647_s28 }
  0x13   :  { %p8096_p2 = pnand %p8094_p1, %p8091_p0 }
  0x15   :  { %8099 = shalt.err (!%p8096_p2)
}
  0x16   :  { %s8100_s1 = scalar_lea.vmem %s46_s25, 512  ;;  %p8105_p4 = scmp.lt.s32.totalorder %s46_s25, %s46_s25 }
  0x17   :  { %p8101_p3 = scmp.ne.s32.totalorder %s46_s25, %s8100_s1  ;;  %p8106_p5 = scmp.lt.s32.totalorder %s8100_s1, %s8100_s1 }
  0x19   :  { %p8107_p6 = por %p8106_p5, %p8105_p4 }
  0x1b   :  { %p8108_p7 = pnand %p8107_p6, %p8101_p3 }
  0x1d   :  { %8111 = shalt.err (!%p8108_p7)
}
  0x1e   :  { %s8323_s20 = smov 256   ;;  %s8324_s21 = smov 16  }
  0x1f   :  { %51 = dma.hbm_to_vmem [thread:$0]  %s9647_s28, 512, %s46_s25, [#allocation10], %s8323_s20, %s8323_s20, %s8324_s21  }
  0x20   :  { %s8325_s24 = smov [#allocation12]   ;;  %s8326_s27 = smov [#allocation15]  }
  0x21   :  { %s73_s26 = sshll.u32 %s8325_s24, 4  ;;  %s99_s29 = sshll.u32 %s8326_s27, 4  ;;  %s74_s26 = int_to_ptr.vmem [resolvable:$true] %s73_s26  ;;  %s100_s29 = int_to_ptr.vmem [resolvable:$true] %s99_s29 }
  0x22   :  { %s8112_s18 = scalar_lea.hbm %s9627_s5, 2048 }
  0x23   :  { %p8113_p8 = scmp.ne.s32.totalorder %s9627_s5, %s8112_s18  ;;  %p8116_p9 = scmp.lt.u32.totalorder %s8112_s18, %s9627_s5 }
  0x25   :  { %p8118_p10 = pnand %p8116_p9, %p8113_p8 }
  0x27   :  { %8121 = shalt.err (!%p8118_p10)
}
  0x28   :  { %s8122_s25 = scalar_lea.vmem %s74_s26, 2048  ;;  %p8127_p12 = scmp.lt.s32.totalorder %s74_s26, %s74_s26 }
  0x29   :  { %p8123_p11 = scmp.ne.s32.totalorder %s74_s26, %s8122_s25  ;;  %p8128_p13 = scmp.lt.s32.totalorder %s8122_s25, %s8122_s25 }
  0x2b   :  { %p8129_p0 = por %p8128_p13, %p8127_p12 }
  0x2d   :  { %p8130_p1 = pnand %p8129_p0, %p8123_p11 }
  0x2f   :  { %8133 = shalt.err (!%p8130_p1)
}
  0x30   :  { %79 = dma.hbm_to_vmem [thread:$0]  %s9627_s5, 2048, %s74_s26, [#allocation13], %s8323_s20, %s8323_s20, %s8324_s21  }
  0x31   :  { %s8134_s17 = scalar_lea.hbm %s9630_s8, 2048 }
  0x32   :  { %p8135_p2 = scmp.ne.s32.totalorder %s9630_s8, %s8134_s17  ;;  %p8138_p3 = scmp.lt.u32.totalorder %s8134_s17, %s9630_s8 }
  0x34   :  { %p8140_p4 = pnand %p8138_p3, %p8135_p2 }
  0x36   :  { %8143 = shalt.err (!%p8140_p4)
}
  0x37   :  { %s8144_s18 = scalar_lea.vmem %s100_s29, 2048  ;;  %p8149_p6 = scmp.lt.s32.totalorder %s100_s29, %s100_s29 }
  0x38   :  { %p8145_p5 = scmp.ne.s32.totalorder %s100_s29, %s8144_s18  ;;  %p8150_p7 = scmp.lt.s32.totalorder %s8144_s18, %s8144_s18 }
  0x3a   :  { %p8151_p8 = por %p8150_p7, %p8149_p6 }
  0x3c   :  { %p8152_p9 = pnand %p8151_p8, %p8145_p5 }
  0x3e   :  { %8155 = shalt.err (!%p8152_p9)
}
  0x3f   :  { %105 = dma.hbm_to_vmem [thread:$0]  %s9630_s8, 2048, %s100_s29, [#allocation16], %s8323_s20, %s8323_s20, %s8324_s21  }
  0x40   :  { %s8327_s19 = smov [#allocation18]   ;;  %s8328_s25 = smov [#allocation6]  }
  0x41   :  { %s125_s1 = sshll.u32 %s8327_s19, 4  ;;  %s33_s28 = sshll.u32 %s8328_s25, 4  ;;  %s126_s1 = int_to_ptr.vmem [resolvable:$true] %s125_s1  ;;  %s34_s28 = int_to_ptr.vmem [resolvable:$true] %s33_s28 }
  0x42   :  { %s8156_s16 = scalar_lea.hbm %s9633_s11, 2048 }
  0x43   :  { %p8157_p10 = scmp.ne.s32.totalorder %s9633_s11, %s8156_s16  ;;  %p8160_p11 = scmp.lt.u32.totalorder %s8156_s16, %s9633_s11 }
  0x45   :  { %p8162_p12 = pnand %p8160_p11, %p8157_p10 }
  0x47   :  { %8165 = shalt.err (!%p8162_p12)
}
  0x48   :  { %s8166_s8 = scalar_lea.vmem %s126_s1, 2048  ;;  %p8171_p0 = scmp.lt.s32.totalorder %s126_s1, %s126_s1 }
  0x49   :  { %p8167_p13 = scmp.ne.s32.totalorder %s126_s1, %s8166_s8  ;;  %p8172_p1 = scmp.lt.s32.totalorder %s8166_s8, %s8166_s8 }
  0x4b   :  { %p8173_p2 = por %p8172_p1, %p8171_p0 }
  0x4d   :  { %p8174_p3 = pnand %p8173_p2, %p8167_p13 }
  0x4f   :  { %8177 = shalt.err (!%p8174_p3)
}
  0x50   :  { %131 = dma.hbm_to_vmem [thread:$0]  %s9633_s11, 2048, %s126_s1, [#allocation19], %s8323_s20, %s8323_s20, %s8324_s21  }
  0x51   :  { %s9648_s26 = sld [smem:[#allocation28_spill]] }
  0x57   :  { %s8178_s19 = scalar_lea.hbm %s9648_s26, 256 }
  0x58   :  { %p8179_p4 = scmp.ne.s32.totalorder %s9648_s26, %s8178_s19  ;;  %p8182_p5 = scmp.lt.u32.totalorder %s8178_s19, %s9648_s26 }
  0x5a   :  { %p8184_p6 = pnand %p8182_p5, %p8179_p4 }
  0x5c   :  { %8187 = shalt.err (!%p8184_p6)
}
  0x5d   :  { %s8188_s17 = scalar_lea.vmem %s34_s28, 256  ;;  %p8193_p8 = scmp.lt.s32.totalorder %s34_s28, %s34_s28 }
  0x5e   :  { %p8189_p7 = scmp.ne.s32.totalorder %s34_s28, %s8188_s17  ;;  %p8194_p9 = scmp.lt.s32.totalorder %s8188_s17, %s8188_s17 }
  0x60   :  { %p8195_p10 = por %p8194_p9, %p8193_p8 }
  0x62   :  { %p8196_p11 = pnand %p8195_p10, %p8189_p7 }
  0x64   :  { %8199 = shalt.err (!%p8196_p11)
}
  0x65   :  { %s8329_s11 = smov 32   ;;  %s8330_s1 = smov 2  }
  0x66   :  { %39 = dma.hbm_to_vmem [thread:$0]  %s9648_s26, 256, %s34_s28, [#allocation7], %s8329_s11, %s8329_s11, %s8330_s1  }
  0x67   :  { %s8331_s0 = smov [#allocation11]   ;;  %s8332_s29 = smov [#allocation14]  }
  0x68   :  { %s61_s8 = sshll.u32 %s8331_s0, 4  ;;  %s87_s30 = sshll.u32 %s8332_s29, 4  ;;  %s62_s8 = int_to_ptr.vmem [resolvable:$true] %s61_s8  ;;  %s88_s30 = int_to_ptr.vmem [resolvable:$true] %s87_s30 }
  0x69   :  { %s8200_s19 = scalar_lea.hbm %s9626_s4, 512 }
  0x6a   :  { %p8201_p12 = scmp.ne.s32.totalorder %s9626_s4, %s8200_s19  ;;  %p8204_p13 = scmp.lt.u32.totalorder %s8200_s19, %s9626_s4 }
  0x6c   :  { %p8206_p0 = pnand %p8204_p13, %p8201_p12 }
  0x6e   :  { %8209 = shalt.err (!%p8206_p0)
}
  0x6f   :  { %s8210_s28 = scalar_lea.vmem %s62_s8, 512  ;;  %p8215_p2 = scmp.lt.s32.totalorder %s62_s8, %s62_s8 }
  0x70   :  { %p8211_p1 = scmp.ne.s32.totalorder %s62_s8, %s8210_s28  ;;  %p8216_p3 = scmp.lt.s32.totalorder %s8210_s28, %s8210_s28 }
  0x72   :  { %p8217_p4 = por %p8216_p3, %p8215_p2 }
  0x74   :  { %p8218_p5 = pnand %p8217_p4, %p8211_p1 }
  0x76   :  { %8221 = shalt.err (!%p8218_p5)
}
  0x77   :  { %67 = dma.hbm_to_vmem [thread:$0]  %s9626_s4, 512, %s62_s8, [#allocation10], %s8323_s20, %s8323_s20, %s8324_s21  }
  0x78   :  { %s8222_s24 = scalar_lea.hbm %s9629_s7, 2048 }
  0x79   :  { %p8223_p6 = scmp.ne.s32.totalorder %s9629_s7, %s8222_s24  ;;  %p8226_p7 = scmp.lt.u32.totalorder %s8222_s24, %s9629_s7 }
  0x7b   :  { %p8228_p8 = pnand %p8226_p7, %p8223_p6 }
  0x7d   :  { %8231 = shalt.err (!%p8228_p8)
}
  0x7e   :  { %s8232_s5 = scalar_lea.vmem %s88_s30, 2048  ;;  %p8237_p10 = scmp.lt.s32.totalorder %s88_s30, %s88_s30 }
  0x7f   :  { %p8233_p9 = scmp.ne.s32.totalorder %s88_s30, %s8232_s5  ;;  %p8238_p11 = scmp.lt.s32.totalorder %s8232_s5, %s8232_s5 }
  0x81   :  { %p8239_p12 = por %p8238_p11, %p8237_p10 }
  0x83   :  { %p8240_p13 = pnand %p8239_p12, %p8233_p9 }
  0x85   :  { %8243 = shalt.err (!%p8240_p13)
}
  0x86   :  { %93 = dma.hbm_to_vmem [thread:$0]  %s9629_s7, 2048, %s88_s30, [#allocation13], %s8323_s20, %s8323_s20, %s8324_s21  }
  0x87   :  { %s8333_s19 = smov [#allocation17]   ;;  %s8334_s22 = smov [#allocation20]  }
  0x88   :  { %s111_s25 = sshll.u32 %s8333_s19, 4  ;;  %s137_s23 = sshll.u32 %s8334_s22, 4  ;;  %s112_s25 = int_to_ptr.vmem [resolvable:$true] %s111_s25  ;;  %s138_s23 = int_to_ptr.vmem [resolvable:$true] %s137_s23 }
  0x89   :  { %s8244_s26 = scalar_lea.hbm %s9631_s9, 2048 }
  0x8a   :  { %p8245_p0 = scmp.ne.s32.totalorder %s9631_s9, %s8244_s26  ;;  %p8248_p1 = scmp.lt.u32.totalorder %s8244_s26, %s9631_s9 }
  0x8c   :  { %p8250_p2 = pnand %p8248_p1, %p8245_p0 }
  0x8e   :  { %8253 = shalt.err (!%p8250_p2)
}
  0x8f   :  { %s8254_s7 = scalar_lea.vmem %s112_s25, 2048  ;;  %p8259_p4 = scmp.lt.s32.totalorder %s112_s25, %s112_s25 }
  0x90   :  { %p8255_p3 = scmp.ne.s32.totalorder %s112_s25, %s8254_s7  ;;  %p8260_p5 = scmp.lt.s32.totalorder %s8254_s7, %s8254_s7 }
  0x92   :  { %p8261_p6 = por %p8260_p5, %p8259_p4 }
  0x94   :  { %p8262_p7 = pnand %p8261_p6, %p8255_p3 }
  0x96   :  { %8265 = shalt.err (!%p8262_p7)
}
  0x97   :  { %117 = dma.hbm_to_vmem [thread:$0]  %s9631_s9, 2048, %s112_s25, [#allocation16], %s8323_s20, %s8323_s20, %s8324_s21  }
  0x98   :  { %s8266_s18 = scalar_lea.hbm %s9634_s12, 2048 }
  0x99   :  { %p8267_p8 = scmp.ne.s32.totalorder %s9634_s12, %s8266_s18  ;;  %p8270_p9 = scmp.lt.u32.totalorder %s8266_s18, %s9634_s12 }
  0x9b   :  { %p8272_p10 = pnand %p8270_p9, %p8267_p8 }
  0x9d   :  { %8275 = shalt.err (!%p8272_p10)
}
  0x9e   :  { %s8276_s22 = scalar_lea.vmem %s138_s23, 2048  ;;  %p8281_p12 = scmp.lt.s32.totalorder %s138_s23, %s138_s23 }
  0x9f   :  { %p8277_p11 = scmp.ne.s32.totalorder %s138_s23, %s8276_s22  ;;  %p8282_p13 = scmp.lt.s32.totalorder %s8276_s22, %s8276_s22 }
  0xa1   :  { %p8283_p0 = por %p8282_p13, %p8281_p12 }
  0xa3   :  { %p8284_p1 = pnand %p8283_p0, %p8277_p11 }
  0xa5   :  { %8287 = shalt.err (!%p8284_p1)
}
  0xa6   :  { %143 = dma.hbm_to_vmem [thread:$0]  %s9634_s12, 2048, %s138_s23, [#allocation19], %s8323_s20, %s8323_s20, %s8324_s21  }
  0xa7   :  { %8310 = dma.done.wait [#allocation7], 256  }
  0xa8   :  { %8311 = vsyncadd [#allocation7], 4294967040 }
  0xa9   :  { %8312 = dma.done.wait [#allocation10], 1024  }
  0xaa   :  { %8313 = vsyncadd [#allocation10], 4294966272 }
  0xab   :  { %8314 = dma.done.wait [#allocation13], 4096  }
  0xac   :  { %8315 = vsyncadd [#allocation13], 4294963200 }
  0xad   :  { %8316 = dma.done.wait [#allocation16], 4096  }
  0xae   :  { %8317 = vsyncadd [#allocation16], 4294963200 }
  0xaf   :  { %8318 = dma.done.wait [#allocation19], 4096  }
  0xb0   :  { %8319 = vsyncadd [#allocation19], 4294963200  ;;  %vm179_vm0 = vcmask 517120   ;;  %v8335_v0 = vmov 0.0   ;;  %v190_v1 = vld [vmem:[%s9624_s2 + $0x8] sm:$0xff]  ;;  %v192_v2 = vld [vmem:[%s9624_s2 + $0x18] sm:$0xff]  ;;  %v357_v34 = vlaneseq }
  0xb1   :  { %273 = vmatprep.mubr.f32.mxu0 %v8335_v0  ;;  %180 = vst.msk [vmem:[#allocation4] sm:$0x3] %vm179_vm0, %v8335_v0  ;;  %181 = vst.msk [vmem:[#allocation5] sm:$0x3] %vm179_vm0, %v8335_v0  ;;  %497 = vmatprep.mubr.f32.mxu1 %v8335_v0  ;;  %v189_v3 = vld [vmem:[%s9624_s2] sm:$0xff]  ;;  %v8577_v4 = vpack.c.bf16 %v192_v2, %v190_v1  ;;  %v191_v5 = vld [vmem:[%s9624_s2 + $0x10] sm:$0xff] }
  0xb2   :  { %v194_v6 = vld [vmem:[%s9624_s2 + $0x28] sm:$0xff]  ;;  %v196_v7 = vld [vmem:[%s9624_s2 + $0x38] sm:$0xff]  ;;  %v8588_v8 = vpack.c.bf16 %v191_v5, %v189_v3  ;;  %v193_v10 = vld [vmem:[%s9624_s2 + $0x20] sm:$0xff]  ;;  %s8336_s16 = smov 64   ;;  %vm205_vm1 = vcmask 523264   ;;  %vm280_vm2 = vcmask 130048  }
  0xb3   :  { %v8590_v9 = vpack.c.bf16 %v196_v7, %v194_v6  ;;  %v195_v11 = vld [vmem:[%s9624_s2 + $0x30] sm:$0xff]  ;;  %v198_v12 = vld [vmem:[%s9624_s2 + $0x48] sm:$0xff]  ;;  %6947 = vmatprep.subr.bf16.mxu0 %v8577_v4  ;;  %v200_v13 = vld [vmem:[%s9624_s2 + $0x58] sm:$0xff]  ;;  %6967 = vmatprep.subr.bf16.mxu1 %v8577_v4  ;;  %v358_v35 = vshrl.u32 %v357_v34, 7  ;;  %vm8338_vm3 = vmmov 0   ;;  %s9649_s19 = sld [smem:[#allocation30_spill]] }
  0xb4   :  { %6949 = vmatpush1.bf16.msra.mxu0 %v8588_v8  ;;  %v8607_v14 = vpack.c.bf16 %v195_v11, %v193_v10  ;;  %6969 = vmatpush1.bf16.msra.mxu1 %v8588_v8  ;;  %v8611_v15 = vpack.c.bf16 %v200_v13, %v198_v12  ;;  %v197_v16 = vld [vmem:[%s9624_s2 + $0x40] sm:$0xff]  ;;  %v199_v17 = vld [vmem:[%s9624_s2 + $0x50] sm:$0xff]  ;;  %v202_v18 = vld [vmem:[%s9624_s2 + $0x68] sm:$0xff]  ;;  %s8339_s22 = smov [#allocation21]   ;;  %vm6758_vm4 = vcmask 9216  }
  0xb5   :  { %6951 = vmatprep.subr.bf16.mxu0 %v8590_v9  ;;  %6971 = vmatprep.subr.bf16.mxu1 %v8590_v9  ;;  %v204_v19 = vld [vmem:[%s9624_s2 + $0x78] sm:$0xff]  ;;  %v8627_v21 = vpack.c.bf16 %v199_v17, %v197_v16  ;;  %v201_v23 = vld [vmem:[%s9624_s2 + $0x60] sm:$0xff]  ;;  %v203_v24 = vld [vmem:[%s9624_s2 + $0x70] sm:$0xff]  ;;  %v8669_v36 = vsub.s32 0, %v358_v35  ;;  %v8675_v43 = vsub.s32 1, %v358_v35  ;;  %s6766_s9 = sshll.u32 %s8339_s22, 4  ;;  %s6767_s9 = int_to_ptr.vmem [resolvable:$true] %s6766_s9 }
  0xb6   :  { %v8631_v22 = vpack.c.bf16 %v204_v19, %v202_v18  ;;  %v184_v25 = vld [vmem:[#allocation9 + $0x8] sm:$0xff]  ;;  %v186_v26 = vld [vmem:[#allocation9 + $0x18] sm:$0xff]  ;;  %v8642_v27 = vpack.c.bf16 %v203_v24, %v201_v23  ;;  %v183_v29 = vld [vmem:[#allocation9] sm:$0xff]  ;;  %p8293_p3 = scmp.lt.s32.totalorder %s6767_s9, %s6767_s9 }
  0xb7   :  { %v8645_v28 = vpack.c.bf16 %v186_v26, %v184_v25  ;;  %v185_v30 = vld [vmem:[#allocation9 + $0x10] sm:$0xff]  ;;  %v355_v37 = vld [vmem:[%s9625_s3] sm:$0x3] }
  0xb8   :  { %v188_v20 = vld [vmem:[#allocation5] sm:$0x3]  ;;  %6953 = vmatpush1.bf16.msra.mxu0 %v8607_v14  ;;  %6973 = vmatpush1.bf16.msra.mxu1 %v8607_v14  ;;  %v187_v31 = vld [vmem:[#allocation4] sm:$0x3]  ;;  %v8650_v32 = vpack.c.bf16 %v185_v30, %v183_v29  ;;  %v182_v33 = vld [vmem:[#allocation6] sm:$0x3]  ;;  %v360_v38 = vrot.slane %v355_v37, %v8669_v36  ;;  %v364_v44 = vrot.slane %v355_v37, %v8675_v43 }
  0xb9   :  { %383 = vrot.lane.b32.xlu0 %v188_v20, %s8336_s16  ;;  %6955 = vmatprep.subr.bf16.mxu0 %v8611_v15  ;;  %v407_v2 = vld [vmem:[#allocation6 + $0x2] sm:$0x3]  ;;  %v578_v3 = vld [vmem:[%s9625_s3] sm:$0x3] }
  0xba   :  { %6975 = vmatprep.subr.bf16.mxu1 %v8611_v15  ;;  %v583_v5 = vrot.slane %v578_v3, %v8669_v36  ;;  %v587_v12 = vrot.slane %v578_v3, %v8675_v43 }
  0xbc   :  { %6957 = vmatpush1.bf16.msra.mxu0 %v8627_v21  ;;  %6977 = vmatpush1.bf16.msra.mxu1 %v8627_v21 }
  0xbd   :  { %6959 = vmatprep.subr.bf16.mxu0 %v8631_v22  ;;  %6979 = vmatprep.subr.bf16.mxu1 %v8631_v22 }
  0xc0   :  { %6961 = vmatpush1.bf16.msra.mxu0 %v8642_v27  ;;  %6981 = vmatpush1.bf16.msra.mxu1 %v8642_v27 }
  0xc1   :  { %6963 = vmatprep.subr.bf16.mxu0 %v8645_v28  ;;  %6983 = vmatprep.subr.bf16.mxu1 %v8645_v28 }
  0xc3   :  { %6779 = vmatmul.mubr.msk.f32.vlgmr.msra.gmra.mrb[0].mxu0 %vm205_vm1, %v187_v31 }
  0xc4   :  { %6965 = vmatpush1.bf16.msra.mxu0 %v8650_v32  ;;  %348 = vmatprep.mubr.f32.mxu0 %v8335_v0 }
  0xc5   :  { %6987 = vmatprep.subr.bf16.mxu0 %v8577_v4 }
  0xcb   :  { %6780 = vmatmul.mubr.msk.f32.vlgmr.msra.gmra.mrb[0].mxu0 %vm280_vm2, %v182_v33 }
  0xcc   :  { %6989 = vmatpush1.bf16.msra.mxu0 %v8588_v8  ;;  %721 = vmatprep.mubr.f32.mxu0 %v8335_v0 }
  0xcd   :  { %6991 = vmatprep.subr.bf16.mxu0 %v8590_v9 }
  0xd0   :  { %6993 = vmatpush1.bf16.msra.mxu0 %v8607_v14 }
  0xd1   :  { %6995 = vmatprep.subr.bf16.mxu0 %v8611_v15 }
  0xd4   :  { %6997 = vmatpush1.bf16.msra.mxu0 %v8627_v21 }
  0xd5   :  { %6999 = vmatprep.subr.bf16.mxu0 %v8631_v22 }
  0xd8   :  { %7001 = vmatpush1.bf16.msra.mxu0 %v8642_v27 }
  0xd9   :  { %7003 = vmatprep.subr.bf16.mxu0 %v8645_v28 }
 0x12b   :  { %v384_v53 = vpop.permute.xlu0 %383 }
 0x19e   :  { %v350_v39 = vpop.f32.mrb[0].mxu0 }
 0x19f   :  { %v367_v40 = vadd.f32 %v360_v38, %v350_v39  ;;  %v352_v41 = vpop.f32.mrb[1].mxu0 }
 0x1a0   :  { %v368_v45 = vadd.f32 %v364_v44, %v352_v41  ;;  %v631_v41 = vld [vmem:[#allocation6 + $0x4] sm:$0x3] }
 0x1a1   :  { %v6781_v42 = vmul.f32 -1.442695, %v367_v40 }
 0x1a2   :  { %v6782_v51 = vmul.f32 -1.442695, %v368_v45 }
 0x1a3   :  { %7790 = vpow2.f32 %v6781_v42  ;;  %v802_v42 = vld [vmem:[%s9625_s3] sm:$0x3] }
 0x1a4   :  { %7792 = vtanh.f32 %v368_v45  ;;  %v807_v44 = vrot.slane %v802_v42, %v8669_v36 }
 0x1ad   :  { %v7791_v46 = vpop.eup %7790 }
 0x1ae   :  { %v372_v47 = vadd.f32 1.0, %v7791_v46  ;;  %v7793_v48 = vpop.eup %7792 }
 0x1b0   :  { %7794 = vrcp.f32 %v372_v47 }
 0x1b1   :  { %7796 = vpow2.f32 %v6782_v51 }
 0x1ba   :  { %v7795_v49 = vpop.eup %7794 }
 0x1bb   :  { %v387_v50 = vmul.f32 %v7795_v49, %v7793_v48  ;;  %v7797_v52 = vpop.eup %7796  ;;  %v386_v55 = vmul.f32 %v7795_v49, %v384_v53  ;;  %v811_v49 = vrot.slane %v802_v42, %v8675_v43 }
 0x1bc   :  { %v379_v54 = vadd.f32 1.0, %v7797_v52 }
 0x1bd   :  { %389 = vrot.lane.b32.xlu0 %v387_v50, %s8336_s16 }
 0x1be   :  { %7798 = vrcp.f32 %v379_v54 }
 0x1c8   :  { %v7799_v58 = vpop.eup %7798 }
 0x22f   :  { %v390_v56 = vpop.permute.xlu0 %389 }
 0x230   :  { %v392_v57 = vadd.f32 %v390_v56, %v386_v55 }
 0x232   :  { %7800 = vtanh.f32 %v392_v57 }
 0x23c   :  { %v7801_v59 = vpop.eup %7800 }
 0x23d   :  { %v394_v60 = vmul.f32 %v7801_v59, %v7799_v58 }
 0x23f   :  { %396 = vrot.lane.b32.xlu1 %v394_v60, %s8336_s16 }
 0x243   :  { %402 = vrot.lane.b32.xlu1 %v392_v57, %s8336_s16 }
 0x2b1   :  { %v397_v61 = vpop.permute.xlu1 %396 }
 0x2b2   :  { %399 = vst.msk [vmem:[#allocation2] sm:$0x3] %vm179_vm0, %v397_v61  ;;  %400 = vst.msk [vmem:[#allocation4] sm:$0x3] %vm179_vm0, %v397_v61 }
 0x2b5   :  { %v403_v62 = vpop.permute.xlu1 %402 }
 0x2b6   :  { %405 = vst.msk [vmem:[#allocation5] sm:$0x3] %vm179_vm0, %v403_v62 }
 0x2b9   :  { %v412_v63 = vld [vmem:[#allocation4] sm:$0x3] }
 0x2ba   :  { %6783 = vmatmul.mubr.msk.f32.vlgmr.msra.gmra.mrb[0].mxu1 %vm205_vm1, %v412_v63 }
 0x2bb   :  { %6985 = vmatpush1.bf16.msra.mxu1 %v8650_v32  ;;  %571 = vmatprep.mubr.f32.mxu1 %v8335_v0 }
 0x2bc   :  { %7007 = vmatprep.subr.bf16.mxu1 %v8577_v4 }
 0x2bd   :  { %v413_v1 = vld [vmem:[#allocation5] sm:$0x3] }
 0x2be   :  { %606 = vrot.lane.b32.xlu0 %v413_v1, %s8336_s16 }
 0x2c2   :  { %6784 = vmatmul.mubr.msk.f32.vlgmr.msra.gmra.mrb[0].mxu1 %vm280_vm2, %v407_v2 }
 0x2c3   :  { %7009 = vmatpush1.bf16.msra.mxu1 %v8588_v8  ;;  %945 = vmatprep.mubr.f32.mxu1 %v8335_v0 }
 0x2c4   :  { %7011 = vmatprep.subr.bf16.mxu1 %v8590_v9 }
 0x2c7   :  { %7013 = vmatpush1.bf16.msra.mxu1 %v8607_v14 }
 0x2c8   :  { %7015 = vmatprep.subr.bf16.mxu1 %v8611_v15 }
 0x2cb   :  { %7017 = vmatpush1.bf16.msra.mxu1 %v8627_v21 }
 0x2cc   :  { %7019 = vmatprep.subr.bf16.mxu1 %v8631_v22 }
 0x2cf   :  { %7021 = vmatpush1.bf16.msra.mxu1 %v8642_v27 }
 0x2d0   :  { %7023 = vmatprep.subr.bf16.mxu1 %v8645_v28 }
 0x330   :  { %v607_v25 = vpop.permute.xlu0 %606 }
 0x395   :  { %v573_v6 = vpop.f32.mrb[0].mxu1 }
 0x396   :  { %v590_v7 = vadd.f32 %v583_v5, %v573_v6  ;;  %v575_v10 = vpop.f32.mrb[1].mxu1 }
 0x397   :  { %v591_v13 = vadd.f32 %v587_v12, %v575_v10  ;;  %v855_v10 = vld [vmem:[#allocation6 + $0x6] sm:$0x3] }
 0x398   :  { %v6785_v11 = vmul.f32 -1.442695, %v590_v7 }
 0x399   :  { %v6786_v23 = vmul.f32 -1.442695, %v591_v13 }
 0x39a   :  { %7802 = vpow2.f32 %v6785_v11  ;;  %v1026_v11 = vld [vmem:[%s9625_s3] sm:$0x3] }
 0x39b   :  { %7804 = vtanh.f32 %v591_v13  ;;  %v1031_v12 = vrot.slane %v1026_v11, %v8669_v36 }
 0x3a4   :  { %v7803_v16 = vpop.eup %7802 }
 0x3a5   :  { %v595_v17 = vadd.f32 1.0, %v7803_v16  ;;  %v7805_v18 = vpop.eup %7804 }
 0x3a7   :  { %7806 = vrcp.f32 %v595_v17 }
 0x3a8   :  { %7808 = vpow2.f32 %v6786_v23 }
 0x3b1   :  { %v7807_v19 = vpop.eup %7806 }
 0x3b2   :  { %v610_v20 = vmul.f32 %v7807_v19, %v7805_v18  ;;  %v7809_v24 = vpop.eup %7808  ;;  %v609_v29 = vmul.f32 %v7807_v19, %v607_v25  ;;  %v1035_v19 = vrot.slane %v1026_v11, %v8675_v43 }
 0x3b3   :  { %v602_v26 = vadd.f32 1.0, %v7809_v24 }
 0x3b4   :  { %612 = vrot.lane.b32.xlu1 %v610_v20, %s8336_s16 }
 0x3b5   :  { %7810 = vrcp.f32 %v602_v26 }
 0x3bf   :  { %v7811_v33 = vpop.eup %7810 }
 0x426   :  { %v613_v30 = vpop.permute.xlu1 %612 }
 0x427   :  { %v615_v31 = vadd.f32 %v613_v30, %v609_v29 }
 0x429   :  { %7812 = vtanh.f32 %v615_v31  ;;  %626 = vrot.lane.b32.xlu1 %v615_v31, %s8336_s16 }
 0x433   :  { %v7813_v34 = vpop.eup %7812 }
 0x434   :  { %v617_v35 = vmul.f32 %v7813_v34, %v7811_v33 }
 0x436   :  { %619 = vrot.lane.b32.xlu0 %v617_v35, %s8336_s16 }
 0x49b   :  { %v627_v37 = vpop.permute.xlu1 %626 }
 0x49c   :  { %629 = vst.msk [vmem:[#allocation5] sm:$0x3] %vm179_vm0, %v627_v37 }
 0x4a3   :  { %v637_v38 = vld [vmem:[#allocation5] sm:$0x3] }
 0x4a4   :  { %830 = vrot.lane.b32.xlu0 %v637_v38, %s8336_s16 }
 0x4a8   :  { %v620_v39 = vpop.permute.xlu0 %619 }
 0x4a9   :  { %623 = vst.msk [vmem:[#allocation2 + $0x2] sm:$0x3] %vm179_vm0, %v620_v39  ;;  %624 = vst.msk [vmem:[#allocation4] sm:$0x3] %vm179_vm0, %v620_v39 }
 0x4b0   :  { %v636_v40 = vld [vmem:[#allocation4] sm:$0x3] }
 0x4b1   :  { %6787 = vmatmul.mubr.msk.f32.vlgmr.msra.gmra.mrb[2].mxu0 %vm205_vm1, %v636_v40 }
 0x4b2   :  { %7005 = vmatpush1.bf16.msra.mxu0 %v8650_v32  ;;  %795 = vmatprep.mubr.f32.mxu0 %v8335_v0 }
 0x4b3   :  { %7027 = vmatprep.subr.bf16.mxu0 %v8577_v4 }
 0x4b9   :  { %6788 = vmatmul.mubr.msk.f32.vlgmr.msra.gmra.mrb[2].mxu0 %vm280_vm2, %v631_v41 }
 0x4ba   :  { %7029 = vmatpush1.bf16.msra.mxu0 %v8588_v8  ;;  %1169 = vmatprep.mubr.f32.mxu0 %v8335_v0 }
 0x4bb   :  { %7031 = vmatprep.subr.bf16.mxu0 %v8590_v9 }
 0x4be   :  { %7033 = vmatpush1.bf16.msra.mxu0 %v8607_v14 }
 0x4bf   :  { %7035 = vmatprep.subr.bf16.mxu0 %v8611_v15 }
 0x4c2   :  { %7037 = vmatpush1.bf16.msra.mxu0 %v8627_v21 }
 0x4c3   :  { %7039 = vmatprep.subr.bf16.mxu0 %v8631_v22 }
 0x4c6   :  { %7041 = vmatpush1.bf16.msra.mxu0 %v8642_v27 }
 0x4c7   :  { %7043 = vmatprep.subr.bf16.mxu0 %v8645_v28 }
 0x516   :  { %v831_v58 = vpop.permute.xlu0 %830 }
 0x58c   :  { %v797_v45 = vpop.f32.mrb[2].mxu0 }
 0x58d   :  { %v814_v46 = vadd.f32 %v807_v44, %v797_v45  ;;  %v799_v47 = vpop.f32.mrb[3].mxu0 }
 0x58e   :  { %v815_v50 = vadd.f32 %v811_v49, %v799_v47  ;;  %v1079_v47 = vld [vmem:[#allocation6 + $0x8] sm:$0x3] }
 0x58f   :  { %v6789_v48 = vmul.f32 -1.442695, %v814_v46 }
 0x590   :  { %v6790_v56 = vmul.f32 -1.442695, %v815_v50 }
 0x591   :  { %7814 = vpow2.f32 %v6789_v48 }
 0x592   :  { %7816 = vtanh.f32 %v815_v50 }
 0x59b   :  { %v7815_v51 = vpop.eup %7814 }
 0x59c   :  { %v819_v52 = vadd.f32 1.0, %v7815_v51  ;;  %v7817_v53 = vpop.eup %7816 }
 0x59e   :  { %7818 = vrcp.f32 %v819_v52 }
 0x59f   :  { %7820 = vpow2.f32 %v6790_v56 }
 0x5a8   :  { %v7819_v54 = vpop.eup %7818 }
 0x5a9   :  { %v834_v55 = vmul.f32 %v7819_v54, %v7817_v53  ;;  %v7821_v57 = vpop.eup %7820  ;;  %v833_v60 = vmul.f32 %v7819_v54, %v831_v58 }
 0x5aa   :  { %v826_v59 = vadd.f32 1.0, %v7821_v57 }
 0x5ab   :  { %836 = vrot.lane.b32.xlu1 %v834_v55, %s8336_s16 }
 0x5ac   :  { %7822 = vrcp.f32 %v826_v59 }
 0x5b6   :  { %v7823_v63 = vpop.eup %7822 }
 0x61d   :  { %v837_v61 = vpop.permute.xlu1 %836 }
 0x61e   :  { %v839_v62 = vadd.f32 %v837_v61, %v833_v60 }
 0x620   :  { %7824 = vtanh.f32 %v839_v62  ;;  %850 = vrot.lane.b32.xlu1 %v839_v62, %s8336_s16 }
 0x62a   :  { %v7825_v1 = vpop.eup %7824 }
 0x62b   :  { %v841_v2 = vmul.f32 %v7825_v1, %v7823_v63 }
 0x62d   :  { %843 = vrot.lane.b32.xlu0 %v841_v2, %s8336_s16 }
 0x692   :  { %v851_v3 = vpop.permute.xlu1 %850 }
 0x693   :  { %853 = vst.msk [vmem:[#allocation5] sm:$0x3] %vm179_vm0, %v851_v3  ;;  %v1303_v3 = vld [vmem:[#allocation6 + $0xa] sm:$0x3] }
 0x69a   :  { %v861_v5 = vld [vmem:[#allocation5] sm:$0x3] }
 0x69b   :  { %1054 = vrot.lane.b32.xlu0 %v861_v5, %s8336_s16  ;;  %v1474_v5 = vld [vmem:[%s9625_s3] sm:$0x3] }
 0x69f   :  { %v844_v6 = vpop.permute.xlu0 %843 }
 0x6a0   :  { %847 = vst.msk [vmem:[#allocation2 + $0x4] sm:$0x3] %vm179_vm0, %v844_v6  ;;  %848 = vst.msk [vmem:[#allocation4] sm:$0x3] %vm179_vm0, %v844_v6  ;;  %v1479_v6 = vrot.slane %v1474_v5, %v8669_v36 }
 0x6a7   :  { %v860_v7 = vld [vmem:[#allocation4] sm:$0x3] }
 0x6a8   :  { %6791 = vmatmul.mubr.msk.f32.vlgmr.msra.gmra.mrb[2].mxu1 %vm205_vm1, %v860_v7 }
 0x6a9   :  { %7025 = vmatpush1.bf16.msra.mxu1 %v8650_v32  ;;  %1019 = vmatprep.mubr.f32.mxu1 %v8335_v0 }
 0x6aa   :  { %7047 = vmatprep.subr.bf16.mxu1 %v8577_v4 }
 0x6b0   :  { %6792 = vmatmul.mubr.msk.f32.vlgmr.msra.gmra.mrb[2].mxu1 %vm280_vm2, %v855_v10 }
 0x6b1   :  { %7049 = vmatpush1.bf16.msra.mxu1 %v8588_v8  ;;  %1393 = vmatprep.mubr.f32.mxu1 %v8335_v0 }
 0x6b2   :  { %7051 = vmatprep.subr.bf16.mxu1 %v8590_v9 }
 0x6b5   :  { %7053 = vmatpush1.bf16.msra.mxu1 %v8607_v14 }
 0x6b6   :  { %7055 = vmatprep.subr.bf16.mxu1 %v8611_v15 }
 0x6b9   :  { %7057 = vmatpush1.bf16.msra.mxu1 %v8627_v21 }
 0x6ba   :  { %7059 = vmatprep.subr.bf16.mxu1 %v8631_v22 }
 0x6bd   :  { %7061 = vmatpush1.bf16.msra.mxu1 %v8642_v27 }
 0x6be   :  { %7063 = vmatprep.subr.bf16.mxu1 %v8645_v28 }
 0x70d   :  { %v1055_v33 = vpop.permute.xlu0 %1054 }
 0x783   :  { %v1021_v13 = vpop.f32.mrb[2].mxu1 }
 0x784   :  { %v1038_v16 = vadd.f32 %v1031_v12, %v1021_v13  ;;  %v1023_v17 = vpop.f32.mrb[3].mxu1  ;;  %v1483_v13 = vrot.slane %v1474_v5, %v8675_v43 }
 0x785   :  { %v1039_v20 = vadd.f32 %v1035_v19, %v1023_v17 }
 0x786   :  { %v6793_v18 = vmul.f32 -1.442695, %v1038_v16 }
 0x787   :  { %v6794_v30 = vmul.f32 -1.442695, %v1039_v20 }
 0x788   :  { %7826 = vpow2.f32 %v6793_v18 }
 0x789   :  { %7828 = vtanh.f32 %v1039_v20 }
 0x792   :  { %v7827_v23 = vpop.eup %7826 }
 0x793   :  { %v1043_v24 = vadd.f32 1.0, %v7827_v23  ;;  %v7829_v25 = vpop.eup %7828 }
 0x795   :  { %7830 = vrcp.f32 %v1043_v24 }
 0x796   :  { %7832 = vpow2.f32 %v6794_v30 }
 0x79f   :  { %v7831_v26 = vpop.eup %7830 }
 0x7a0   :  { %v1058_v29 = vmul.f32 %v7831_v26, %v7829_v25  ;;  %v7833_v31 = vpop.eup %7832  ;;  %v1057_v35 = vmul.f32 %v7831_v26, %v1055_v33 }
 0x7a1   :  { %v1050_v34 = vadd.f32 1.0, %v7833_v31 }
 0x7a2   :  { %1060 = vrot.lane.b32.xlu1 %v1058_v29, %s8336_s16 }
 0x7a3   :  { %7834 = vrcp.f32 %v1050_v34 }
 0x7ad   :  { %v7835_v39 = vpop.eup %7834 }
 0x814   :  { %v1061_v37 = vpop.permute.xlu1 %1060 }
 0x815   :  { %v1063_v38 = vadd.f32 %v1061_v37, %v1057_v35 }
 0x817   :  { %7836 = vtanh.f32 %v1063_v38  ;;  %1074 = vrot.lane.b32.xlu1 %v1063_v38, %s8336_s16 }
 0x821   :  { %v7837_v40 = vpop.eup %7836 }
 0x822   :  { %v1065_v41 = vmul.f32 %v7837_v40, %v7835_v39 }
 0x824   :  { %1067 = vrot.lane.b32.xlu0 %v1065_v41, %s8336_s16 }
 0x889   :  { %v1075_v42 = vpop.permute.xlu1 %1074 }
 0x88a   :  { %1077 = vst.msk [vmem:[#allocation5] sm:$0x3] %vm179_vm0, %v1075_v42  ;;  %v1527_v42 = vld [vmem:[#allocation6 + $0xc] sm:$0x3] }
 0x891   :  { %v1085_v44 = vld [vmem:[#allocation5] sm:$0x3] }
 0x892   :  { %1278 = vrot.lane.b32.xlu0 %v1085_v44, %s8336_s16  ;;  %v1698_v44 = vld [vmem:[%s9625_s3] sm:$0x3] }
 0x896   :  { %v1068_v45 = vpop.permute.xlu0 %1067 }
 0x897   :  { %1071 = vst.msk [vmem:[#allocation2 + $0x6] sm:$0x3] %vm179_vm0, %v1068_v45  ;;  %1072 = vst.msk [vmem:[#allocation4] sm:$0x3] %vm179_vm0, %v1068_v45  ;;  %v1703_v45 = vrot.slane %v1698_v44, %v8669_v36 }
 0x89e   :  { %v1084_v46 = vld [vmem:[#allocation4] sm:$0x3] }
 0x89f   :  { %6795 = vmatmul.mubr.msk.f32.vlgmr.msra.gmra.mrb[4].mxu0 %vm205_vm1, %v1084_v46 }
 0x8a0   :  { %7045 = vmatpush1.bf16.msra.mxu0 %v8650_v32  ;;  %1243 = vmatprep.mubr.f32.mxu0 %v8335_v0 }
 0x8a1   :  { %7067 = vmatprep.subr.bf16.mxu0 %v8577_v4  ;;  %v1250_v4 = vld [vmem:[%s9625_s3] sm:$0x3] }
 0x8a7   :  { %6796 = vmatmul.mubr.msk.f32.vlgmr.msra.gmra.mrb[4].mxu0 %vm280_vm2, %v1079_v47 }
 0x8a8   :  { %7069 = vmatpush1.bf16.msra.mxu0 %v8588_v8  ;;  %1617 = vmatprep.mubr.f32.mxu0 %v8335_v0  ;;  %v1255_v8 = vrot.slane %v1250_v4, %v8669_v36 }
 0x8a9   :  { %7071 = vmatprep.subr.bf16.mxu0 %v8590_v9 }
 0x8ac   :  { %7073 = vmatpush1.bf16.msra.mxu0 %v8607_v14 }
 0x8ad   :  { %7075 = vmatprep.subr.bf16.mxu0 %v8611_v15  ;;  %v1259_v15 = vrot.slane %v1250_v4, %v8675_v43 }
 0x8b0   :  { %7077 = vmatpush1.bf16.msra.mxu0 %v8627_v21 }
 0x8b1   :  { %7079 = vmatprep.subr.bf16.mxu0 %v8631_v22 }
 0x8b4   :  { %7081 = vmatpush1.bf16.msra.mxu0 %v8642_v27 }
 0x8b5   :  { %7083 = vmatprep.subr.bf16.mxu0 %v8645_v28 }
 0x904   :  { %v1279_v54 = vpop.permute.xlu0 %1278 }
 0x97a   :  { %v1245_v48 = vpop.f32.mrb[4].mxu0 }
 0x97b   :  { %v1262_v9 = vadd.f32 %v1255_v8, %v1245_v48  ;;  %v1247_v49 = vpop.f32.mrb[5].mxu0 }
 0x97c   :  { %v1263_v21 = vadd.f32 %v1259_v15, %v1247_v49 }
 0x97d   :  { %v6797_v14 = vmul.f32 -1.442695, %v1262_v9 }
 0x97e   :  { %v6798_v52 = vmul.f32 -1.442695, %v1263_v21 }
 0x97f   :  { %7838 = vpow2.f32 %v6797_v14 }
 0x980   :  { %7840 = vtanh.f32 %v1263_v21 }
 0x989   :  { %v7839_v50 = vpop.eup %7838 }
 0x98a   :  { %v1267_v22 = vadd.f32 1.0, %v7839_v50  ;;  %v7841_v27 = vpop.eup %7840 }
 0x98c   :  { %7842 = vrcp.f32 %v1267_v22  ;;  %v1759_v22 = vld [vmem:[%s9624_s2 + $0x8] sm:$0xff] }
 0x98d   :  { %7844 = vpow2.f32 %v6798_v52  ;;  %v1760_v52 = vld [vmem:[%s9624_s2 + $0x10] sm:$0xff] }
 0x996   :  { %v7843_v28 = vpop.eup %7842 }
 0x997   :  { %v1282_v51 = vmul.f32 %v7843_v28, %v7841_v27  ;;  %v7845_v53 = vpop.eup %7844  ;;  %v1281_v56 = vmul.f32 %v7843_v28, %v1279_v54  ;;  %v1761_v27 = vld [vmem:[%s9624_s2 + $0x18] sm:$0xff] }
 0x998   :  { %v1274_v55 = vadd.f32 1.0, %v7845_v53  ;;  %v7086_v28 = vpack.c.bf16 %v1761_v27, %v1759_v22  ;;  %v1985_v27 = vld [vmem:[#allocation12 + $0x10] sm:$0xff] }
 0x999   :  { %1284 = vrot.lane.b32.xlu1 %v1282_v51, %s8336_s16  ;;  %v1758_v51 = vld [vmem:[%s9624_s2] sm:$0xff] }
 0x99a   :  { %7846 = vrcp.f32 %v1274_v55  ;;  %v7088_v53 = vpack.c.bf16 %v1760_v52, %v1758_v51  ;;  %v1763_v55 = vld [vmem:[%s9624_s2 + $0x28] sm:$0xff] }
 0x99b   :  { %v1990_v51 = vld [vmem:[#allocation12 + $0x38] sm:$0xff] }
 0x9a4   :  { %v7847_v59 = vpop.eup %7846 }
 0xa0b   :  { %v1285_v57 = vpop.permute.xlu1 %1284 }
 0xa0c   :  { %v1287_v58 = vadd.f32 %v1285_v57, %v1281_v56  ;;  %v1765_v56 = vld [vmem:[%s9624_s2 + $0x38] sm:$0xff] }
 0xa0d   :  { %v7090_v57 = vpack.c.bf16 %v1765_v56, %v1763_v55  ;;  %v1989_v55 = vld [vmem:[#allocation12 + $0x30] sm:$0xff] }
 0xa0e   :  { %7848 = vtanh.f32 %v1287_v58  ;;  %1298 = vrot.lane.b32.xlu1 %v1287_v58, %s8336_s16  ;;  %v1762_v58 = vld [vmem:[%s9624_s2 + $0x20] sm:$0xff] }
 0xa18   :  { %v7849_v60 = vpop.eup %7848 }
 0xa19   :  { %v1289_v61 = vmul.f32 %v7849_v60, %v7847_v59  ;;  %v1764_v59 = vld [vmem:[%s9624_s2 + $0x30] sm:$0xff] }
 0xa1b   :  { %1291 = vrot.lane.b32.xlu0 %v1289_v61, %s8336_s16 }
 0xa80   :  { %v1299_v62 = vpop.permute.xlu1 %1298 }
 0xa81   :  { %1301 = vst.msk [vmem:[#allocation5] sm:$0x3] %vm179_vm0, %v1299_v62  ;;  %v7092_v62 = vpack.c.bf16 %v1764_v59, %v1762_v58 }
 0xa88   :  { %v1309_v63 = vld [vmem:[#allocation5] sm:$0x3] }
 0xa89   :  { %1502 = vrot.lane.b32.xlu0 %v1309_v63, %s8336_s16 }
 0xa8d   :  { %v1292_v1 = vpop.permute.xlu0 %1291 }
 0xa8e   :  { %1295 = vst.msk [vmem:[#allocation2 + $0x8] sm:$0x3] %vm179_vm0, %v1292_v1  ;;  %1296 = vst.msk [vmem:[#allocation4] sm:$0x3] %vm179_vm0, %v1292_v1 }
 0xa95   :  { %v1308_v2 = vld [vmem:[#allocation4] sm:$0x3] }
 0xa96   :  { %6799 = vmatmul.mubr.msk.f32.vlgmr.msra.gmra.mrb[4].mxu1 %vm205_vm1, %v1308_v2  ;;  %v1767_v2 = vld [vmem:[%s9624_s2 + $0x48] sm:$0xff] }
 0xa97   :  { %7065 = vmatpush1.bf16.msra.mxu1 %v8650_v32  ;;  %1467 = vmatprep.mubr.f32.mxu1 %v8335_v0 }
 0xa98   :  { %7087 = vmatprep.subr.bf16.mxu1 %v7086_v28  ;;  %v1988_v28 = vld [vmem:[#allocation12 + $0x28] sm:$0xff] }
 0xa9e   :  { %6800 = vmatmul.mubr.msk.f32.vlgmr.msra.gmra.mrb[4].mxu1 %vm280_vm2, %v1303_v3  ;;  %v1769_v3 = vld [vmem:[%s9624_s2 + $0x58] sm:$0xff] }
 0xa9f   :  { %1841 = vmatprep.mubr.f32.mxu1 %v8335_v0  ;;  %7089 = vmatpush1.bf16.msra.mxu1 %v7088_v53  ;;  %v8885_v53 = vpack.c.bf16 %v1990_v51, %v1988_v28 }
 0xaa0   :  { %7091 = vmatprep.subr.bf16.mxu1 %v7090_v57 }
 0xaa3   :  { %7093 = vmatpush1.bf16.msra.mxu1 %v7092_v62 }
 0xafb   :  { %v1503_v26 = vpop.permute.xlu0 %1502 }
 0xb71   :  { %v1469_v7 = vpop.f32.mrb[4].mxu1 }
 0xb72   :  { %v1486_v10 = vadd.f32 %v1479_v6, %v1469_v7  ;;  %v1471_v11 = vpop.f32.mrb[5].mxu1  ;;  %v7094_v6 = vpack.c.bf16 %v1769_v3, %v1767_v2  ;;  %v1766_v7 = vld [vmem:[%s9624_s2 + $0x40] sm:$0xff]  ;;  %v1991_v3 = vld [vmem:[#allocation12 + $0x40] sm:$0xff] }
 0xb73   :  { %v1487_v16 = vadd.f32 %v1483_v13, %v1471_v11  ;;  %v1773_v13 = vld [vmem:[%s9624_s2 + $0x78] sm:$0xff] }
 0xb74   :  { %v6801_v12 = vmul.f32 -1.442695, %v1486_v10  ;;  %v1768_v10 = vld [vmem:[%s9624_s2 + $0x50] sm:$0xff]  ;;  %7095 = vmatprep.subr.bf16.mxu1 %v7094_v6 }
 0xb75   :  { %v6802_v24 = vmul.f32 -1.442695, %v1487_v16  ;;  %v7096_v11 = vpack.c.bf16 %v1768_v10, %v1766_v7  ;;  %v1996_v7 = vld [vmem:[#allocation12 + $0x68] sm:$0xff]  ;;  %v1998_v10 = vld [vmem:[#allocation12 + $0x78] sm:$0xff] }
 0xb76   :  { %7850 = vpow2.f32 %v6801_v12  ;;  %v1771_v12 = vld [vmem:[%s9624_s2 + $0x68] sm:$0xff] }
 0xb77   :  { %7852 = vtanh.f32 %v1487_v16  ;;  %7097 = vmatpush1.bf16.msra.mxu1 %v7096_v11  ;;  %v7098_v16 = vpack.c.bf16 %v1773_v13, %v1771_v12  ;;  %v1995_v11 = vld [vmem:[#allocation12 + $0x60] sm:$0xff]  ;;  %v8905_v12 = vpack.c.bf16 %v1998_v10, %v1996_v7  ;;  %v1997_v13 = vld [vmem:[#allocation12 + $0x70] sm:$0xff] }
 0xb79   :  { %7099 = vmatprep.subr.bf16.mxu1 %v7098_v16  ;;  %v8908_v16 = vpack.c.bf16 %v1997_v13, %v1995_v11 }
 0xb80   :  { %v7851_v17 = vpop.eup %7850 }
 0xb81   :  { %v1491_v18 = vadd.f32 1.0, %v7851_v17  ;;  %v7853_v19 = vpop.eup %7852  ;;  %v1770_v17 = vld [vmem:[%s9624_s2 + $0x60] sm:$0xff] }
 0xb83   :  { %7854 = vrcp.f32 %v1491_v18  ;;  %v1772_v18 = vld [vmem:[%s9624_s2 + $0x70] sm:$0xff] }
 0xb84   :  { %7856 = vpow2.f32 %v6802_v24 }
 0xb8d   :  { %v7855_v20 = vpop.eup %7854 }
 0xb8e   :  { %v1506_v23 = vmul.f32 %v7855_v20, %v7853_v19  ;;  %v7857_v25 = vpop.eup %7856  ;;  %v1505_v30 = vmul.f32 %v7855_v20, %v1503_v26  ;;  %v7100_v19 = vpack.c.bf16 %v1772_v18, %v1770_v17  ;;  %v1753_v20 = vld [vmem:[#allocation9 + $0x8] sm:$0xff] }
 0xb8f   :  { %v1498_v29 = vadd.f32 1.0, %v7857_v25  ;;  %v1978_v18 = vld [vmem:[#allocation11 + $0x8] sm:$0xff] }
 0xb90   :  { %1508 = vrot.lane.b32.xlu1 %v1506_v23, %s8336_s16  ;;  %7101 = vmatpush1.bf16.msra.mxu1 %v7100_v19  ;;  %v1755_v23 = vld [vmem:[#allocation9 + $0x18] sm:$0xff] }
 0xb91   :  { %7858 = vrcp.f32 %v1498_v29  ;;  %v7102_v25 = vpack.c.bf16 %v1755_v23, %v1753_v20  ;;  %v1980_v19 = vld [vmem:[#allocation11 + $0x18] sm:$0xff] }
 0xb92   :  { %v8914_v23 = vpack.c.bf16 %v1980_v19, %v1978_v18 }
 0xb93   :  { %7103 = vmatprep.subr.bf16.mxu1 %v7102_v25 }
 0xb9b   :  { %v7859_v34 = vpop.eup %7858 }
 0xc02   :  { %v1509_v31 = vpop.permute.xlu1 %1508 }
 0xc03   :  { %v1511_v33 = vadd.f32 %v1509_v31, %v1505_v30 }
 0xc05   :  { %7860 = vtanh.f32 %v1511_v33  ;;  %1522 = vrot.lane.b32.xlu1 %v1511_v33, %s8336_s16 }
 0xc0f   :  { %v7861_v35 = vpop.eup %7860 }
 0xc10   :  { %v1513_v37 = vmul.f32 %v7861_v35, %v7859_v34  ;;  %v1752_v34 = vld [vmem:[#allocation9] sm:$0xff]  ;;  %v1754_v35 = vld [vmem:[#allocation9 + $0x10] sm:$0xff] }
 0xc12   :  { %1515 = vrot.lane.b32.xlu0 %v1513_v37, %s8336_s16  ;;  %v7104_v37 = vpack.c.bf16 %v1754_v35, %v1752_v34  ;;  %v1976_v35 = vld [vmem:[#allocation6 + $0xe] sm:$0x3] }
 0xc77   :  { %v1523_v38 = vpop.permute.xlu1 %1522 }
 0xc78   :  { %1525 = vst.msk [vmem:[#allocation5] sm:$0x3] %vm179_vm0, %v1523_v38 }
 0xc7f   :  { %v1533_v39 = vld [vmem:[#allocation5] sm:$0x3] }
 0xc80   :  { %1726 = vrot.lane.b32.xlu0 %v1533_v39, %s8336_s16  ;;  %v1751_v39 = vld [vmem:[#allocation6 + $0xe] sm:$0x3] }
 0xc84   :  { %v1516_v40 = vpop.permute.xlu0 %1515 }
 0xc85   :  { %1519 = vst.msk [vmem:[#allocation2 + $0xa] sm:$0x3] %vm179_vm0, %v1516_v40  ;;  %1520 = vst.msk [vmem:[#allocation4] sm:$0x3] %vm179_vm0, %v1516_v40  ;;  %v1922_v40 = vld [vmem:[%s9625_s3] sm:$0x3] }
 0xc8c   :  { %v1532_v41 = vld [vmem:[#allocation4] sm:$0x3] }
 0xc8d   :  { %6803 = vmatmul.mubr.msk.f32.vlgmr.msra.gmra.mrb[6].mxu0 %vm205_vm1, %v1532_v41  ;;  %v1927_v41 = vrot.slane %v1922_v40, %v8669_v36 }
 0xc8e   :  { %7085 = vmatpush1.bf16.msra.mxu0 %v8650_v32  ;;  %1691 = vmatprep.mubr.f32.mxu0 %v8335_v0  ;;  %v1707_v32 = vrot.slane %v1698_v44, %v8675_v43 }
 0xc95   :  { %6804 = vmatmul.mubr.msk.f32.vlgmr.msra.gmra.mrb[6].mxu0 %vm280_vm2, %v1527_v42 }
 0xc96   :  { %2066 = vmatprep.mubr.f32.mxu0 %v8335_v0 }
 0xcf2   :  { %v1727_v60 = vpop.permute.xlu0 %1726 }
 0xd68   :  { %v1693_v46 = vpop.f32.mrb[6].mxu0 }
 0xd69   :  { %v1710_v47 = vadd.f32 %v1703_v45, %v1693_v46  ;;  %v1695_v4 = vpop.f32.mrb[7].mxu0 }
 0xd6a   :  { %v1711_v48 = vadd.f32 %v1707_v32, %v1695_v4 }
 0xd6b   :  { %v6805_v8 = vmul.f32 -1.442695, %v1710_v47  ;;  %v1931_v47 = vrot.slane %v1922_v40, %v8675_v43 }
 0xd6c   :  { %v6806_v50 = vmul.f32 -1.442695, %v1711_v48 }
 0xd6d   :  { %7862 = vpow2.f32 %v6805_v8 }
 0xd6e   :  { %7864 = vtanh.f32 %v1711_v48 }
 0xd77   :  { %v7863_v9 = vpop.eup %7862 }
 0xd78   :  { %v1715_v49 = vadd.f32 1.0, %v7863_v9  ;;  %v7865_v14 = vpop.eup %7864 }
 0xd7a   :  { %7866 = vrcp.f32 %v1715_v49 }
 0xd7b   :  { %7868 = vpow2.f32 %v6806_v50  ;;  %v1983_v50 = vld [vmem:[#allocation12] sm:$0xff] }
 0xd7c   :  { %v8883_v52 = vpack.c.bf16 %v1985_v27, %v1983_v50 }
 0xd84   :  { %v7867_v15 = vpop.eup %7866 }
 0xd85   :  { %v1730_v21 = vmul.f32 %v7867_v15, %v7865_v14  ;;  %v7869_v54 = vpop.eup %7868  ;;  %v1729_v63 = vmul.f32 %v7867_v15, %v1727_v60  ;;  %v1984_v15 = vld [vmem:[#allocation12 + $0x8] sm:$0xff] }
 0xd86   :  { %v1722_v61 = vadd.f32 1.0, %v7869_v54  ;;  %v1987_v54 = vld [vmem:[#allocation12 + $0x20] sm:$0xff] }
 0xd87   :  { %1732 = vrot.lane.b32.xlu1 %v1730_v21, %s8336_s16  ;;  %v1986_v21 = vld [vmem:[#allocation12 + $0x18] sm:$0xff]  ;;  %v8890_v57 = vpack.c.bf16 %v1989_v55, %v1987_v54 }
 0xd88   :  { %7870 = vrcp.f32 %v1722_v61  ;;  %v8881_v22 = vpack.c.bf16 %v1986_v21, %v1984_v15 }
 0xd8a   :  { %7107 = vmatprep.subr.bf16.mxu0 %v8881_v22 }
 0xd8b   :  { %7109 = vmatpush1.bf16.msra.mxu0 %v8883_v52 }
 0xd8c   :  { %7111 = vmatprep.subr.bf16.mxu0 %v8885_v53 }
 0xd8f   :  { %7113 = vmatpush1.bf16.msra.mxu0 %v8890_v57 }
 0xd92   :  { %v7871_v24 = vpop.eup %7870 }
 0xdf9   :  { %v1733_v1 = vpop.permute.xlu1 %1732 }
 0xdfa   :  { %v1735_v5 = vadd.f32 %v1733_v1, %v1729_v63  ;;  %v1992_v63 = vld [vmem:[#allocation12 + $0x48] sm:$0xff]  ;;  %v1994_v1 = vld [vmem:[#allocation12 + $0x58] sm:$0xff] }
 0xdfb   :  { %v8897_v2 = vpack.c.bf16 %v1994_v1, %v1992_v63 }
 0xdfc   :  { %7872 = vtanh.f32 %v1735_v5  ;;  %1746 = vrot.lane.b32.xlu1 %v1735_v5, %s8336_s16  ;;  %v1993_v5 = vld [vmem:[#allocation12 + $0x50] sm:$0xff] }
 0xdfd   :  { %v8900_v6 = vpack.c.bf16 %v1993_v5, %v1991_v3  ;;  %7115 = vmatprep.subr.bf16.mxu0 %v8897_v2 }
 0xdff   :  { %7117 = vmatpush1.bf16.msra.mxu0 %v8900_v6 }
 0xe00   :  { %7119 = vmatprep.subr.bf16.mxu0 %v8905_v12 }
 0xe03   :  { %7121 = vmatpush1.bf16.msra.mxu0 %v8908_v16 }
 0xe04   :  { %7123 = vmatprep.subr.bf16.mxu0 %v8914_v23 }
 0xe06   :  { %v7873_v26 = vpop.eup %7872 }
 0xe07   :  { %v1737_v29 = vmul.f32 %v7873_v26, %v7871_v24 }
 0xe09   :  { %1739 = vrot.lane.b32.xlu0 %v1737_v29, %s8336_s16 }
 0xe6e   :  { %v1747_v30 = vpop.permute.xlu1 %1746 }
 0xe6f   :  { %1749 = vst.msk [vmem:[#allocation5] sm:$0x3] %vm179_vm0, %v1747_v30  ;;  %v1977_v30 = vld [vmem:[#allocation11] sm:$0xff] }
 0xe76   :  { %v1757_v31 = vld [vmem:[#allocation5] sm:$0x3] }
 0xe77   :  { %1950 = vrot.lane.b32.xlu0 %v1757_v31, %s8336_s16  ;;  %v1979_v31 = vld [vmem:[#allocation11 + $0x10] sm:$0xff] }
 0xe7b   :  { %v1740_v33 = vpop.permute.xlu0 %1739 }
 0xe7c   :  { %1743 = vst.msk [vmem:[#allocation2 + $0xc] sm:$0x3] %vm179_vm0, %v1740_v33  ;;  %1744 = vst.msk [vmem:[#allocation4] sm:$0x3] %vm179_vm0, %v1740_v33  ;;  %v8927_v33 = vpack.c.bf16 %v1979_v31, %v1977_v30 }
 0xe83   :  { %v1756_v38 = vld [vmem:[#allocation4] sm:$0x3] }
 0xe84   :  { %6807 = vmatmul.mubr.msk.f32.vlgmr.msra.gmra.mrb[6].mxu1 %vm205_vm1, %v1756_v38 }
 0xe85   :  { %7105 = vmatpush1.bf16.msra.mxu1 %v7104_v37  ;;  %1915 = vmatprep.mubr.f32.mxu1 %v8335_v0  ;;  %v2147_v37 = vld [vmem:[%s9628_s6] sm:$0x3] }
 0xe86   :  { %7127 = vmatprep.subr.bf16.mxu1 %v8881_v22  ;;  %v2152_v38 = vrot.slane %v2147_v37, %v8669_v36 }
 0xe8c   :  { %6808 = vmatmul.mubr.msk.f32.vlgmr.msra.gmra.mrb[6].mxu1 %vm280_vm2, %v1751_v39 }
 0xe8d   :  { %2289 = vmatprep.mubr.f32.mxu1 %v8335_v0  ;;  %7129 = vmatpush1.bf16.msra.mxu1 %v8883_v52 }
 0xe8e   :  { %7131 = vmatprep.subr.bf16.mxu1 %v8885_v53 }
 0xe91   :  { %7133 = vmatpush1.bf16.msra.mxu1 %v8890_v57 }
 0xe92   :  { %7135 = vmatprep.subr.bf16.mxu1 %v8897_v2 }
 0xe95   :  { %7137 = vmatpush1.bf16.msra.mxu1 %v8900_v6 }
 0xe96   :  { %7139 = vmatprep.subr.bf16.mxu1 %v8905_v12 }
 0xe99   :  { %7141 = vmatpush1.bf16.msra.mxu1 %v8908_v16 }
 0xe9a   :  { %7143 = vmatprep.subr.bf16.mxu1 %v8914_v23 }
 0xee9   :  { %v1951_v58 = vpop.permute.xlu0 %1950 }
 0xf5f   :  { %v1917_v42 = vpop.f32.mrb[6].mxu1 }
 0xf60   :  { %v1934_v44 = vadd.f32 %v1927_v41, %v1917_v42  ;;  %v1919_v45 = vpop.f32.mrb[7].mxu1 }
 0xf61   :  { %v1935_v4 = vadd.f32 %v1931_v47, %v1919_v45 }
 0xf62   :  { %v6809_v46 = vmul.f32 -1.442695, %v1934_v44  ;;  %v2156_v44 = vrot.slane %v2147_v37, %v8675_v43 }
 0xf63   :  { %v6810_v14 = vmul.f32 -1.442695, %v1935_v4 }
 0xf64   :  { %7874 = vpow2.f32 %v6809_v46 }
 0xf65   :  { %7876 = vtanh.f32 %v1935_v4 }
 0xf6e   :  { %v7875_v8 = vpop.eup %7874 }
 0xf6f   :  { %v1939_v32 = vadd.f32 1.0, %v7875_v8  ;;  %v7877_v48 = vpop.eup %7876 }
 0xf71   :  { %7878 = vrcp.f32 %v1939_v32 }
 0xf72   :  { %7880 = vpow2.f32 %v6810_v14 }
 0xf7b   :  { %v7879_v9 = vpop.eup %7878 }
 0xf7c   :  { %v1954_v49 = vmul.f32 %v7879_v9, %v7877_v48  ;;  %v7881_v56 = vpop.eup %7880  ;;  %v1953_v60 = vmul.f32 %v7879_v9, %v1951_v58 }
 0xf7d   :  { %v1946_v59 = vadd.f32 1.0, %v7881_v56 }
 0xf7e   :  { %1956 = vrot.lane.b32.xlu1 %v1954_v49, %s8336_s16 }
 0xf7f   :  { %7882 = vrcp.f32 %v1946_v59  ;;  %v2199_v59 = vld [vmem:[#allocation6 + $0xc] sm:$0x3] }
 0xf89   :  { %v7883_v17 = vpop.eup %7882 }
 0xff0   :  { %v1957_v61 = vpop.permute.xlu1 %1956 }
 0xff1   :  { %v1959_v62 = vadd.f32 %v1957_v61, %v1953_v60  ;;  %v2370_v60 = vld [vmem:[%s9628_s6] sm:$0x3] }
 0xff2   :  { %v2375_v61 = vrot.slane %v2370_v60, %v8669_v36  ;;  %v2379_v5 = vrot.slane %v2370_v60, %v8675_v43 }
 0xff3   :  { %7884 = vtanh.f32 %v1959_v62  ;;  %1970 = vrot.lane.b32.xlu1 %v1959_v62, %s8336_s16 }
 0xffd   :  { %v7885_v20 = vpop.eup %7884 }
 0xffe   :  { %v1961_v24 = vmul.f32 %v7885_v20, %v7883_v17 }
0x1000   :  { %1963 = vrot.lane.b32.xlu0 %v1961_v24, %s8336_s16 }
0x1065   :  { %v1971_v25 = vpop.permute.xlu1 %1970 }
0x1066   :  { %1973 = vst.msk [vmem:[#allocation5] sm:$0x3] %vm179_vm0, %v1971_v25 }
0x1067   :  { %1975 = vst.msk [vmem:[#allocation5] sm:$0x3] %vm179_vm0, %v8335_v0 }
0x106e   :  { %v1982_v26 = vld [vmem:[#allocation5] sm:$0x3] }
0x106f   :  { %2175 = vrot.lane.b32.xlu0 %v1982_v26, %s8336_s16 }
0x1072   :  { %v1964_v29 = vpop.permute.xlu0 %1963 }
0x1073   :  { %1967 = vst.msk [vmem:[#allocation2 + $0xe] sm:$0x3] %vm179_vm0, %v1964_v29  ;;  %1968 = vst.msk [vmem:[#allocation4] sm:$0x3] %vm179_vm0, %v1964_v29 }
0x1074   :  { %1974 = vst.msk [vmem:[#allocation4] sm:$0x3] %vm179_vm0, %v8335_v0 }
0x107b   :  { %v1981_v34 = vld [vmem:[#allocation4] sm:$0x3] }
0x107c   :  { %6811 = vmatmul.mubr.msk.f32.vlgmr.msra.gmra.mrb[8].mxu0 %vm205_vm1, %v1981_v34 }
0x107d   :  { %7125 = vmatpush1.bf16.msra.mxu0 %v8927_v33  ;;  %2140 = vmatprep.mubr.f32.mxu0 %v8335_v0 }
0x107e   :  { %7147 = vmatprep.subr.bf16.mxu0 %v8881_v22 }
0x1084   :  { %6812 = vmatmul.mubr.msk.f32.vlgmr.msra.gmra.mrb[8].mxu0 %vm280_vm2, %v1976_v35 }
0x1085   :  { %7149 = vmatpush1.bf16.msra.mxu0 %v8883_v52  ;;  %2512 = vmatprep.mubr.f32.mxu0 %v8335_v0 }
0x1086   :  { %7151 = vmatprep.subr.bf16.mxu0 %v8885_v53 }
0x1089   :  { %7153 = vmatpush1.bf16.msra.mxu0 %v8890_v57 }
0x108a   :  { %7155 = vmatprep.subr.bf16.mxu0 %v8897_v2 }
0x108d   :  { %7157 = vmatpush1.bf16.msra.mxu0 %v8900_v6 }
0x108e   :  { %7159 = vmatprep.subr.bf16.mxu0 %v8905_v12 }
0x1091   :  { %7161 = vmatpush1.bf16.msra.mxu0 %v8908_v16 }
0x1092   :  { %7163 = vmatprep.subr.bf16.mxu0 %v8914_v23 }
0x10e1   :  { %v2176_v49 = vpop.permute.xlu0 %2175 }
0x1157   :  { %v2142_v39 = vpop.f32.mrb[8].mxu0 }
0x1158   :  { %v2159_v40 = vadd.f32 %v2152_v38, %v2142_v39  ;;  %v2144_v41 = vpop.f32.mrb[9].mxu0 }
0x1159   :  { %v2160_v45 = vadd.f32 %v2156_v44, %v2144_v41  ;;  %v2422_v41 = vld [vmem:[#allocation6 + $0xa] sm:$0x3] }
0x115a   :  { %v6813_v42 = vmul.f32 -1.442695, %v2159_v40 }
0x115b   :  { %v6814_v48 = vmul.f32 -1.442695, %v2160_v45 }
0x115c   :  { %7886 = vpow2.f32 %v6813_v42  ;;  %v2593_v42 = vld [vmem:[%s9628_s6] sm:$0x3] }
0x115d   :  { %7888 = vtanh.f32 %v2160_v45  ;;  %v2598_v44 = vrot.slane %v2593_v42, %v8669_v36 }
0x1166   :  { %v7887_v46 = vpop.eup %7886 }
0x1167   :  { %v2164_v47 = vadd.f32 1.0, %v7887_v46  ;;  %v7889_v4 = vpop.eup %7888 }
0x1169   :  { %7890 = vrcp.f32 %v2164_v47 }
0x116a   :  { %7892 = vpow2.f32 %v6814_v48 }
0x1173   :  { %v7891_v8 = vpop.eup %7890 }
0x1174   :  { %v2179_v32 = vmul.f32 %v7891_v8, %v7889_v4  ;;  %v7893_v9 = vpop.eup %7892  ;;  %v2178_v15 = vmul.f32 %v7891_v8, %v2176_v49  ;;  %v2602_v8 = vrot.slane %v2593_v42, %v8675_v43 }
0x1175   :  { %v2171_v14 = vadd.f32 1.0, %v7893_v9 }
0x1176   :  { %2181 = vrot.lane.b32.xlu1 %v2179_v32, %s8336_s16 }
0x1177   :  { %7894 = vrcp.f32 %v2171_v14 }
0x1181   :  { %v7895_v27 = vpop.eup %7894 }
0x11e8   :  { %v2182_v21 = vpop.permute.xlu1 %2181 }
0x11e9   :  { %v2184_v50 = vadd.f32 %v2182_v21, %v2178_v15 }
0x11eb   :  { %7896 = vtanh.f32 %v2184_v50  ;;  %2195 = vrot.lane.b32.xlu1 %v2184_v50, %s8336_s16 }
0x11f5   :  { %v7897_v28 = vpop.eup %7896 }
0x11f6   :  { %v2186_v51 = vmul.f32 %v7897_v28, %v7895_v27 }
0x11f8   :  { %2188 = vrot.lane.b32.xlu0 %v2186_v51, %s8336_s16 }
0x125d   :  { %v2196_v54 = vpop.permute.xlu1 %2195 }
0x125e   :  { %2198 = vst.msk [vmem:[#allocation5] sm:$0x3] %vm179_vm0, %v2196_v54 }
0x1265   :  { %v2205_v55 = vld [vmem:[#allocation5] sm:$0x3] }
0x1266   :  { %2398 = vrot.lane.b32.xlu0 %v2205_v55, %s8336_s16 }
0x126a   :  { %v2189_v56 = vpop.permute.xlu0 %2188 }
0x126b   :  { %2192 = vst.msk [vmem:[#allocation3 + $0xe] sm:$0x3] %vm179_vm0, %v2189_v56  ;;  %2193 = vst.msk [vmem:[#allocation4] sm:$0x3] %vm179_vm0, %v2189_v56 }
0x1272   :  { %v2204_v58 = vld [vmem:[#allocation4] sm:$0x3] }
0x1273   :  { %6815 = vmatmul.mubr.msk.f32.vlgmr.msra.gmra.mrb[8].mxu1 %vm205_vm1, %v2204_v58 }
0x1274   :  { %7145 = vmatpush1.bf16.msra.mxu1 %v8927_v33  ;;  %2363 = vmatprep.mubr.f32.mxu1 %v8335_v0 }
0x1275   :  { %7167 = vmatprep.subr.bf16.mxu1 %v8881_v22 }
0x127b   :  { %6816 = vmatmul.mubr.msk.f32.vlgmr.msra.gmra.mrb[8].mxu1 %vm280_vm2, %v2199_v59 }
0x127c   :  { %7169 = vmatpush1.bf16.msra.mxu1 %v8883_v52  ;;  %2735 = vmatprep.mubr.f32.mxu1 %v8335_v0 }
0x127d   :  { %7171 = vmatprep.subr.bf16.mxu1 %v8885_v53 }
0x1280   :  { %7173 = vmatpush1.bf16.msra.mxu1 %v8890_v57 }
0x1281   :  { %7175 = vmatprep.subr.bf16.mxu1 %v8897_v2 }
0x1284   :  { %7177 = vmatpush1.bf16.msra.mxu1 %v8900_v6 }
0x1285   :  { %7179 = vmatprep.subr.bf16.mxu1 %v8905_v12 }
0x1288   :  { %7181 = vmatpush1.bf16.msra.mxu1 %v8908_v16 }
0x1289   :  { %7183 = vmatprep.subr.bf16.mxu1 %v8914_v23 }
0x12d8   :  { %v2399_v24 = vpop.permute.xlu0 %2398 }
0x134e   :  { %v2365_v62 = vpop.f32.mrb[8].mxu1 }
0x134f   :  { %v2382_v63 = vadd.f32 %v2375_v61, %v2365_v62  ;;  %v2367_v1 = vpop.f32.mrb[9].mxu1 }
0x1350   :  { %v2383_v7 = vadd.f32 %v2379_v5, %v2367_v1  ;;  %v2645_v1 = vld [vmem:[#allocation6 + $0x8] sm:$0x3] }
0x1351   :  { %v6817_v3 = vmul.f32 -1.442695, %v2382_v63 }
0x1352   :  { %v6818_v19 = vmul.f32 -1.442695, %v2383_v7 }
0x1353   :  { %7898 = vpow2.f32 %v6817_v3  ;;  %v2816_v3 = vld [vmem:[%s9628_s6] sm:$0x3] }
0x1354   :  { %7900 = vtanh.f32 %v2383_v7  ;;  %v2821_v5 = vrot.slane %v2816_v3, %v8669_v36 }
0x135d   :  { %v7899_v10 = vpop.eup %7898 }
0x135e   :  { %v2387_v11 = vadd.f32 1.0, %v7899_v10  ;;  %v7901_v13 = vpop.eup %7900 }
0x1360   :  { %7902 = vrcp.f32 %v2387_v11 }
0x1361   :  { %7904 = vpow2.f32 %v6818_v19 }
0x136a   :  { %v7903_v17 = vpop.eup %7902 }
0x136b   :  { %v2402_v18 = vmul.f32 %v7903_v17, %v7901_v13  ;;  %v7905_v20 = vpop.eup %7904  ;;  %v2401_v26 = vmul.f32 %v7903_v17, %v2399_v24  ;;  %v2825_v17 = vrot.slane %v2816_v3, %v8675_v43 }
0x136c   :  { %v2394_v25 = vadd.f32 1.0, %v7905_v20 }
0x136d   :  { %2404 = vrot.lane.b32.xlu1 %v2402_v18, %s8336_s16 }
0x136e   :  { %7906 = vrcp.f32 %v2394_v25 }
0x1378   :  { %v7907_v31 = vpop.eup %7906 }
0x13df   :  { %v2405_v29 = vpop.permute.xlu1 %2404 }
0x13e0   :  { %v2407_v30 = vadd.f32 %v2405_v29, %v2401_v26 }
0x13e2   :  { %7908 = vtanh.f32 %v2407_v30  ;;  %2418 = vrot.lane.b32.xlu1 %v2407_v30, %s8336_s16 }
0x13ec   :  { %v7909_v34 = vpop.eup %7908 }
0x13ed   :  { %v2409_v35 = vmul.f32 %v7909_v34, %v7907_v31 }
0x13ef   :  { %2411 = vrot.lane.b32.xlu0 %v2409_v35, %s8336_s16 }
0x1454   :  { %v2419_v37 = vpop.permute.xlu1 %2418 }
0x1455   :  { %2421 = vst.msk [vmem:[#allocation5] sm:$0x3] %vm179_vm0, %v2419_v37 }
0x145c   :  { %v2428_v38 = vld [vmem:[#allocation5] sm:$0x3] }
0x145d   :  { %2621 = vrot.lane.b32.xlu0 %v2428_v38, %s8336_s16 }
0x1461   :  { %v2412_v39 = vpop.permute.xlu0 %2411 }
0x1462   :  { %2415 = vst.msk [vmem:[#allocation3 + $0xc] sm:$0x3] %vm179_vm0, %v2412_v39  ;;  %2416 = vst.msk [vmem:[#allocation4] sm:$0x3] %vm179_vm0, %v2412_v39 }
0x1469   :  { %v2427_v40 = vld [vmem:[#allocation4] sm:$0x3] }
0x146a   :  { %6819 = vmatmul.mubr.msk.f32.vlgmr.msra.gmra.mrb[10].mxu0 %vm205_vm1, %v2427_v40 }
0x146b   :  { %7165 = vmatpush1.bf16.msra.mxu0 %v8927_v33  ;;  %2586 = vmatprep.mubr.f32.mxu0 %v8335_v0 }
0x146c   :  { %7187 = vmatprep.subr.bf16.mxu0 %v8881_v22 }
0x1472   :  { %6820 = vmatmul.mubr.msk.f32.vlgmr.msra.gmra.mrb[10].mxu0 %vm280_vm2, %v2422_v41 }
0x1473   :  { %7189 = vmatpush1.bf16.msra.mxu0 %v8883_v52  ;;  %2958 = vmatprep.mubr.f32.mxu0 %v8335_v0 }
0x1474   :  { %7191 = vmatprep.subr.bf16.mxu0 %v8885_v53 }
0x1477   :  { %7193 = vmatpush1.bf16.msra.mxu0 %v8890_v57 }
0x1478   :  { %7195 = vmatprep.subr.bf16.mxu0 %v8897_v2 }
0x147b   :  { %7197 = vmatpush1.bf16.msra.mxu0 %v8900_v6 }
0x147c   :  { %7199 = vmatprep.subr.bf16.mxu0 %v8905_v12 }
0x147f   :  { %7201 = vmatpush1.bf16.msra.mxu0 %v8908_v16 }
0x1480   :  { %7203 = vmatprep.subr.bf16.mxu0 %v8914_v23 }
0x14cf   :  { %v2622_v27 = vpop.permute.xlu0 %2621 }
0x1545   :  { %v2588_v45 = vpop.f32.mrb[10].mxu0 }
0x1546   :  { %v2605_v46 = vadd.f32 %v2598_v44, %v2588_v45  ;;  %v2590_v47 = vpop.f32.mrb[11].mxu0 }
0x1547   :  { %v2606_v32 = vadd.f32 %v2602_v8, %v2590_v47  ;;  %v2868_v47 = vld [vmem:[#allocation6 + $0x6] sm:$0x3] }
0x1548   :  { %v6821_v4 = vmul.f32 -1.442695, %v2605_v46 }
0x1549   :  { %v6822_v21 = vmul.f32 -1.442695, %v2606_v32 }
0x154a   :  { %7910 = vpow2.f32 %v6821_v4 }
0x154b   :  { %7912 = vtanh.f32 %v2606_v32 }
0x1554   :  { %v7911_v48 = vpop.eup %7910 }
0x1555   :  { %v2610_v9 = vadd.f32 1.0, %v7911_v48  ;;  %v7913_v49 = vpop.eup %7912 }
0x1557   :  { %7914 = vrcp.f32 %v2610_v9 }
0x1558   :  { %7916 = vpow2.f32 %v6822_v21 }
0x1561   :  { %v7915_v14 = vpop.eup %7914 }
0x1562   :  { %v2625_v15 = vmul.f32 %v7915_v14, %v7913_v49  ;;  %v7917_v50 = vpop.eup %7916  ;;  %v2624_v51 = vmul.f32 %v7915_v14, %v2622_v27 }
0x1563   :  { %v2617_v28 = vadd.f32 1.0, %v7917_v50 }
0x1564   :  { %2627 = vrot.lane.b32.xlu1 %v2625_v15, %s8336_s16 }
0x1565   :  { %7918 = vrcp.f32 %v2617_v28 }
0x156f   :  { %v7919_v56 = vpop.eup %7918 }
0x15d6   :  { %v2628_v54 = vpop.permute.xlu1 %2627 }
0x15d7   :  { %v2630_v55 = vadd.f32 %v2628_v54, %v2624_v51 }
0x15d9   :  { %7920 = vtanh.f32 %v2630_v55  ;;  %2641 = vrot.lane.b32.xlu1 %v2630_v55, %s8336_s16 }
0x15e3   :  { %v7921_v58 = vpop.eup %7920 }
0x15e4   :  { %v2632_v59 = vmul.f32 %v7921_v58, %v7919_v56 }
0x15e6   :  { %2634 = vrot.lane.b32.xlu0 %v2632_v59, %s8336_s16 }
0x164b   :  { %v2642_v60 = vpop.permute.xlu1 %2641 }
0x164c   :  { %2644 = vst.msk [vmem:[#allocation5] sm:$0x3] %vm179_vm0, %v2642_v60  ;;  %v3091_v60 = vld [vmem:[#allocation6 + $0x4] sm:$0x3] }
0x1653   :  { %v2651_v61 = vld [vmem:[#allocation5] sm:$0x3] }
0x1654   :  { %2844 = vrot.lane.b32.xlu0 %v2651_v61, %s8336_s16  ;;  %v3262_v61 = vld [vmem:[%s9628_s6] sm:$0x3] }
0x1658   :  { %v2635_v62 = vpop.permute.xlu0 %2634 }
0x1659   :  { %2638 = vst.msk [vmem:[#allocation3 + $0xa] sm:$0x3] %vm179_vm0, %v2635_v62  ;;  %2639 = vst.msk [vmem:[#allocation4] sm:$0x3] %vm179_vm0, %v2635_v62  ;;  %v3267_v62 = vrot.slane %v3262_v61, %v8669_v36 }
0x1660   :  { %v2650_v63 = vld [vmem:[#allocation4] sm:$0x3] }
0x1661   :  { %6823 = vmatmul.mubr.msk.f32.vlgmr.msra.gmra.mrb[10].mxu1 %vm205_vm1, %v2650_v63 }
0x1662   :  { %7185 = vmatpush1.bf16.msra.mxu1 %v8927_v33  ;;  %2809 = vmatprep.mubr.f32.mxu1 %v8335_v0 }
0x1663   :  { %7207 = vmatprep.subr.bf16.mxu1 %v8881_v22 }
0x1669   :  { %6824 = vmatmul.mubr.msk.f32.vlgmr.msra.gmra.mrb[10].mxu1 %vm280_vm2, %v2645_v1 }
0x166a   :  { %7209 = vmatpush1.bf16.msra.mxu1 %v8883_v52  ;;  %3181 = vmatprep.mubr.f32.mxu1 %v8335_v0 }
0x166b   :  { %7211 = vmatprep.subr.bf16.mxu1 %v8885_v53 }
0x166e   :  { %7213 = vmatpush1.bf16.msra.mxu1 %v8890_v57 }
0x166f   :  { %7215 = vmatprep.subr.bf16.mxu1 %v8897_v2 }
0x1672   :  { %7217 = vmatpush1.bf16.msra.mxu1 %v8900_v6 }
0x1673   :  { %7219 = vmatprep.subr.bf16.mxu1 %v8905_v12 }
0x1676   :  { %7221 = vmatpush1.bf16.msra.mxu1 %v8908_v16 }
0x1677   :  { %7223 = vmatprep.subr.bf16.mxu1 %v8914_v23 }
0x16c6   :  { %v2845_v31 = vpop.permute.xlu0 %2844 }
0x173c   :  { %v2811_v7 = vpop.f32.mrb[10].mxu1 }
0x173d   :  { %v2828_v10 = vadd.f32 %v2821_v5, %v2811_v7  ;;  %v2813_v11 = vpop.f32.mrb[11].mxu1  ;;  %v3271_v7 = vrot.slane %v3262_v61, %v8675_v43 }
0x173e   :  { %v2829_v18 = vadd.f32 %v2825_v17, %v2813_v11 }
0x173f   :  { %v6825_v13 = vmul.f32 -1.442695, %v2828_v10 }
0x1740   :  { %v6826_v29 = vmul.f32 -1.442695, %v2829_v18 }
0x1741   :  { %7922 = vpow2.f32 %v6825_v13 }
0x1742   :  { %7924 = vtanh.f32 %v2829_v18 }
0x174b   :  { %v7923_v19 = vpop.eup %7922 }
0x174c   :  { %v2833_v20 = vadd.f32 1.0, %v7923_v19  ;;  %v7925_v24 = vpop.eup %7924 }
0x174e   :  { %7926 = vrcp.f32 %v2833_v20 }
0x174f   :  { %7928 = vpow2.f32 %v6826_v29 }
0x1758   :  { %v7927_v25 = vpop.eup %7926 }
0x1759   :  { %v2848_v26 = vmul.f32 %v7927_v25, %v7925_v24  ;;  %v7929_v30 = vpop.eup %7928  ;;  %v2847_v35 = vmul.f32 %v7927_v25, %v2845_v31 }
0x175a   :  { %v2840_v34 = vadd.f32 1.0, %v7929_v30 }
0x175b   :  { %2850 = vrot.lane.b32.xlu1 %v2848_v26, %s8336_s16 }
0x175c   :  { %7930 = vrcp.f32 %v2840_v34 }
0x1766   :  { %v7931_v39 = vpop.eup %7930 }
0x17cd   :  { %v2851_v37 = vpop.permute.xlu1 %2850 }
0x17ce   :  { %v2853_v38 = vadd.f32 %v2851_v37, %v2847_v35 }
0x17d0   :  { %7932 = vtanh.f32 %v2853_v38  ;;  %2864 = vrot.lane.b32.xlu1 %v2853_v38, %s8336_s16 }
0x17da   :  { %v7933_v40 = vpop.eup %7932 }
0x17db   :  { %v2855_v41 = vmul.f32 %v7933_v40, %v7931_v39 }
0x17dd   :  { %2857 = vrot.lane.b32.xlu0 %v2855_v41, %s8336_s16 }
0x1842   :  { %v2865_v42 = vpop.permute.xlu1 %2864 }
0x1843   :  { %2867 = vst.msk [vmem:[#allocation5] sm:$0x3] %vm179_vm0, %v2865_v42  ;;  %v3314_v42 = vld [vmem:[#allocation6 + $0x2] sm:$0x3] }
0x184a   :  { %v2874_v44 = vld [vmem:[#allocation5] sm:$0x3] }
0x184b   :  { %3067 = vrot.lane.b32.xlu0 %v2874_v44, %s8336_s16  ;;  %v3485_v44 = vld [vmem:[%s9628_s6] sm:$0x3] }
0x184f   :  { %v2858_v45 = vpop.permute.xlu0 %2857 }
0x1850   :  { %2861 = vst.msk [vmem:[#allocation3 + $0x8] sm:$0x3] %vm179_vm0, %v2858_v45  ;;  %2862 = vst.msk [vmem:[#allocation4] sm:$0x3] %vm179_vm0, %v2858_v45  ;;  %v3490_v45 = vrot.slane %v3485_v44, %v8669_v36 }
0x1857   :  { %v2873_v46 = vld [vmem:[#allocation4] sm:$0x3] }
0x1858   :  { %6827 = vmatmul.mubr.msk.f32.vlgmr.msra.gmra.mrb[12].mxu0 %vm205_vm1, %v2873_v46 }
0x1859   :  { %7205 = vmatpush1.bf16.msra.mxu0 %v8927_v33  ;;  %3032 = vmatprep.mubr.f32.mxu0 %v8335_v0 }
0x185a   :  { %7227 = vmatprep.subr.bf16.mxu0 %v8881_v22  ;;  %v3039_v22 = vld [vmem:[%s9628_s6] sm:$0x3] }
0x1860   :  { %6828 = vmatmul.mubr.msk.f32.vlgmr.msra.gmra.mrb[12].mxu0 %vm280_vm2, %v2868_v47 }
0x1861   :  { %7229 = vmatpush1.bf16.msra.mxu0 %v8883_v52  ;;  %3404 = vmatprep.mubr.f32.mxu0 %v8335_v0  ;;  %v3044_v52 = vrot.slane %v3039_v22, %v8669_v36 }
0x1862   :  { %7231 = vmatprep.subr.bf16.mxu0 %v8885_v53 }
0x1865   :  { %7233 = vmatpush1.bf16.msra.mxu0 %v8890_v57 }
0x1866   :  { %7235 = vmatprep.subr.bf16.mxu0 %v8897_v2  ;;  %v3048_v2 = vrot.slane %v3039_v22, %v8675_v43 }
0x1869   :  { %7237 = vmatpush1.bf16.msra.mxu0 %v8900_v6 }
0x186a   :  { %7239 = vmatprep.subr.bf16.mxu0 %v8905_v12 }
0x186d   :  { %7241 = vmatpush1.bf16.msra.mxu0 %v8908_v16 }
0x186e   :  { %7243 = vmatprep.subr.bf16.mxu0 %v8914_v23 }
0x18bd   :  { %v3068_v14 = vpop.permute.xlu0 %3067 }
0x1933   :  { %v3034_v4 = vpop.f32.mrb[12].mxu0 }
0x1934   :  { %v3051_v53 = vadd.f32 %v3044_v52, %v3034_v4  ;;  %v3036_v8 = vpop.f32.mrb[13].mxu0 }
0x1935   :  { %v3052_v6 = vadd.f32 %v3048_v2, %v3036_v8 }
0x1936   :  { %v6829_v57 = vmul.f32 -1.442695, %v3051_v53 }
0x1937   :  { %v6830_v9 = vmul.f32 -1.442695, %v3052_v6 }
0x1938   :  { %7934 = vpow2.f32 %v6829_v57 }
0x1939   :  { %7936 = vtanh.f32 %v3052_v6 }
0x1942   :  { %v7935_v32 = vpop.eup %7934 }
0x1943   :  { %v3056_v12 = vadd.f32 1.0, %v7935_v32  ;;  %v7937_v16 = vpop.eup %7936 }
0x1945   :  { %7938 = vrcp.f32 %v3056_v12  ;;  %v3545_v12 = vld [vmem:[#allocation12 + $0x8] sm:$0xff] }
0x1946   :  { %7940 = vpow2.f32 %v6830_v9  ;;  %v3546_v9 = vld [vmem:[#allocation12 + $0x10] sm:$0xff] }
0x194f   :  { %v7939_v23 = vpop.eup %7938 }
0x1950   :  { %v3071_v48 = vmul.f32 %v7939_v23, %v7937_v16  ;;  %v7941_v49 = vpop.eup %7940  ;;  %v3070_v21 = vmul.f32 %v7939_v23, %v3068_v14  ;;  %v3547_v16 = vld [vmem:[#allocation12 + $0x18] sm:$0xff]  ;;  %v3544_v23 = vld [vmem:[#allocation12] sm:$0xff] }
0x1951   :  { %v3063_v15 = vadd.f32 1.0, %v7941_v49  ;;  %v7248_v49 = vpack.c.bf16 %v3546_v9, %v3544_v23 }
0x1952   :  { %3073 = vrot.lane.b32.xlu1 %v3071_v48, %s8336_s16  ;;  %v7246_v48 = vpack.c.bf16 %v3547_v16, %v3545_v12  ;;  %v4091_v12 = vld [vmem:[#allocation14 + $0x18] sm:$0xff] }
0x1953   :  { %7942 = vrcp.f32 %v3063_v15  ;;  %v3549_v15 = vld [vmem:[#allocation12 + $0x28] sm:$0xff] }
0x195d   :  { %v7943_v28 = vpop.eup %7942 }
0x19c4   :  { %v3074_v50 = vpop.permute.xlu1 %3073 }
0x19c5   :  { %v3076_v27 = vadd.f32 %v3074_v50, %v3070_v21  ;;  %v3551_v21 = vld [vmem:[#allocation12 + $0x38] sm:$0xff] }
0x19c6   :  { %v7250_v50 = vpack.c.bf16 %v3551_v21, %v3549_v15 }
0x19c7   :  { %7944 = vtanh.f32 %v3076_v27  ;;  %3087 = vrot.lane.b32.xlu1 %v3076_v27, %s8336_s16  ;;  %v3548_v27 = vld [vmem:[#allocation12 + $0x20] sm:$0xff] }
0x19d1   :  { %v7945_v51 = vpop.eup %7944 }
0x19d2   :  { %v3078_v54 = vmul.f32 %v7945_v51, %v7943_v28  ;;  %v3550_v28 = vld [vmem:[#allocation12 + $0x30] sm:$0xff] }
0x19d4   :  { %3080 = vrot.lane.b32.xlu0 %v3078_v54, %s8336_s16 }
0x1a39   :  { %v3088_v55 = vpop.permute.xlu1 %3087 }
0x1a3a   :  { %3090 = vst.msk [vmem:[#allocation5] sm:$0x3] %vm179_vm0, %v3088_v55  ;;  %v7252_v55 = vpack.c.bf16 %v3550_v28, %v3548_v27  ;;  %v4088_v27 = vld [vmem:[#allocation14] sm:$0xff]  ;;  %v4090_v28 = vld [vmem:[#allocation14 + $0x10] sm:$0xff] }
0x1a41   :  { %v3097_v56 = vld [vmem:[#allocation5] sm:$0x3] }
0x1a42   :  { %3290 = vrot.lane.b32.xlu0 %v3097_v56, %s8336_s16 }
0x1a46   :  { %v3081_v58 = vpop.permute.xlu0 %3080 }
0x1a47   :  { %3084 = vst.msk [vmem:[#allocation3 + $0x6] sm:$0x3] %vm179_vm0, %v3081_v58  ;;  %3085 = vst.msk [vmem:[#allocation4] sm:$0x3] %vm179_vm0, %v3081_v58 }
0x1a4e   :  { %v3096_v59 = vld [vmem:[#allocation4] sm:$0x3] }
0x1a4f   :  { %6831 = vmatmul.mubr.msk.f32.vlgmr.msra.gmra.mrb[12].mxu1 %vm205_vm1, %v3096_v59  ;;  %v3553_v59 = vld [vmem:[#allocation12 + $0x48] sm:$0xff] }
0x1a50   :  { %7225 = vmatpush1.bf16.msra.mxu1 %v8927_v33  ;;  %3255 = vmatprep.mubr.f32.mxu1 %v8335_v0 }
0x1a51   :  { %7247 = vmatprep.subr.bf16.mxu1 %v7246_v48 }
0x1a57   :  { %6832 = vmatmul.mubr.msk.f32.vlgmr.msra.gmra.mrb[12].mxu1 %vm280_vm2, %v3091_v60  ;;  %v3555_v60 = vld [vmem:[#allocation12 + $0x58] sm:$0xff] }
0x1a58   :  { %3627 = vmatprep.mubr.f32.mxu1 %v8335_v0  ;;  %7249 = vmatpush1.bf16.msra.mxu1 %v7248_v49  ;;  %v3538_v49 = vld [vmem:[#allocation11] sm:$0xff] }
0x1a59   :  { %7251 = vmatprep.subr.bf16.mxu1 %v7250_v50  ;;  %v3537_v50 = vld [vmem:[#allocation6] sm:$0x3] }
0x1a5c   :  { %7253 = vmatpush1.bf16.msra.mxu1 %v7252_v55  ;;  %v9132_v55 = vpack.c.bf16 %v4090_v28, %v4088_v27  ;;  %v3950_v27 = vld [vmem:[#allocation17 + $0x28] sm:$0xff]  ;;  %v3952_v28 = vld [vmem:[#allocation17 + $0x38] sm:$0xff] }
0x1ab4   :  { %v3291_v25 = vpop.permute.xlu0 %3290 }
0x1b2a   :  { %v3257_v63 = vpop.f32.mrb[12].mxu1 }
0x1b2b   :  { %v3274_v1 = vadd.f32 %v3267_v62, %v3257_v63  ;;  %v3259_v3 = vpop.f32.mrb[13].mxu1  ;;  %v7254_v62 = vpack.c.bf16 %v3555_v60, %v3553_v59  ;;  %v3552_v63 = vld [vmem:[#allocation12 + $0x40] sm:$0xff]  ;;  %v4094_v59 = vld [vmem:[#allocation14 + $0x30] sm:$0xff] }
0x1b2c   :  { %v3275_v10 = vadd.f32 %v3271_v7, %v3259_v3  ;;  %v3559_v7 = vld [vmem:[#allocation12 + $0x78] sm:$0xff] }
0x1b2d   :  { %v6833_v5 = vmul.f32 -1.442695, %v3274_v1  ;;  %v3554_v1 = vld [vmem:[#allocation12 + $0x50] sm:$0xff]  ;;  %7255 = vmatprep.subr.bf16.mxu1 %v7254_v62  ;;  %v4099_v62 = vld [vmem:[#allocation14 + $0x58] sm:$0xff] }
0x1b2e   :  { %v6834_v20 = vmul.f32 -1.442695, %v3275_v10  ;;  %v7256_v3 = vpack.c.bf16 %v3554_v1, %v3552_v63 }
0x1b2f   :  { %7946 = vpow2.f32 %v6833_v5  ;;  %v3557_v5 = vld [vmem:[#allocation12 + $0x68] sm:$0xff] }
0x1b30   :  { %7948 = vtanh.f32 %v3275_v10  ;;  %v3556_v10 = vld [vmem:[#allocation12 + $0x60] sm:$0xff]  ;;  %7257 = vmatpush1.bf16.msra.mxu1 %v7256_v3 }
0x1b31   :  { %v4096_v3 = vld [vmem:[#allocation14 + $0x40] sm:$0xff] }
0x1b39   :  { %v7947_v11 = vpop.eup %7946 }
0x1b3a   :  { %v3279_v13 = vadd.f32 1.0, %v7947_v11  ;;  %v7949_v17 = vpop.eup %7948  ;;  %v7258_v11 = vpack.c.bf16 %v3559_v7, %v3557_v5  ;;  %v4098_v5 = vld [vmem:[#allocation14 + $0x50] sm:$0xff]  ;;  %v4101_v7 = vld [vmem:[#allocation14 + $0x68] sm:$0xff] }
0x1b3c   :  { %7950 = vrcp.f32 %v3279_v13  ;;  %v3558_v13 = vld [vmem:[#allocation12 + $0x70] sm:$0xff]  ;;  %7259 = vmatprep.subr.bf16.mxu1 %v7258_v11  ;;  %v9146_v11 = vpack.c.bf16 %v4098_v5, %v4096_v3  ;;  %v3953_v3 = vld [vmem:[#allocation17 + $0x40] sm:$0xff] }
0x1b3d   :  { %7952 = vpow2.f32 %v6834_v20  ;;  %v3955_v5 = vld [vmem:[#allocation17 + $0x50] sm:$0xff] }
0x1b46   :  { %v7951_v18 = vpop.eup %7950 }
0x1b47   :  { %v3294_v19 = vmul.f32 %v7951_v18, %v7949_v17  ;;  %v7953_v24 = vpop.eup %7952  ;;  %v3293_v29 = vmul.f32 %v7951_v18, %v3291_v25  ;;  %v7260_v17 = vpack.c.bf16 %v3558_v13, %v3556_v10  ;;  %v3539_v18 = vld [vmem:[#allocation11 + $0x8] sm:$0xff]  ;;  %v4103_v10 = vld [vmem:[#allocation14 + $0x78] sm:$0xff] }
0x1b48   :  { %v3286_v26 = vadd.f32 1.0, %v7953_v24  ;;  %v4106_v25 = vld [vmem:[#allocation15 + $0x8] sm:$0xff]  ;;  %v9149_v13 = vpack.c.bf16 %v4103_v10, %v4101_v7  ;;  %v9180_v7 = vpack.c.bf16 %v3955_v5, %v3953_v3 }
0x1b49   :  { %3296 = vrot.lane.b32.xlu1 %v3294_v19, %s8336_s16  ;;  %7261 = vmatpush1.bf16.msra.mxu1 %v7260_v17  ;;  %v3541_v19 = vld [vmem:[#allocation11 + $0x18] sm:$0xff]  ;;  %v4100_v17 = vld [vmem:[#allocation14 + $0x60] sm:$0xff]  ;;  %v3958_v10 = vld [vmem:[#allocation17 + $0x68] sm:$0xff] }
0x1b4a   :  { %7954 = vrcp.f32 %v3286_v26  ;;  %v7262_v24 = vpack.c.bf16 %v3541_v19, %v3539_v18  ;;  %v4108_v26 = vld [vmem:[#allocation15 + $0x18] sm:$0xff]  ;;  %v4102_v18 = vld [vmem:[#allocation14 + $0x70] sm:$0xff] }
0x1b4b   :  { %v9152_v19 = vpack.c.bf16 %v4102_v18, %v4100_v17  ;;  %v3960_v17 = vld [vmem:[#allocation17 + $0x78] sm:$0xff] }
0x1b4c   :  { %7263 = vmatprep.subr.bf16.mxu1 %v7262_v24  ;;  %v3708_v24 = vld [vmem:[%s9628_s6] sm:$0x3]  ;;  %v9184_v18 = vpack.c.bf16 %v3960_v17, %v3958_v10  ;;  %v4756_v17 = vld [vmem:[#allocation3 + $0x6] sm:$0x3] }
0x1b54   :  { %v7955_v34 = vpop.eup %7954 }
0x1bbb   :  { %v3297_v30 = vpop.permute.xlu1 %3296 }
0x1bbc   :  { %v3299_v31 = vadd.f32 %v3297_v30, %v3293_v29  ;;  %v9088_v30 = vpack.c.bf16 %v4108_v26, %v4106_v25  ;;  %v3713_v25 = vrot.slane %v3708_v24, %v8669_v36 }
0x1bbe   :  { %7956 = vtanh.f32 %v3299_v31  ;;  %3310 = vrot.lane.b32.xlu1 %v3299_v31, %s8336_s16 }
0x1bc8   :  { %v7957_v35 = vpop.eup %7956 }
0x1bc9   :  { %v3301_v37 = vmul.f32 %v7957_v35, %v7955_v34  ;;  %v4105_v34 = vld [vmem:[#allocation15] sm:$0xff]  ;;  %v4107_v35 = vld [vmem:[#allocation15 + $0x10] sm:$0xff] }
0x1bcb   :  { %3303 = vrot.lane.b32.xlu0 %v3301_v37, %s8336_s16  ;;  %v9092_v37 = vpack.c.bf16 %v4107_v35, %v4105_v34  ;;  %v3717_v35 = vrot.slane %v3708_v24, %v8675_v43  ;;  %v3959_v24 = vld [vmem:[#allocation17 + $0x70] sm:$0xff] }
0x1c30   :  { %v3311_v38 = vpop.permute.xlu1 %3310 }
0x1c31   :  { %3313 = vst.msk [vmem:[#allocation5] sm:$0x3] %vm179_vm0, %v3311_v38  ;;  %v4110_v38 = vld [vmem:[#allocation15 + $0x28] sm:$0xff] }
0x1c38   :  { %v3320_v39 = vld [vmem:[#allocation5] sm:$0x3] }
0x1c39   :  { %3513 = vrot.lane.b32.xlu0 %v3320_v39, %s8336_s16  ;;  %v4112_v39 = vld [vmem:[#allocation15 + $0x38] sm:$0xff] }
0x1c3d   :  { %v3304_v40 = vpop.permute.xlu0 %3303 }
0x1c3e   :  { %3307 = vst.msk [vmem:[#allocation3 + $0x4] sm:$0x3] %vm179_vm0, %v3304_v40  ;;  %3308 = vst.msk [vmem:[#allocation4] sm:$0x3] %vm179_vm0, %v3304_v40  ;;  %v9095_v40 = vpack.c.bf16 %v4112_v39, %v4110_v38 }
0x1c45   :  { %v3319_v41 = vld [vmem:[#allocation4] sm:$0x3] }
0x1c46   :  { %6835 = vmatmul.mubr.msk.f32.vlgmr.msra.gmra.mrb[14].mxu0 %vm205_vm1, %v3319_v41  ;;  %v4109_v41 = vld [vmem:[#allocation15 + $0x20] sm:$0xff] }
0x1c47   :  { %7245 = vmatpush1.bf16.msra.mxu0 %v8927_v33  ;;  %3478 = vmatprep.mubr.f32.mxu0 %v8335_v0  ;;  %v3494_v33 = vrot.slane %v3485_v44, %v8675_v43 }
0x1c48   :  { %7267 = vmatprep.subr.bf16.mxu0 %v9088_v30 }
0x1c4e   :  { %6836 = vmatmul.mubr.msk.f32.vlgmr.msra.gmra.mrb[14].mxu0 %vm280_vm2, %v3314_v42  ;;  %v4111_v42 = vld [vmem:[#allocation15 + $0x30] sm:$0xff] }
0x1c4f   :  { %3862 = vmatprep.mubr.f32.mxu0 %v8335_v0  ;;  %7269 = vmatpush1.bf16.msra.mxu0 %v9092_v37  ;;  %v9097_v44 = vpack.c.bf16 %v4111_v42, %v4109_v41 }
0x1c50   :  { %7271 = vmatprep.subr.bf16.mxu0 %v9095_v40 }
0x1c53   :  { %7273 = vmatpush1.bf16.msra.mxu0 %v9097_v44 }
0x1cab   :  { %v3514_v51 = vpop.permute.xlu0 %3513 }
0x1d21   :  { %v3480_v46 = vpop.f32.mrb[14].mxu0 }
0x1d22   :  { %v3497_v47 = vadd.f32 %v3490_v45, %v3480_v46  ;;  %v3482_v22 = vpop.f32.mrb[15].mxu0  ;;  %v4114_v45 = vld [vmem:[#allocation15 + $0x48] sm:$0xff]  ;;  %v4116_v46 = vld [vmem:[#allocation15 + $0x58] sm:$0xff] }
0x1d23   :  { %v3498_v4 = vadd.f32 %v3494_v33, %v3482_v22  ;;  %v4113_v22 = vld [vmem:[#allocation15 + $0x40] sm:$0xff] }
0x1d24   :  { %v6837_v52 = vmul.f32 -1.442695, %v3497_v47  ;;  %v9101_v47 = vpack.c.bf16 %v4116_v46, %v4114_v45 }
0x1d25   :  { %v6838_v32 = vmul.f32 -1.442695, %v3498_v4 }
0x1d26   :  { %7958 = vpow2.f32 %v6837_v52  ;;  %v4115_v52 = vld [vmem:[#allocation15 + $0x50] sm:$0xff]  ;;  %7275 = vmatprep.subr.bf16.mxu0 %v9101_v47 }
0x1d27   :  { %7960 = vtanh.f32 %v3498_v4  ;;  %v9103_v33 = vpack.c.bf16 %v4115_v52, %v4113_v22  ;;  %v4118_v4 = vld [vmem:[#allocation15 + $0x68] sm:$0xff] }
0x1d29   :  { %7277 = vmatpush1.bf16.msra.mxu0 %v9103_v33 }
0x1d30   :  { %v7959_v53 = vpop.eup %7958 }
0x1d31   :  { %v3502_v8 = vadd.f32 1.0, %v7959_v53  ;;  %v7961_v57 = vpop.eup %7960  ;;  %v4120_v53 = vld [vmem:[#allocation15 + $0x78] sm:$0xff] }
0x1d33   :  { %7962 = vrcp.f32 %v3502_v8  ;;  %v9107_v8 = vpack.c.bf16 %v4120_v53, %v4118_v4 }
0x1d34   :  { %7964 = vpow2.f32 %v6838_v32  ;;  %v4089_v32 = vld [vmem:[#allocation14 + $0x8] sm:$0xff] }
0x1d35   :  { %7279 = vmatprep.subr.bf16.mxu0 %v9107_v8  ;;  %v9113_v16 = vpack.c.bf16 %v4091_v12, %v4089_v32 }
0x1d3d   :  { %v7963_v2 = vpop.eup %7962 }
0x1d3e   :  { %v3517_v6 = vmul.f32 %v7963_v2, %v7961_v57  ;;  %v7965_v14 = vpop.eup %7964  ;;  %v3516_v56 = vmul.f32 %v7963_v2, %v3514_v51  ;;  %v4117_v57 = vld [vmem:[#allocation15 + $0x60] sm:$0xff]  ;;  %v4119_v2 = vld [vmem:[#allocation15 + $0x70] sm:$0xff]  ;;  %v4093_v51 = vld [vmem:[#allocation14 + $0x28] sm:$0xff] }
0x1d3f   :  { %v3509_v54 = vadd.f32 1.0, %v7965_v14  ;;  %v3540_v14 = vld [vmem:[#allocation11 + $0x10] sm:$0xff] }
0x1d40   :  { %3519 = vrot.lane.b32.xlu1 %v3517_v6, %s8336_s16  ;;  %v9109_v6 = vpack.c.bf16 %v4119_v2, %v4117_v57  ;;  %v7264_v15 = vpack.c.bf16 %v3540_v14, %v3538_v49  ;;  %v3948_v49 = vld [vmem:[#allocation17 + $0x18] sm:$0xff] }
0x1d41   :  { %7966 = vrcp.f32 %v3509_v54  ;;  %v4095_v54 = vld [vmem:[#allocation14 + $0x38] sm:$0xff] }
0x1d42   :  { %7281 = vmatpush1.bf16.msra.mxu0 %v9109_v6 }
0x1d43   :  { %7283 = vmatprep.subr.bf16.mxu0 %v9113_v16 }
0x1d4b   :  { %v7967_v20 = vpop.eup %7966 }
0x1db2   :  { %v3520_v58 = vpop.permute.xlu1 %3519 }
0x1db3   :  { %v3522_v61 = vadd.f32 %v3520_v58, %v3516_v56  ;;  %v9135_v56 = vpack.c.bf16 %v4095_v54, %v4093_v51  ;;  %v4092_v58 = vld [vmem:[#allocation14 + $0x20] sm:$0xff]  ;;  %v9172_v51 = vpack.c.bf16 %v3952_v28, %v3950_v27 }
0x1db4   :  { %v9139_v63 = vpack.c.bf16 %v4094_v59, %v4092_v58  ;;  %v3949_v54 = vld [vmem:[#allocation17 + $0x20] sm:$0xff]  ;;  %v3951_v58 = vld [vmem:[#allocation17 + $0x30] sm:$0xff] }
0x1db5   :  { %7968 = vtanh.f32 %v3522_v61  ;;  %3533 = vrot.lane.b32.xlu1 %v3522_v61, %s8336_s16  ;;  %v4097_v61 = vld [vmem:[#allocation14 + $0x48] sm:$0xff]  ;;  %v9174_v59 = vpack.c.bf16 %v3951_v58, %v3949_v54 }
0x1db6   :  { %v9143_v1 = vpack.c.bf16 %v4099_v62, %v4097_v61  ;;  %v3956_v61 = vld [vmem:[#allocation17 + $0x58] sm:$0xff] }
0x1dbf   :  { %v7969_v29 = vpop.eup %7968 }
0x1dc0   :  { %v3524_v31 = vmul.f32 %v7969_v29, %v7967_v20  ;;  %v4087_v20 = vld [vmem:[#allocation2 + $0x2] sm:$0x3] }
0x1dc2   :  { %3526 = vrot.lane.b32.xlu0 %v3524_v31, %s8336_s16 }
0x1e27   :  { %v3534_v23 = vpop.permute.xlu1 %3533 }
0x1e28   :  { %3536 = vst.msk [vmem:[#allocation5] sm:$0x3] %vm179_vm0, %v3534_v23 }
0x1e2f   :  { %v3543_v48 = vld [vmem:[#allocation5] sm:$0x3] }
0x1e30   :  { %3736 = vrot.lane.b32.xlu0 %v3543_v48, %s8336_s16 }
0x1e34   :  { %v3527_v9 = vpop.permute.xlu0 %3526 }
0x1e35   :  { %3530 = vst.msk [vmem:[#allocation3 + $0x2] sm:$0x3] %vm179_vm0, %v3527_v9  ;;  %3531 = vst.msk [vmem:[#allocation4] sm:$0x3] %vm179_vm0, %v3527_v9  ;;  %v3946_v9 = vld [vmem:[#allocation17 + $0x8] sm:$0xff] }
0x1e36   :  { %v9166_v14 = vpack.c.bf16 %v3948_v49, %v3946_v9 }
0x1e3c   :  { %v3542_v21 = vld [vmem:[#allocation4] sm:$0x3]  ;;  %v4104_v60 = vld [vmem:[#allocation3 + $0x2] sm:$0x3] }
0x1e3d   :  { %6839 = vmatmul.mubr.msk.f32.vlgmr.msra.gmra.mrb[14].mxu1 %vm205_vm1, %v3542_v21  ;;  %v3947_v21 = vld [vmem:[#allocation17 + $0x10] sm:$0xff] }
0x1e3e   :  { %7265 = vmatpush1.bf16.msra.mxu1 %v7264_v15  ;;  %3701 = vmatprep.mubr.f32.mxu1 %v8335_v0  ;;  %v3945_v15 = vld [vmem:[#allocation17] sm:$0xff] }
0x1e3f   :  { %7315 = vmatprep.subr.bf16.mxu1 %v9088_v30 }
0x1e45   :  { %6840 = vmatmul.mubr.msk.f32.vlgmr.msra.gmra.mrb[14].mxu1 %vm280_vm2, %v3537_v50  ;;  %v9168_v50 = vpack.c.bf16 %v3947_v21, %v3945_v15 }
0x1e46   :  { %7317 = vmatpush1.bf16.msra.mxu1 %v9092_v37  ;;  %4188 = vmatprep.mubr.f32.mxu1 %v8335_v0 }
0x1e47   :  { %7319 = vmatprep.subr.bf16.mxu1 %v9095_v40 }
0x1e4a   :  { %7321 = vmatpush1.bf16.msra.mxu1 %v9097_v44 }
0x1e4b   :  { %7323 = vmatprep.subr.bf16.mxu1 %v9101_v47 }
0x1e4e   :  { %7325 = vmatpush1.bf16.msra.mxu1 %v9103_v33 }
0x1e4f   :  { %7327 = vmatprep.subr.bf16.mxu1 %v9107_v8 }
0x1e52   :  { %7329 = vmatpush1.bf16.msra.mxu1 %v9109_v6 }
0x1e53   :  { %7331 = vmatprep.subr.bf16.mxu1 %v9113_v16 }
0x1e55   :  { %6848 = vmatmul.mubr.msk.f32.vlgmr.msra.gmra.mrb[16].mxu1 %vm205_vm1, %v4104_v60  ;;  %v3954_v60 = vld [vmem:[#allocation17 + $0x48] sm:$0xff] }
0x1e56   :  { %7333 = vmatpush1.bf16.msra.mxu1 %v9132_v55  ;;  %4262 = vmatprep.mubr.f32.mxu1 %v8335_v0  ;;  %v9178_v62 = vpack.c.bf16 %v3956_v61, %v3954_v60 }
0x1e57   :  { %7335 = vmatprep.subr.bf16.mxu1 %v9135_v56 }
0x1e5a   :  { %7337 = vmatpush1.bf16.msra.mxu1 %v9139_v63 }
0x1e5b   :  { %7339 = vmatprep.subr.bf16.mxu1 %v9143_v1 }
0x1e5e   :  { %7341 = vmatpush1.bf16.msra.mxu1 %v9146_v11 }
0x1e5f   :  { %7343 = vmatprep.subr.bf16.mxu1 %v9149_v13 }
0x1e62   :  { %7345 = vmatpush1.bf16.msra.mxu1 %v9152_v19 }
0x1e63   :  { %7347 = vmatprep.subr.bf16.mxu1 %v9166_v14 }
0x1e65   :  { %6849 = vmatmul.mubr.msk.f32.vlgmr.msra.gmra.mrb[16].mxu1 %vm205_vm1, %v4087_v20  ;;  %v3957_v20 = vld [vmem:[#allocation17 + $0x60] sm:$0xff] }
0x1e66   :  { %4354 = vmatprep.mubr.f32.mxu1 %v8335_v0  ;;  %7349 = vmatpush1.bf16.msra.mxu1 %v9168_v50 }
0x1e67   :  { %7351 = vmatprep.subr.bf16.mxu1 %v9172_v51 }
0x1e6a   :  { %7353 = vmatpush1.bf16.msra.mxu1 %v9174_v59 }
0x1e6b   :  { %7355 = vmatprep.subr.bf16.mxu1 %v9178_v62 }
0x1e6e   :  { %7357 = vmatpush1.bf16.msra.mxu1 %v9180_v7 }
0x1e6f   :  { %7359 = vmatprep.subr.bf16.mxu1 %v9184_v18 }
0x1ea2   :  { %v3737_v4 = vpop.permute.xlu0 %3736 }
0x1f18   :  { %v3703_v26 = vpop.f32.mrb[14].mxu1 }
0x1f19   :  { %v3720_v29 = vadd.f32 %v3713_v25, %v3703_v26  ;;  %v3705_v31 = vpop.f32.mrb[15].mxu1  ;;  %v9186_v25 = vpack.c.bf16 %v3959_v24, %v3957_v20  ;;  %v4739_v20 = vld [vmem:[#allocation2 + $0x6] sm:$0x3] }
0x1f1a   :  { %v3721_v38 = vadd.f32 %v3717_v35, %v3705_v31  ;;  %v3761_v35 = vld [vmem:[#allocation2] sm:$0x3] }
0x1f1b   :  { %v6841_v34 = vmul.f32 -1.442695, %v3720_v29  ;;  %7361 = vmatpush1.bf16.msra.mxu1 %v9186_v25 }
0x1f1c   :  { %v6842_v22 = vmul.f32 -1.442695, %v3721_v38  ;;  %7411 = vmatprep.subr.bf16.mxu1 %v9088_v30 }
0x1f1d   :  { %7970 = vpow2.f32 %v6841_v34 }
0x1f1e   :  { %7972 = vtanh.f32 %v3721_v38 }
0x1f27   :  { %v7971_v39 = vpop.eup %7970 }
0x1f28   :  { %v3725_v41 = vadd.f32 1.0, %v7971_v39  ;;  %v7973_v42 = vpop.eup %7972  ;;  %v4430_v39 = vld [vmem:[#allocation3 + $0x4] sm:$0x3] }
0x1f2a   :  { %7974 = vrcp.f32 %v3725_v41  ;;  %v4413_v41 = vld [vmem:[#allocation2 + $0x4] sm:$0x3] }
0x1f2b   :  { %7976 = vpow2.f32 %v6842_v22 }
0x1f34   :  { %v7975_v45 = vpop.eup %7974 }
0x1f35   :  { %v3740_v46 = vmul.f32 %v7975_v45, %v7973_v42  ;;  %v7977_v52 = vpop.eup %7976  ;;  %v3739_v57 = vmul.f32 %v7975_v45, %v3737_v4  ;;  %v4037_v42 = vld [vmem:[%s9632_s10] sm:$0x3] }
0x1f36   :  { %v3732_v53 = vadd.f32 1.0, %v7977_v52  ;;  %v4042_v45 = vrot.slane %v4037_v42, %v8669_v36 }
0x1f37   :  { %3742 = vrot.lane.b32.xlu1 %v3740_v46, %s8336_s16 }
0x1f38   :  { %7978 = vrcp.f32 %v3732_v53  ;;  %v4046_v53 = vrot.slane %v4037_v42, %v8675_v43 }
0x1f42   :  { %v7979_v12 = vpop.eup %7978 }
0x1fa9   :  { %v3743_v2 = vpop.permute.xlu1 %3742 }
0x1faa   :  { %v3745_v32 = vadd.f32 %v3743_v2, %v3739_v57 }
0x1fac   :  { %7980 = vtanh.f32 %v3745_v32  ;;  %3755 = vrot.lane.b32.xlu1 %v3745_v32, %s8336_s16 }
0x1fb6   :  { %v7981_v23 = vpop.eup %7980 }
0x1fb7   :  { %v3747_v48 = vmul.f32 %v7981_v23, %v7979_v12 }
0x1fb9   :  { %3749 = vrot.lane.b32.xlu0 %v3747_v48, %s8336_s16 }
0x201e   :  { %v3756_v26 = vpop.permute.xlu1 %3755 }
0x201f   :  { %3758 = vst.msk [vmem:[#allocation5] sm:$0x3] %vm179_vm0, %v3756_v26 }
0x2020   :  { %3760 = vst.msk [vmem:[#allocation5] sm:$0x3] %vm179_vm0, %v8335_v0 }
0x2027   :  { %v3944_v29 = vld [vmem:[#allocation5] sm:$0x3] }
0x2028   :  { %4065 = vrot.lane.b32.xlu0 %v3944_v29, %s8336_s16 }
0x202b   :  { %v3750_v31 = vpop.permute.xlu0 %3749 }
0x202c   :  { %3752 = vst.msk [vmem:[#allocation3] sm:$0x3] %vm179_vm0, %v3750_v31  ;;  %3753 = vst.msk [vmem:[#allocation4] sm:$0x3] %vm179_vm0, %v3750_v31 }
0x202d   :  { %3759 = vst.msk [vmem:[#allocation4] sm:$0x3] %vm179_vm0, %v8335_v0 }
0x2033   :  { %v3778_v34 = vld [vmem:[#allocation3] sm:$0x3] }
0x2034   :  { %6843 = vmatmul.mubr.msk.f32.vlgmr.msra.gmra.mrb[16].mxu0 %vm205_vm1, %v3778_v34  ;;  %v3943_v38 = vld [vmem:[#allocation4] sm:$0x3] }
0x2035   :  { %7285 = vmatpush1.bf16.msra.mxu0 %v9132_v55  ;;  %3936 = vmatprep.mubr.f32.mxu0 %v8335_v0 }
0x2036   :  { %7287 = vmatprep.subr.bf16.mxu0 %v9135_v56 }
0x2039   :  { %7289 = vmatpush1.bf16.msra.mxu0 %v9139_v63 }
0x203a   :  { %7291 = vmatprep.subr.bf16.mxu0 %v9143_v1 }
0x203d   :  { %7293 = vmatpush1.bf16.msra.mxu0 %v9146_v11 }
0x203e   :  { %7295 = vmatprep.subr.bf16.mxu0 %v9149_v13 }
0x2041   :  { %7297 = vmatpush1.bf16.msra.mxu0 %v9152_v19 }
0x2042   :  { %7299 = vmatprep.subr.bf16.mxu0 %v9166_v14 }
0x2044   :  { %6844 = vmatmul.mubr.msk.f32.vlgmr.msra.gmra.mrb[16].mxu0 %vm205_vm1, %v3761_v35 }
0x2045   :  { %7301 = vmatpush1.bf16.msra.mxu0 %v9168_v50  ;;  %4028 = vmatprep.mubr.f32.mxu0 %v8335_v0 }
0x2046   :  { %7303 = vmatprep.subr.bf16.mxu0 %v9172_v51 }
0x2049   :  { %7305 = vmatpush1.bf16.msra.mxu0 %v9174_v59 }
0x204a   :  { %7307 = vmatprep.subr.bf16.mxu0 %v9178_v62 }
0x204d   :  { %7309 = vmatpush1.bf16.msra.mxu0 %v9180_v7 }
0x204e   :  { %7311 = vmatprep.subr.bf16.mxu0 %v9184_v18 }
0x2051   :  { %7313 = vmatpush1.bf16.msra.mxu0 %v9186_v25 }
0x2052   :  { %7363 = vmatprep.subr.bf16.mxu0 %v9088_v30 }
0x2054   :  { %6845 = vmatmul.mubr.msk.f32.vlgmr.msra.gmra.mrb[16].mxu0 %vm205_vm1, %v3943_v38 }
0x2055   :  { %7365 = vmatpush1.bf16.msra.mxu0 %v9092_v37  ;;  %4514 = vmatprep.mubr.f32.mxu0 %v8335_v0 }
0x2056   :  { %7367 = vmatprep.subr.bf16.mxu0 %v9095_v40 }
0x2059   :  { %7369 = vmatpush1.bf16.msra.mxu0 %v9097_v44 }
0x205a   :  { %7371 = vmatprep.subr.bf16.mxu0 %v9101_v47 }
0x205d   :  { %7373 = vmatpush1.bf16.msra.mxu0 %v9103_v33 }
0x205e   :  { %7375 = vmatprep.subr.bf16.mxu0 %v9107_v8 }
0x2061   :  { %7377 = vmatpush1.bf16.msra.mxu0 %v9109_v6 }
0x2062   :  { %7379 = vmatprep.subr.bf16.mxu0 %v9113_v16 }
0x2064   :  { %6853 = vmatmul.mubr.msk.f32.vlgmr.msra.gmra.mrb[18].mxu0 %vm205_vm1, %v4430_v39 }
0x2065   :  { %7381 = vmatpush1.bf16.msra.mxu0 %v9132_v55  ;;  %4588 = vmatprep.mubr.f32.mxu0 %v8335_v0 }
0x2066   :  { %7383 = vmatprep.subr.bf16.mxu0 %v9135_v56 }
0x2069   :  { %7385 = vmatpush1.bf16.msra.mxu0 %v9139_v63 }
0x206a   :  { %7387 = vmatprep.subr.bf16.mxu0 %v9143_v1 }
0x206d   :  { %7389 = vmatpush1.bf16.msra.mxu0 %v9146_v11 }
0x206e   :  { %7391 = vmatprep.subr.bf16.mxu0 %v9149_v13 }
0x2071   :  { %7393 = vmatpush1.bf16.msra.mxu0 %v9152_v19 }
0x2072   :  { %7395 = vmatprep.subr.bf16.mxu0 %v9166_v14 }
0x2074   :  { %6854 = vmatmul.mubr.msk.f32.vlgmr.msra.gmra.mrb[18].mxu0 %vm205_vm1, %v4413_v41 }
0x2075   :  { %7397 = vmatpush1.bf16.msra.mxu0 %v9168_v50  ;;  %4680 = vmatprep.mubr.f32.mxu0 %v8335_v0 }
0x2076   :  { %7399 = vmatprep.subr.bf16.mxu0 %v9172_v51 }
0x2079   :  { %7401 = vmatpush1.bf16.msra.mxu0 %v9174_v59 }
0x207a   :  { %7403 = vmatprep.subr.bf16.mxu0 %v9178_v62 }
0x207d   :  { %7405 = vmatpush1.bf16.msra.mxu0 %v9180_v7 }
0x207e   :  { %7407 = vmatprep.subr.bf16.mxu0 %v9184_v18 }
0x2081   :  { %7409 = vmatpush1.bf16.msra.mxu0 %v9186_v25 }
0x2082   :  { %7459 = vmatprep.subr.bf16.mxu0 %v9088_v30 }
0x209a   :  { %v4066_v49 = vpop.permute.xlu0 %4065 }
0x2127   :  { %v4030_v46 = vpop.f32.mrb[16].mxu0 }
0x2128   :  { %v4049_v22 = vadd.f32 %v4042_v45, %v4030_v46  ;;  %v4032_v52 = vpop.f32.mrb[17].mxu0 }
0x2129   :  { %v4050_v57 = vadd.f32 %v4046_v53, %v4032_v52 }
0x212a   :  { %v6846_v4 = vmul.f32 -1.442695, %v4049_v22 }
0x212b   :  { %v6847_v48 = vmul.f32 -1.442695, %v4050_v57 }
0x212c   :  { %7982 = vpow2.f32 %v6846_v4 }
0x212d   :  { %7984 = vtanh.f32 %v4050_v57 }
0x2136   :  { %v7983_v2 = vpop.eup %7982 }
0x2137   :  { %v4054_v32 = vadd.f32 1.0, %v7983_v2  ;;  %v7985_v12 = vpop.eup %7984 }
0x2139   :  { %7986 = vrcp.f32 %v4054_v32 }
0x213a   :  { %7988 = vpow2.f32 %v6847_v48 }
0x2143   :  { %v7987_v30 = vpop.eup %7986 }
0x2144   :  { %v4069_v23 = vmul.f32 %v7987_v30, %v7985_v12  ;;  %v7989_v9 = vpop.eup %7988  ;;  %v4068_v21 = vmul.f32 %v7987_v30, %v4066_v49  ;;  %v5082_v12 = vld [vmem:[#allocation3 + $0x8] sm:$0x3] }
0x2145   :  { %v4061_v15 = vadd.f32 1.0, %v7989_v9 }
0x2146   :  { %4071 = vrot.lane.b32.xlu1 %v4069_v23, %s8336_s16 }
0x2147   :  { %7990 = vrcp.f32 %v4061_v15 }
0x2151   :  { %v7991_v54 = vpop.eup %7990 }
0x21b8   :  { %v4072_v27 = vpop.permute.xlu1 %4071 }
0x21b9   :  { %v4074_v28 = vadd.f32 %v4072_v27, %v4068_v21  ;;  %v5410_v21 = vld [vmem:[#allocation15 + $0x8] sm:$0xff]  ;;  %v5412_v27 = vld [vmem:[#allocation15 + $0x18] sm:$0xff] }
0x21bb   :  { %7992 = vtanh.f32 %v4074_v28  ;;  %4083 = vrot.lane.b32.xlu1 %v4074_v28, %s8336_s16  ;;  %v9328_v28 = vpack.c.bf16 %v5412_v27, %v5410_v21 }
0x21c5   :  { %v7993_v58 = vpop.eup %7992 }
0x21c6   :  { %v4076_v60 = vmul.f32 %v7993_v58, %v7991_v54 }
0x21c8   :  { %4078 = vrot.lane.b32.xlu0 %v4076_v60, %s8336_s16 }
0x222d   :  { %v4084_v61 = vpop.permute.xlu1 %4083 }
0x222e   :  { %4086 = vst.msk [vmem:[#allocation5] sm:$0x3] %vm179_vm0, %v4084_v61 }
0x2235   :  { %v4270_v3 = vld [vmem:[#allocation5] sm:$0x3] }
0x2236   :  { %4391 = vrot.lane.b32.xlu0 %v4270_v3, %s8336_s16 }
0x223a   :  { %v4079_v5 = vpop.permute.xlu0 %4078 }
0x223b   :  { %4081 = vst.msk [vmem:[#allocation4] sm:$0x3] %vm179_vm0, %v4079_v5 }
0x2242   :  { %v4269_v10 = vld [vmem:[#allocation4] sm:$0x3] }
0x2243   :  { %6850 = vmatmul.mubr.msk.f32.vlgmr.msra.gmra.mrb[16].mxu1 %vm205_vm1, %v4269_v10  ;;  %v5409_v10 = vld [vmem:[#allocation15] sm:$0xff] }
0x2244   :  { %7413 = vmatpush1.bf16.msra.mxu1 %v9092_v37  ;;  %4840 = vmatprep.mubr.f32.mxu1 %v8335_v0 }
0x2245   :  { %7415 = vmatprep.subr.bf16.mxu1 %v9095_v40 }
0x2248   :  { %7417 = vmatpush1.bf16.msra.mxu1 %v9097_v44 }
0x2249   :  { %7419 = vmatprep.subr.bf16.mxu1 %v9101_v47 }
0x224c   :  { %7421 = vmatpush1.bf16.msra.mxu1 %v9103_v33 }
0x224d   :  { %7423 = vmatprep.subr.bf16.mxu1 %v9107_v8 }
0x2250   :  { %7425 = vmatpush1.bf16.msra.mxu1 %v9109_v6 }
0x2251   :  { %7427 = vmatprep.subr.bf16.mxu1 %v9113_v16 }
0x2253   :  { %6858 = vmatmul.mubr.msk.f32.vlgmr.msra.gmra.mrb[18].mxu1 %vm205_vm1, %v4756_v17  ;;  %v5411_v17 = vld [vmem:[#allocation15 + $0x10] sm:$0xff] }
0x2254   :  { %7429 = vmatpush1.bf16.msra.mxu1 %v9132_v55  ;;  %4914 = vmatprep.mubr.f32.mxu1 %v8335_v0 }
0x2255   :  { %7431 = vmatprep.subr.bf16.mxu1 %v9135_v56 }
0x2258   :  { %7433 = vmatpush1.bf16.msra.mxu1 %v9139_v63 }
0x2259   :  { %7435 = vmatprep.subr.bf16.mxu1 %v9143_v1 }
0x225c   :  { %7437 = vmatpush1.bf16.msra.mxu1 %v9146_v11 }
0x225d   :  { %7439 = vmatprep.subr.bf16.mxu1 %v9149_v13 }
0x2260   :  { %7441 = vmatpush1.bf16.msra.mxu1 %v9152_v19 }
0x2261   :  { %7443 = vmatprep.subr.bf16.mxu1 %v9166_v14  ;;  %v4363_v14 = vld [vmem:[%s9632_s10] sm:$0x3] }
0x2263   :  { %6859 = vmatmul.mubr.msk.f32.vlgmr.msra.gmra.mrb[18].mxu1 %vm205_vm1, %v4739_v20  ;;  %v5414_v20 = vld [vmem:[#allocation15 + $0x28] sm:$0xff] }
0x2264   :  { %7445 = vmatpush1.bf16.msra.mxu1 %v9168_v50  ;;  %5006 = vmatprep.mubr.f32.mxu1 %v8335_v0  ;;  %v4368_v50 = vrot.slane %v4363_v14, %v8669_v36 }
0x2265   :  { %7447 = vmatprep.subr.bf16.mxu1 %v9172_v51 }
0x2268   :  { %7449 = vmatpush1.bf16.msra.mxu1 %v9174_v59  ;;  %v4372_v59 = vrot.slane %v4363_v14, %v8675_v43  ;;  %v5416_v14 = vld [vmem:[#allocation15 + $0x38] sm:$0xff] }
0x2269   :  { %7451 = vmatprep.subr.bf16.mxu1 %v9178_v62 }
0x226c   :  { %7453 = vmatpush1.bf16.msra.mxu1 %v9180_v7 }
0x226d   :  { %7455 = vmatprep.subr.bf16.mxu1 %v9184_v18 }
0x2270   :  { %7457 = vmatpush1.bf16.msra.mxu1 %v9186_v25 }
0x2271   :  { %7507 = vmatprep.subr.bf16.mxu1 %v9328_v28 }
0x22a8   :  { %v4392_v39 = vpop.permute.xlu0 %4391 }
0x2316   :  { %v4356_v24 = vpop.f32.mrb[16].mxu1 }
0x2317   :  { %v4375_v26 = vadd.f32 %v4368_v50, %v4356_v24  ;;  %v4358_v29 = vpop.f32.mrb[17].mxu1  ;;  %v9335_v50 = vpack.c.bf16 %v5411_v17, %v5409_v10  ;;  %v9337_v24 = vpack.c.bf16 %v5416_v14, %v5414_v20  ;;  %v5250_v20 = vld [vmem:[#allocation17 + $0x8] sm:$0xff]  ;;  %v5252_v14 = vld [vmem:[#allocation17 + $0x18] sm:$0xff] }
0x2318   :  { %v4376_v62 = vadd.f32 %v4372_v59, %v4358_v29  ;;  %v5415_v29 = vld [vmem:[#allocation15 + $0x30] sm:$0xff]  ;;  %v5418_v59 = vld [vmem:[#allocation15 + $0x48] sm:$0xff] }
0x2319   :  { %v6851_v51 = vmul.f32 -1.442695, %v4375_v26  ;;  %v5413_v26 = vld [vmem:[#allocation15 + $0x20] sm:$0xff] }
0x231a   :  { %v6852_v35 = vmul.f32 -1.442695, %v4376_v62 }
0x231b   :  { %7994 = vpow2.f32 %v6851_v51 }
0x231c   :  { %7996 = vtanh.f32 %v4376_v62  ;;  %v5420_v62 = vld [vmem:[#allocation15 + $0x58] sm:$0xff] }
0x2325   :  { %v7995_v31 = vpop.eup %7994 }
0x2326   :  { %v4380_v7 = vadd.f32 1.0, %v7995_v31  ;;  %v7997_v18 = vpop.eup %7996  ;;  %v9341_v31 = vpack.c.bf16 %v5415_v29, %v5413_v26  ;;  %v5249_v26 = vld [vmem:[#allocation17] sm:$0xff]  ;;  %v9392_v29 = vpack.c.bf16 %v5252_v14, %v5250_v20 }
0x2328   :  { %7998 = vrcp.f32 %v4380_v7  ;;  %v9345_v7 = vpack.c.bf16 %v5420_v62, %v5418_v59  ;;  %v5254_v59 = vld [vmem:[#allocation17 + $0x28] sm:$0xff]  ;;  %v5256_v62 = vld [vmem:[#allocation17 + $0x38] sm:$0xff] }
0x2329   :  { %8000 = vpow2.f32 %v6852_v35  ;;  %v5424_v35 = vld [vmem:[#allocation15 + $0x78] sm:$0xff] }
0x2332   :  { %v7999_v25 = vpop.eup %7998 }
0x2333   :  { %v4395_v34 = vmul.f32 %v7999_v25, %v7997_v18  ;;  %v8001_v38 = vpop.eup %8000  ;;  %v4394_v42 = vmul.f32 %v7999_v25, %v4392_v39  ;;  %v5417_v18 = vld [vmem:[#allocation15 + $0x40] sm:$0xff]  ;;  %v5419_v25 = vld [vmem:[#allocation15 + $0x50] sm:$0xff] }
0x2334   :  { %v4387_v41 = vadd.f32 1.0, %v8001_v38  ;;  %v9348_v38 = vpack.c.bf16 %v5419_v25, %v5417_v18  ;;  %v9396_v25 = vpack.c.bf16 %v5256_v62, %v5254_v59 }
0x2335   :  { %4397 = vrot.lane.b32.xlu1 %v4395_v34, %s8336_s16  ;;  %v5422_v34 = vld [vmem:[#allocation15 + $0x68] sm:$0xff] }
0x2336   :  { %8002 = vrcp.f32 %v4387_v41  ;;  %v9351_v39 = vpack.c.bf16 %v5424_v35, %v5422_v34  ;;  %v5421_v41 = vld [vmem:[#allocation15 + $0x60] sm:$0xff] }
0x2337   :  { %v5253_v35 = vld [vmem:[#allocation17 + $0x20] sm:$0xff] }
0x2340   :  { %v8003_v22 = vpop.eup %8002 }
0x23a7   :  { %v4398_v45 = vpop.permute.xlu1 %4397 }
0x23a8   :  { %v4400_v46 = vadd.f32 %v4398_v45, %v4394_v42  ;;  %v5423_v42 = vld [vmem:[#allocation15 + $0x70] sm:$0xff]  ;;  %v5393_v45 = vld [vmem:[#allocation14 + $0x8] sm:$0xff] }
0x23aa   :  { %8004 = vtanh.f32 %v4400_v46  ;;  %4409 = vrot.lane.b32.xlu1 %v4400_v46, %s8336_s16  ;;  %v5395_v46 = vld [vmem:[#allocation14 + $0x18] sm:$0xff] }
0x23b4   :  { %v8005_v52 = vpop.eup %8004 }
0x23b5   :  { %v4402_v4 = vmul.f32 %v8005_v52, %v8003_v22  ;;  %v9354_v22 = vpack.c.bf16 %v5423_v42, %v5421_v41  ;;  %v9357_v52 = vpack.c.bf16 %v5395_v46, %v5393_v45  ;;  %v5255_v41 = vld [vmem:[#allocation17 + $0x30] sm:$0xff] }
0x23b6   :  { %v9404_v46 = vpack.c.bf16 %v5255_v41, %v5253_v35 }
0x23b7   :  { %4404 = vrot.lane.b32.xlu0 %v4402_v4, %s8336_s16  ;;  %v5392_v4 = vld [vmem:[#allocation14] sm:$0xff] }
0x241c   :  { %v4410_v53 = vpop.permute.xlu1 %4409 }
0x241d   :  { %4412 = vst.msk [vmem:[#allocation5] sm:$0x3] %vm179_vm0, %v4410_v53  ;;  %v5394_v53 = vld [vmem:[#allocation14 + $0x10] sm:$0xff] }
0x2424   :  { %v4596_v57 = vld [vmem:[#allocation5] sm:$0x3] }
0x2425   :  { %4717 = vrot.lane.b32.xlu0 %v4596_v57, %s8336_s16  ;;  %v5397_v57 = vld [vmem:[#allocation14 + $0x28] sm:$0xff] }
0x2429   :  { %v4405_v2 = vpop.permute.xlu0 %4404 }
0x242a   :  { %4407 = vst.msk [vmem:[#allocation4] sm:$0x3] %vm179_vm0, %v4405_v2  ;;  %v5399_v2 = vld [vmem:[#allocation14 + $0x38] sm:$0xff] }
0x2431   :  { %v4595_v32 = vld [vmem:[#allocation4] sm:$0x3] }
0x2432   :  { %6855 = vmatmul.mubr.msk.f32.vlgmr.msra.gmra.mrb[18].mxu0 %vm205_vm1, %v4595_v32  ;;  %v9360_v32 = vpack.c.bf16 %v5394_v53, %v5392_v4  ;;  %v5258_v4 = vld [vmem:[#allocation17 + $0x48] sm:$0xff]  ;;  %v5260_v53 = vld [vmem:[#allocation17 + $0x58] sm:$0xff] }
0x2433   :  { %7461 = vmatpush1.bf16.msra.mxu0 %v9092_v37  ;;  %5166 = vmatprep.mubr.f32.mxu0 %v8335_v0  ;;  %v5065_v37 = vld [vmem:[#allocation2 + $0x8] sm:$0x3] }
0x2434   :  { %7463 = vmatprep.subr.bf16.mxu0 %v9095_v40  ;;  %v4689_v40 = vld [vmem:[%s9632_s10] sm:$0x3] }
0x2437   :  { %7465 = vmatpush1.bf16.msra.mxu0 %v9097_v44  ;;  %v4694_v44 = vrot.slane %v4689_v40, %v8669_v36 }
0x2438   :  { %7467 = vmatprep.subr.bf16.mxu0 %v9101_v47 }
0x243b   :  { %7469 = vmatpush1.bf16.msra.mxu0 %v9103_v33 }
0x243c   :  { %7471 = vmatprep.subr.bf16.mxu0 %v9107_v8 }
0x243f   :  { %7473 = vmatpush1.bf16.msra.mxu0 %v9109_v6 }
0x2440   :  { %7475 = vmatprep.subr.bf16.mxu0 %v9113_v16  ;;  %v4698_v16 = vrot.slane %v4689_v40, %v8675_v43  ;;  %v5398_v40 = vld [vmem:[#allocation14 + $0x30] sm:$0xff] }
0x2442   :  { %6863 = vmatmul.mubr.msk.f32.vlgmr.msra.gmra.mrb[20].mxu0 %vm205_vm1, %v5082_v12  ;;  %v9363_v12 = vpack.c.bf16 %v5399_v2, %v5397_v57  ;;  %v9406_v2 = vpack.c.bf16 %v5260_v53, %v5258_v4 }
0x2443   :  { %7477 = vmatpush1.bf16.msra.mxu0 %v9132_v55  ;;  %5240 = vmatprep.mubr.f32.mxu0 %v8335_v0 }
0x2444   :  { %7479 = vmatprep.subr.bf16.mxu0 %v9135_v56 }
0x2447   :  { %7481 = vmatpush1.bf16.msra.mxu0 %v9139_v63 }
0x2448   :  { %7483 = vmatprep.subr.bf16.mxu0 %v9143_v1 }
0x244b   :  { %7485 = vmatpush1.bf16.msra.mxu0 %v9146_v11 }
0x244c   :  { %7487 = vmatprep.subr.bf16.mxu0 %v9149_v13 }
0x244f   :  { %7489 = vmatpush1.bf16.msra.mxu0 %v9152_v19 }
0x2450   :  { %7491 = vmatprep.subr.bf16.mxu0 %v9392_v29 }
0x2452   :  { %6864 = vmatmul.mubr.msk.f32.vlgmr.msra.gmra.mrb[20].mxu0 %vm205_vm1, %v5065_v37  ;;  %v5396_v37 = vld [vmem:[#allocation14 + $0x20] sm:$0xff] }
0x2453   :  { %5332 = vmatprep.mubr.f32.mxu0 %v8335_v0 }
0x2497   :  { %v4718_v23 = vpop.permute.xlu0 %4717 }
0x2505   :  { %v4682_v47 = vpop.f32.mrb[18].mxu0 }
0x2506   :  { %v4701_v33 = vadd.f32 %v4694_v44, %v4682_v47  ;;  %v4684_v8 = vpop.f32.mrb[19].mxu0  ;;  %v5408_v44 = vld [vmem:[#allocation3 + $0xa] sm:$0x3]  ;;  %v5401_v47 = vld [vmem:[#allocation14 + $0x48] sm:$0xff] }
0x2507   :  { %v4702_v55 = vadd.f32 %v4698_v16, %v4684_v8  ;;  %v9367_v8 = vpack.c.bf16 %v5398_v40, %v5396_v37  ;;  %v5400_v16 = vld [vmem:[#allocation14 + $0x40] sm:$0xff] }
0x2508   :  { %v6856_v6 = vmul.f32 -1.442695, %v4701_v33  ;;  %v5403_v33 = vld [vmem:[#allocation14 + $0x58] sm:$0xff] }
0x2509   :  { %v6857_v19 = vmul.f32 -1.442695, %v4702_v55 }
0x250a   :  { %8006 = vpow2.f32 %v6856_v6  ;;  %v9371_v6 = vpack.c.bf16 %v5403_v33, %v5401_v47  ;;  %v5259_v47 = vld [vmem:[#allocation17 + $0x50] sm:$0xff] }
0x250b   :  { %8008 = vtanh.f32 %v4702_v55  ;;  %v5402_v55 = vld [vmem:[#allocation14 + $0x50] sm:$0xff] }
0x2514   :  { %v8007_v56 = vpop.eup %8006 }
0x2515   :  { %v4706_v63 = vadd.f32 1.0, %v8007_v56  ;;  %v8009_v1 = vpop.eup %8008  ;;  %v5405_v56 = vld [vmem:[#allocation14 + $0x68] sm:$0xff] }
0x2517   :  { %8010 = vrcp.f32 %v4706_v63  ;;  %v5407_v63 = vld [vmem:[#allocation14 + $0x78] sm:$0xff] }
0x2518   :  { %8012 = vpow2.f32 %v6857_v19  ;;  %v5406_v19 = vld [vmem:[#allocation14 + $0x70] sm:$0xff] }
0x2521   :  { %v8011_v11 = vpop.eup %8010 }
0x2522   :  { %v4721_v13 = vmul.f32 %v8011_v11, %v8009_v1  ;;  %v8013_v30 = vpop.eup %8012  ;;  %v4720_v9 = vmul.f32 %v8011_v11, %v4718_v23  ;;  %v9374_v1 = vpack.c.bf16 %v5402_v55, %v5400_v16  ;;  %v9377_v11 = vpack.c.bf16 %v5407_v63, %v5405_v56  ;;  %v5391_v23 = vld [vmem:[#allocation2 + $0xa] sm:$0x3]  ;;  %v5262_v16 = vld [vmem:[#allocation17 + $0x68] sm:$0xff]  ;;  %v5264_v55 = vld [vmem:[#allocation17 + $0x78] sm:$0xff] }
0x2523   :  { %v4713_v48 = vadd.f32 1.0, %v8013_v30  ;;  %v5261_v56 = vld [vmem:[#allocation17 + $0x60] sm:$0xff]  ;;  %v9416_v63 = vpack.c.bf16 %v5264_v55, %v5262_v16 }
0x2524   :  { %4723 = vrot.lane.b32.xlu1 %v4721_v13, %s8336_s16  ;;  %v5404_v13 = vld [vmem:[#allocation14 + $0x60] sm:$0xff] }
0x2525   :  { %8014 = vrcp.f32 %v4713_v48  ;;  %v9380_v30 = vpack.c.bf16 %v5406_v19, %v5404_v13  ;;  %v5015_v48 = vld [vmem:[%s9632_s10] sm:$0x3]  ;;  %v5263_v13 = vld [vmem:[#allocation17 + $0x70] sm:$0xff] }
0x2526   :  { %v9419_v19 = vpack.c.bf16 %v5263_v13, %v5261_v56  ;;  %v6060_v56 = vld [vmem:[#allocation3 + $0xe] sm:$0x3]  ;;  %v6391_v13 = vld [vmem:[#allocation20 + $0x18] sm:$0xff] }
0x252f   :  { %v8015_v54 = vpop.eup %8014 }
0x2596   :  { %v4724_v49 = vpop.permute.xlu1 %4723 }
0x2597   :  { %v4726_v15 = vadd.f32 %v4724_v49, %v4720_v9  ;;  %v5020_v9 = vrot.slane %v5015_v48, %v8669_v36 }
0x2599   :  { %8016 = vtanh.f32 %v4726_v15  ;;  %4735 = vrot.lane.b32.xlu1 %v4726_v15, %s8336_s16 }
0x25a3   :  { %v8017_v58 = vpop.eup %8016 }
0x25a4   :  { %v4728_v60 = vmul.f32 %v8017_v58, %v8015_v54  ;;  %v5024_v54 = vrot.slane %v5015_v48, %v8675_v43 }
0x25a6   :  { %4730 = vrot.lane.b32.xlu0 %v4728_v60, %s8336_s16 }
0x260b   :  { %v4736_v61 = vpop.permute.xlu1 %4735 }
0x260c   :  { %4738 = vst.msk [vmem:[#allocation5] sm:$0x3] %vm179_vm0, %v4736_v61 }
0x2613   :  { %v4922_v3 = vld [vmem:[#allocation5] sm:$0x3] }
0x2614   :  { %5043 = vrot.lane.b32.xlu0 %v4922_v3, %s8336_s16 }
0x2618   :  { %v4731_v5 = vpop.permute.xlu0 %4730 }
0x2619   :  { %4733 = vst.msk [vmem:[#allocation4] sm:$0x3] %vm179_vm0, %v4731_v5 }
0x2620   :  { %v4921_v51 = vld [vmem:[#allocation4] sm:$0x3] }
0x2621   :  { %6860 = vmatmul.mubr.msk.f32.vlgmr.msra.gmra.mrb[18].mxu1 %vm205_vm1, %v4921_v51  ;;  %v5251_v51 = vld [vmem:[#allocation17 + $0x10] sm:$0xff] }
0x2622   :  { %7509 = vmatpush1.bf16.msra.mxu1 %v9335_v50  ;;  %5492 = vmatprep.mubr.f32.mxu1 %v8335_v0  ;;  %v9394_v18 = vpack.c.bf16 %v5251_v51, %v5249_v26 }
0x2623   :  { %7511 = vmatprep.subr.bf16.mxu1 %v9337_v24 }
0x2624   :  { %7493 = vmatpush1.bf16.msra.mxu0 %v9394_v18 }
0x2625   :  { %7495 = vmatprep.subr.bf16.mxu0 %v9396_v25 }
0x2626   :  { %7513 = vmatpush1.bf16.msra.mxu1 %v9341_v31 }
0x2627   :  { %7515 = vmatprep.subr.bf16.mxu1 %v9345_v7 }
0x2628   :  { %7497 = vmatpush1.bf16.msra.mxu0 %v9404_v46 }
0x2629   :  { %7499 = vmatprep.subr.bf16.mxu0 %v9406_v2 }
0x262a   :  { %7517 = vmatpush1.bf16.msra.mxu1 %v9348_v38 }
0x262b   :  { %7519 = vmatprep.subr.bf16.mxu1 %v9351_v39 }
0x262e   :  { %7521 = vmatpush1.bf16.msra.mxu1 %v9354_v22 }
0x262f   :  { %7523 = vmatprep.subr.bf16.mxu1 %v9357_v52 }
0x2631   :  { %6868 = vmatmul.mubr.msk.f32.vlgmr.msra.gmra.mrb[20].mxu1 %vm205_vm1, %v5408_v44  ;;  %v5257_v44 = vld [vmem:[#allocation17 + $0x40] sm:$0xff] }
0x2632   :  { %7525 = vmatpush1.bf16.msra.mxu1 %v9360_v32  ;;  %5566 = vmatprep.mubr.f32.mxu1 %v8335_v0  ;;  %v9412_v33 = vpack.c.bf16 %v5259_v47, %v5257_v44 }
0x2633   :  { %7527 = vmatprep.subr.bf16.mxu1 %v9363_v12 }
0x2634   :  { %7501 = vmatpush1.bf16.msra.mxu0 %v9412_v33 }
0x2635   :  { %7503 = vmatprep.subr.bf16.mxu0 %v9416_v63 }
0x2636   :  { %7529 = vmatpush1.bf16.msra.mxu1 %v9367_v8 }
0x2637   :  { %7531 = vmatprep.subr.bf16.mxu1 %v9371_v6 }
0x2638   :  { %7505 = vmatpush1.bf16.msra.mxu0 %v9419_v19 }
0x2639   :  { %7555 = vmatprep.subr.bf16.mxu0 %v9328_v28 }
0x263a   :  { %7533 = vmatpush1.bf16.msra.mxu1 %v9374_v1 }
0x263b   :  { %7535 = vmatprep.subr.bf16.mxu1 %v9377_v11 }
0x263e   :  { %7537 = vmatpush1.bf16.msra.mxu1 %v9380_v30 }
0x263f   :  { %7539 = vmatprep.subr.bf16.mxu1 %v9392_v29 }
0x2641   :  { %6869 = vmatmul.mubr.msk.f32.vlgmr.msra.gmra.mrb[20].mxu1 %vm205_vm1, %v5391_v23 }
0x2642   :  { %5658 = vmatprep.mubr.f32.mxu1 %v8335_v0  ;;  %7541 = vmatpush1.bf16.msra.mxu1 %v9394_v18 }
0x2643   :  { %7543 = vmatprep.subr.bf16.mxu1 %v9396_v25 }
0x2646   :  { %7545 = vmatpush1.bf16.msra.mxu1 %v9404_v46 }
0x2647   :  { %7547 = vmatprep.subr.bf16.mxu1 %v9406_v2 }
0x264a   :  { %7549 = vmatpush1.bf16.msra.mxu1 %v9412_v33 }
0x264b   :  { %7551 = vmatprep.subr.bf16.mxu1 %v9416_v63 }
0x264e   :  { %7553 = vmatpush1.bf16.msra.mxu1 %v9419_v19 }
0x264f   :  { %7603 = vmatprep.subr.bf16.mxu1 %v9328_v28  ;;  %v5734_v28 = vld [vmem:[#allocation3 + $0xc] sm:$0x3] }
0x2686   :  { %v5044_v42 = vpop.permute.xlu0 %5043 }
0x26f4   :  { %v5008_v49 = vpop.f32.mrb[18].mxu1 }
0x26f5   :  { %v5027_v15 = vadd.f32 %v5020_v9, %v5008_v49  ;;  %v5010_v21 = vpop.f32.mrb[19].mxu1 }
0x26f6   :  { %v5028_v58 = vadd.f32 %v5024_v54, %v5010_v21  ;;  %v5717_v54 = vld [vmem:[#allocation2 + $0xc] sm:$0x3] }
0x26f7   :  { %v6861_v27 = vmul.f32 -1.442695, %v5027_v15 }
0x26f8   :  { %v6862_v17 = vmul.f32 -1.442695, %v5028_v58 }
0x26f9   :  { %8018 = vpow2.f32 %v6861_v27 }
0x26fa   :  { %8020 = vtanh.f32 %v5028_v58  ;;  %v5341_v58 = vld [vmem:[%s9632_s10] sm:$0x3] }
0x2703   :  { %v8019_v60 = vpop.eup %8018 }
0x2704   :  { %v5032_v61 = vadd.f32 1.0, %v8019_v60  ;;  %v8021_v3 = vpop.eup %8020  ;;  %v5346_v60 = vrot.slane %v5341_v58, %v8669_v36 }
0x2706   :  { %8022 = vrcp.f32 %v5032_v61 }
0x2707   :  { %8024 = vpow2.f32 %v6862_v17  ;;  %v5350_v17 = vrot.slane %v5341_v58, %v8675_v43  ;;  %v6395_v58 = vld [vmem:[#allocation20 + $0x38] sm:$0xff] }
0x2710   :  { %v8023_v5 = vpop.eup %8022 }
0x2711   :  { %v5047_v10 = vmul.f32 %v8023_v5, %v8021_v3  ;;  %v8025_v34 = vpop.eup %8024  ;;  %v5046_v57 = vmul.f32 %v8023_v5, %v5044_v42 }
0x2712   :  { %v5039_v45 = vadd.f32 1.0, %v8025_v34 }
0x2713   :  { %5049 = vrot.lane.b32.xlu1 %v5047_v10, %s8336_s16 }
0x2714   :  { %8026 = vrcp.f32 %v5039_v45 }
0x271e   :  { %v8027_v23 = vpop.eup %8026 }
0x2785   :  { %v5050_v37 = vpop.permute.xlu1 %5049 }
0x2786   :  { %v5052_v40 = vadd.f32 %v5050_v37, %v5046_v57 }
0x2788   :  { %8028 = vtanh.f32 %v5052_v40  ;;  %5061 = vrot.lane.b32.xlu1 %v5052_v40, %s8336_s16 }
0x2792   :  { %v8029_v48 = vpop.eup %8028 }
0x2793   :  { %v5054_v9 = vmul.f32 %v8029_v48, %v8027_v23 }
0x2795   :  { %5056 = vrot.lane.b32.xlu0 %v5054_v9, %s8336_s16 }
0x27fa   :  { %v5062_v49 = vpop.permute.xlu1 %5061 }
0x27fb   :  { %5064 = vst.msk [vmem:[#allocation5] sm:$0x3] %vm179_vm0, %v5062_v49 }
0x2802   :  { %v5248_v15 = vld [vmem:[#allocation5] sm:$0x3] }
0x2803   :  { %5369 = vrot.lane.b32.xlu0 %v5248_v15, %s8336_s16 }
0x2807   :  { %v5057_v21 = vpop.permute.xlu0 %5056 }
0x2808   :  { %5059 = vst.msk [vmem:[#allocation4] sm:$0x3] %vm179_vm0, %v5057_v21 }
0x280f   :  { %v5247_v27 = vld [vmem:[#allocation4] sm:$0x3] }
0x2810   :  { %6865 = vmatmul.mubr.msk.f32.vlgmr.msra.gmra.mrb[20].mxu0 %vm205_vm1, %v5247_v27  ;;  %v6388_v27 = vld [vmem:[#allocation20] sm:$0xff] }
0x2811   :  { %7557 = vmatpush1.bf16.msra.mxu0 %v9335_v50  ;;  %5818 = vmatprep.mubr.f32.mxu0 %v8335_v0 }
0x2812   :  { %7559 = vmatprep.subr.bf16.mxu0 %v9337_v24 }
0x2815   :  { %7561 = vmatpush1.bf16.msra.mxu0 %v9341_v31 }
0x2816   :  { %7563 = vmatprep.subr.bf16.mxu0 %v9345_v7 }
0x2819   :  { %7565 = vmatpush1.bf16.msra.mxu0 %v9348_v38 }
0x281a   :  { %7567 = vmatprep.subr.bf16.mxu0 %v9351_v39 }
0x281d   :  { %7569 = vmatpush1.bf16.msra.mxu0 %v9354_v22 }
0x281e   :  { %7571 = vmatprep.subr.bf16.mxu0 %v9357_v52 }
0x2820   :  { %6873 = vmatmul.mubr.msk.f32.vlgmr.msra.gmra.mrb[22].mxu0 %vm205_vm1, %v5734_v28  ;;  %v6390_v28 = vld [vmem:[#allocation20 + $0x10] sm:$0xff] }
0x2821   :  { %7573 = vmatpush1.bf16.msra.mxu0 %v9360_v32  ;;  %5892 = vmatprep.mubr.f32.mxu0 %v8335_v0 }
0x2822   :  { %7575 = vmatprep.subr.bf16.mxu0 %v9363_v12 }
0x2825   :  { %7577 = vmatpush1.bf16.msra.mxu0 %v9367_v8 }
0x2826   :  { %7579 = vmatprep.subr.bf16.mxu0 %v9371_v6 }
0x2829   :  { %7581 = vmatpush1.bf16.msra.mxu0 %v9374_v1 }
0x282a   :  { %7583 = vmatprep.subr.bf16.mxu0 %v9377_v11 }
0x282d   :  { %7585 = vmatpush1.bf16.msra.mxu0 %v9380_v30 }
0x282e   :  { %7587 = vmatprep.subr.bf16.mxu0 %v9392_v29 }
0x2830   :  { %6874 = vmatmul.mubr.msk.f32.vlgmr.msra.gmra.mrb[22].mxu0 %vm205_vm1, %v5717_v54  ;;  %v6393_v54 = vld [vmem:[#allocation20 + $0x28] sm:$0xff] }
0x2831   :  { %7589 = vmatpush1.bf16.msra.mxu0 %v9394_v18  ;;  %5984 = vmatprep.mubr.f32.mxu0 %v8335_v0 }
0x2832   :  { %7591 = vmatprep.subr.bf16.mxu0 %v9396_v25 }
0x2835   :  { %7593 = vmatpush1.bf16.msra.mxu0 %v9404_v46 }
0x2836   :  { %7595 = vmatprep.subr.bf16.mxu0 %v9406_v2 }
0x2839   :  { %7597 = vmatpush1.bf16.msra.mxu0 %v9412_v33 }
0x283a   :  { %7599 = vmatprep.subr.bf16.mxu0 %v9416_v63 }
0x283d   :  { %7601 = vmatpush1.bf16.msra.mxu0 %v9419_v19 }
0x2875   :  { %v5370_v41 = vpop.permute.xlu0 %5369 }
0x28e3   :  { %v5334_v61 = vpop.f32.mrb[20].mxu0 }
0x28e4   :  { %v5353_v3 = vadd.f32 %v5346_v60, %v5334_v61  ;;  %v5336_v5 = vpop.f32.mrb[21].mxu0  ;;  %v7652_v60 = vpack.c.bf16 %v6390_v28, %v6388_v27  ;;  %v7654_v61 = vpack.c.bf16 %v6395_v58, %v6393_v54 }
0x28e5   :  { %v5354_v20 = vadd.f32 %v5350_v17, %v5336_v5  ;;  %v6394_v5 = vld [vmem:[#allocation20 + $0x30] sm:$0xff]  ;;  %v6397_v17 = vld [vmem:[#allocation20 + $0x48] sm:$0xff] }
0x28e6   :  { %v6866_v10 = vmul.f32 -1.442695, %v5353_v3  ;;  %v6392_v3 = vld [vmem:[#allocation20 + $0x20] sm:$0xff] }
0x28e7   :  { %v6867_v34 = vmul.f32 -1.442695, %v5354_v20 }
0x28e8   :  { %8030 = vpow2.f32 %v6866_v10 }
0x28e9   :  { %8032 = vtanh.f32 %v5354_v20  ;;  %v6399_v20 = vld [vmem:[#allocation20 + $0x58] sm:$0xff] }
0x28f2   :  { %v8031_v14 = vpop.eup %8030 }
0x28f3   :  { %v5358_v26 = vadd.f32 1.0, %v8031_v14  ;;  %v8033_v51 = vpop.eup %8032  ;;  %v7656_v14 = vpack.c.bf16 %v6394_v5, %v6392_v3 }
0x28f5   :  { %8034 = vrcp.f32 %v5358_v26  ;;  %v7658_v26 = vpack.c.bf16 %v6399_v20, %v6397_v17 }
0x28f6   :  { %8036 = vpow2.f32 %v6867_v34  ;;  %v6403_v34 = vld [vmem:[#allocation20 + $0x78] sm:$0xff] }
0x28ff   :  { %v8035_v59 = vpop.eup %8034 }
0x2900   :  { %v5373_v62 = vmul.f32 %v8035_v59, %v8033_v51  ;;  %v8037_v35 = vpop.eup %8036  ;;  %v5372_v45 = vmul.f32 %v8035_v59, %v5370_v41  ;;  %v6396_v51 = vld [vmem:[#allocation20 + $0x40] sm:$0xff]  ;;  %v6398_v59 = vld [vmem:[#allocation20 + $0x50] sm:$0xff] }
0x2901   :  { %v5365_v42 = vadd.f32 1.0, %v8037_v35  ;;  %v7660_v35 = vpack.c.bf16 %v6398_v59, %v6396_v51 }
0x2902   :  { %5375 = vrot.lane.b32.xlu1 %v5373_v62, %s8336_s16  ;;  %v6401_v62 = vld [vmem:[#allocation20 + $0x68] sm:$0xff] }
0x2903   :  { %8038 = vrcp.f32 %v5365_v42  ;;  %v7662_v41 = vpack.c.bf16 %v6403_v34, %v6401_v62  ;;  %v6400_v42 = vld [vmem:[#allocation20 + $0x60] sm:$0xff] }
0x290d   :  { %v8039_v57 = vpop.eup %8038 }
0x2974   :  { %v5376_v4 = vpop.permute.xlu1 %5375 }
0x2975   :  { %v5378_v53 = vadd.f32 %v5376_v4, %v5372_v45  ;;  %v6402_v45 = vld [vmem:[#allocation20 + $0x70] sm:$0xff]  ;;  %v6372_v4 = vld [vmem:[#allocation18 + $0x8] sm:$0xff] }
0x2977   :  { %8040 = vtanh.f32 %v5378_v53  ;;  %5387 = vrot.lane.b32.xlu1 %v5378_v53, %s8336_s16  ;;  %v6374_v53 = vld [vmem:[#allocation18 + $0x18] sm:$0xff] }
0x2981   :  { %v8041_v37 = vpop.eup %8040 }
0x2982   :  { %v5380_v40 = vmul.f32 %v8041_v37, %v8039_v57  ;;  %v7664_v57 = vpack.c.bf16 %v6402_v45, %v6400_v42  ;;  %v7666_v37 = vpack.c.bf16 %v6374_v53, %v6372_v4 }
0x2984   :  { %5382 = vrot.lane.b32.xlu0 %v5380_v40, %s8336_s16  ;;  %v6371_v40 = vld [vmem:[#allocation18] sm:$0xff] }
0x29e9   :  { %v5388_v44 = vpop.permute.xlu1 %5387 }
0x29ea   :  { %5390 = vst.msk [vmem:[#allocation5] sm:$0x3] %vm179_vm0, %v5388_v44  ;;  %v6373_v44 = vld [vmem:[#allocation18 + $0x10] sm:$0xff] }
0x29f1   :  { %v5574_v47 = vld [vmem:[#allocation5] sm:$0x3] }
0x29f2   :  { %5695 = vrot.lane.b32.xlu0 %v5574_v47, %s8336_s16  ;;  %v6376_v47 = vld [vmem:[#allocation18 + $0x28] sm:$0xff] }
0x29f6   :  { %v5383_v16 = vpop.permute.xlu0 %5382 }
0x29f7   :  { %5385 = vst.msk [vmem:[#allocation4] sm:$0x3] %vm179_vm0, %v5383_v16  ;;  %v6378_v16 = vld [vmem:[#allocation18 + $0x38] sm:$0xff] }
0x29fe   :  { %v5573_v55 = vld [vmem:[#allocation4] sm:$0x3] }
0x29ff   :  { %6870 = vmatmul.mubr.msk.f32.vlgmr.msra.gmra.mrb[20].mxu1 %vm205_vm1, %v5573_v55  ;;  %v7668_v55 = vpack.c.bf16 %v6373_v44, %v6371_v40 }
0x2a00   :  { %7605 = vmatpush1.bf16.msra.mxu1 %v9335_v50  ;;  %6144 = vmatprep.mubr.f32.mxu1 %v8335_v0  ;;  %v6043_v50 = vld [vmem:[#allocation2 + $0xe] sm:$0x3] }
0x2a01   :  { %7607 = vmatprep.subr.bf16.mxu1 %v9337_v24  ;;  %v5667_v24 = vld [vmem:[%s9632_s10] sm:$0x3] }
0x2a04   :  { %7609 = vmatpush1.bf16.msra.mxu1 %v9341_v31  ;;  %v5672_v31 = vrot.slane %v5667_v24, %v8669_v36 }
0x2a05   :  { %7611 = vmatprep.subr.bf16.mxu1 %v9345_v7 }
0x2a08   :  { %7613 = vmatpush1.bf16.msra.mxu1 %v9348_v38 }
0x2a09   :  { %7615 = vmatprep.subr.bf16.mxu1 %v9351_v39 }
0x2a0c   :  { %7617 = vmatpush1.bf16.msra.mxu1 %v9354_v22 }
0x2a0d   :  { %7619 = vmatprep.subr.bf16.mxu1 %v9357_v52  ;;  %v5676_v52 = vrot.slane %v5667_v24, %v8675_v43  ;;  %v6377_v24 = vld [vmem:[#allocation18 + $0x30] sm:$0xff] }
0x2a0f   :  { %6878 = vmatmul.mubr.msk.f32.vlgmr.msra.gmra.mrb[22].mxu1 %vm205_vm1, %v6060_v56  ;;  %v7670_v56 = vpack.c.bf16 %v6378_v16, %v6376_v47  ;;  %v6594_v16 = vld [vmem:[%s9637_s15] sm:$0xff] }
0x2a10   :  { %7621 = vmatpush1.bf16.msra.mxu1 %v9360_v32  ;;  %6218 = vmatprep.mubr.f32.mxu1 %v8335_v0 }
0x2a11   :  { %7623 = vmatprep.subr.bf16.mxu1 %v9363_v12 }
0x2a14   :  { %7625 = vmatpush1.bf16.msra.mxu1 %v9367_v8 }
0x2a15   :  { %7627 = vmatprep.subr.bf16.mxu1 %v9371_v6 }
0x2a18   :  { %7629 = vmatpush1.bf16.msra.mxu1 %v9374_v1 }
0x2a19   :  { %7631 = vmatprep.subr.bf16.mxu1 %v9377_v11 }
0x2a1c   :  { %7633 = vmatpush1.bf16.msra.mxu1 %v9380_v30 }
0x2a1d   :  { %7635 = vmatprep.subr.bf16.mxu1 %v9392_v29 }
0x2a1f   :  { %6879 = vmatmul.mubr.msk.f32.vlgmr.msra.gmra.mrb[22].mxu1 %vm205_vm1, %v6043_v50  ;;  %v6375_v50 = vld [vmem:[#allocation18 + $0x20] sm:$0xff] }
0x2a20   :  { %7637 = vmatpush1.bf16.msra.mxu1 %v9394_v18  ;;  %6310 = vmatprep.mubr.f32.mxu1 %v8335_v0 }
0x2a21   :  { %7639 = vmatprep.subr.bf16.mxu1 %v9396_v25 }
0x2a24   :  { %7641 = vmatpush1.bf16.msra.mxu1 %v9404_v46 }
0x2a25   :  { %7643 = vmatprep.subr.bf16.mxu1 %v9406_v2 }
0x2a28   :  { %7645 = vmatpush1.bf16.msra.mxu1 %v9412_v33 }
0x2a29   :  { %7647 = vmatprep.subr.bf16.mxu1 %v9416_v63  ;;  %v6389_v63 = vld [vmem:[#allocation20 + $0x8] sm:$0xff] }
0x2a2c   :  { %7649 = vmatpush1.bf16.msra.mxu1 %v9419_v19  ;;  %v7650_v19 = vpack.c.bf16 %v6391_v13, %v6389_v63 }
0x2a2e   :  { %7651 = vmatprep.subr.bf16.mxu0 %v7650_v19 }
0x2a64   :  { %v5696_v18 = vpop.permute.xlu0 %5695 }
0x2ad2   :  { %v5660_v7 = vpop.f32.mrb[20].mxu1 }
0x2ad3   :  { %v5679_v38 = vadd.f32 %v5672_v31, %v5660_v7  ;;  %v5662_v39 = vpop.f32.mrb[21].mxu1  ;;  %v6387_v31 = vld [vmem:[#allocation3 + $0xe] sm:$0x3] }
0x2ad4   :  { %v5680_v32 = vadd.f32 %v5676_v52, %v5662_v39  ;;  %v6380_v7 = vld [vmem:[#allocation18 + $0x48] sm:$0xff]  ;;  %v7672_v39 = vpack.c.bf16 %v6377_v24, %v6375_v50  ;;  %v6379_v52 = vld [vmem:[#allocation18 + $0x40] sm:$0xff]  ;;  %v8337_v50 = vmov 0.0|0.0  }
0x2ad5   :  { %v6871_v22 = vmul.f32 -1.442695, %v5679_v38  ;;  %v6382_v38 = vld [vmem:[#allocation18 + $0x58] sm:$0xff]  ;;  %7682 = vmatprep.subr.bf16.mxu1 %v8337_v50 }
0x2ad6   :  { %v6872_v30 = vmul.f32 -1.442695, %v5680_v32 }
0x2ad7   :  { %8042 = vpow2.f32 %v6871_v22  ;;  %v7674_v22 = vpack.c.bf16 %v6382_v38, %v6380_v7  ;;  %v6598_v38 = vld [vmem:[%s9637_s15 + $0x20] sm:$0xff] }
0x2ad8   :  { %8044 = vtanh.f32 %v5680_v32  ;;  %v6381_v32 = vld [vmem:[#allocation18 + $0x50] sm:$0xff] }
0x2ae1   :  { %v8043_v12 = vpop.eup %8042 }
0x2ae2   :  { %v5684_v8 = vadd.f32 1.0, %v8043_v12  ;;  %v8045_v6 = vpop.eup %8044  ;;  %v6384_v12 = vld [vmem:[#allocation18 + $0x68] sm:$0xff] }
0x2ae4   :  { %8046 = vrcp.f32 %v5684_v8  ;;  %v6386_v8 = vld [vmem:[#allocation18 + $0x78] sm:$0xff] }
0x2ae5   :  { %8048 = vpow2.f32 %v6872_v30  ;;  %v6385_v30 = vld [vmem:[#allocation18 + $0x70] sm:$0xff] }
0x2aee   :  { %v8047_v1 = vpop.eup %8046 }
0x2aef   :  { %v5699_v11 = vmul.f32 %v8047_v1, %v8045_v6  ;;  %v8049_v29 = vpop.eup %8048  ;;  %v5698_v46 = vmul.f32 %v8047_v1, %v5696_v18  ;;  %v7676_v6 = vpack.c.bf16 %v6381_v32, %v6379_v52  ;;  %v7678_v1 = vpack.c.bf16 %v6386_v8, %v6384_v12  ;;  %v6370_v18 = vld [vmem:[#allocation2 + $0xe] sm:$0x3]  ;;  %v6319_v52 = vld [vmem:[%s9632_s10] sm:$0x3] }
0x2af0   :  { %v5691_v25 = vadd.f32 1.0, %v8049_v29  ;;  %v6324_v32 = vrot.slane %v6319_v52, %v8669_v36 }
0x2af1   :  { %5701 = vrot.lane.b32.xlu1 %v5699_v11, %s8336_s16  ;;  %v6383_v11 = vld [vmem:[#allocation18 + $0x60] sm:$0xff] }
0x2af2   :  { %8050 = vrcp.f32 %v5691_v25  ;;  %v7680_v29 = vpack.c.bf16 %v6385_v30, %v6383_v11  ;;  %v5993_v25 = vld [vmem:[%s9632_s10] sm:$0x3]  ;;  %v6328_v30 = vrot.slane %v6319_v52, %v8675_v43 }
0x2af3   :  { %v6002_v19 = vrot.slane %v5993_v25, %v8675_v43 }
0x2afc   :  { %v8051_v23 = vpop.eup %8050 }
0x2b63   :  { %v5702_v2 = vpop.permute.xlu1 %5701 }
0x2b64   :  { %v5704_v33 = vadd.f32 %v5702_v2, %v5698_v46  ;;  %v5998_v46 = vrot.slane %v5993_v25, %v8669_v36 }
0x2b66   :  { %8052 = vtanh.f32 %v5704_v33  ;;  %5713 = vrot.lane.b32.xlu1 %v5704_v33, %s8336_s16 }
0x2b70   :  { %v8053_v48 = vpop.eup %8052 }
0x2b71   :  { %v5706_v9 = vmul.f32 %v8053_v48, %v8051_v23 }
0x2b73   :  { %5708 = vrot.lane.b32.xlu0 %v5706_v9, %s8336_s16 }
0x2bd8   :  { %v5714_v49 = vpop.permute.xlu1 %5713 }
0x2bd9   :  { %5716 = vst.msk [vmem:[#allocation5] sm:$0x3] %vm179_vm0, %v5714_v49  ;;  %v6552_v49 = vld [vmem:[%s9635_s13] sm:$0x3] }
0x2bda   :  { %v6557_v27 = vrot.slane %v6552_v49, %v8669_v36  ;;  %v6561_v3 = vrot.slane %v6552_v49, %v8675_v43  ;;  %v6601_v36 = vld [vmem:[%s9637_s15 + $0x38] sm:$0xff] }
0x2be0   :  { %v5900_v15 = vld [vmem:[#allocation5] sm:$0x3] }
0x2be1   :  { %6021 = vrot.lane.b32.xlu0 %v5900_v15, %s8336_s16 }
0x2be5   :  { %v5709_v21 = vpop.permute.xlu0 %5708 }
0x2be6   :  { %5711 = vst.msk [vmem:[#allocation4] sm:$0x3] %vm179_vm0, %v5709_v21 }
0x2bed   :  { %v5899_v10 = vld [vmem:[#allocation4] sm:$0x3] }
0x2bee   :  { %6875 = vmatmul.mubr.msk.f32.vlgmr.msra.gmra.mrb[22].mxu0 %vm205_vm1, %v5899_v10 }
0x2bef   :  { %7653 = vmatpush1.bf16.msra.mxu0 %v7652_v60  ;;  %6471 = vmatprep.mubr.f32.mxu0 %v8335_v0 }
0x2bf0   :  { %7655 = vmatprep.subr.bf16.mxu0 %v7654_v61 }
0x2bf3   :  { %7657 = vmatpush1.bf16.msra.mxu0 %v7656_v14 }
0x2bf4   :  { %7659 = vmatprep.subr.bf16.mxu0 %v7658_v26 }
0x2bf7   :  { %7661 = vmatpush1.bf16.msra.mxu0 %v7660_v35 }
0x2bf8   :  { %7663 = vmatprep.subr.bf16.mxu0 %v7662_v41 }
0x2bfb   :  { %7665 = vmatpush1.bf16.msra.mxu0 %v7664_v57 }
0x2bfc   :  { %7667 = vmatprep.subr.bf16.mxu0 %v7666_v37 }
0x2bfe   :  { %6883 = vmatmul.mubr.msk.f32.vlgmr.msra.gmra.mrb[24].mxu0 %vm205_vm1, %v6387_v31  ;;  %v6597_v31 = vld [vmem:[%s9637_s15 + $0x18] sm:$0xff] }
0x2bff   :  { %7669 = vmatpush1.bf16.msra.mxu0 %v7668_v55  ;;  %6545 = vmatprep.mubr.f32.mxu0 %v8335_v0  ;;  %v6595_v55 = vld [vmem:[%s9637_s15 + $0x8] sm:$0xff] }
0x2c00   :  { %7671 = vmatprep.subr.bf16.mxu0 %v7670_v56  ;;  %v6596_v56 = vld [vmem:[%s9637_s15 + $0x10] sm:$0xff]  ;;  %v7683_v24 = vpack.c.bf16 %v6595_v55, %v6594_v16 }
0x2c01   :  { %v7686_v7 = vpack.c.bf16 %v6597_v31, %v6596_v56 }
0x2c03   :  { %7673 = vmatpush1.bf16.msra.mxu0 %v7672_v39  ;;  %v6599_v39 = vld [vmem:[%s9637_s15 + $0x28] sm:$0xff] }
0x2c04   :  { %7675 = vmatprep.subr.bf16.mxu0 %v7674_v22  ;;  %v7689_v22 = vpack.c.bf16 %v6599_v39, %v6598_v38 }
0x2c07   :  { %7677 = vmatpush1.bf16.msra.mxu0 %v7676_v6 }
0x2c08   :  { %7679 = vmatprep.subr.bf16.mxu0 %v7678_v1 }
0x2c0b   :  { %7681 = vmatpush1.bf16.msra.mxu0 %v7680_v29 }
0x2c0e   :  { %6884 = vmatmul.mubr.msk.f32.vlgmr.msra.gmra.mrb[24].mxu0 %vm205_vm1, %v6370_v18 }
0x2c53   :  { %v6022_v62 = vpop.permute.xlu0 %6021 }
0x2cc1   :  { %v5986_v2 = vpop.f32.mrb[22].mxu0 }
0x2cc2   :  { %v6005_v33 = vadd.f32 %v5998_v46, %v5986_v2  ;;  %v5988_v63 = vpop.f32.mrb[23].mxu0  ;;  %v6600_v2 = vld [vmem:[%s9637_s15 + $0x30] sm:$0xff] }
0x2cc3   :  { %v6006_v23 = vadd.f32 %v6002_v19, %v5988_v63  ;;  %v7692_v63 = vpack.c.bf16 %v6601_v36, %v6600_v2 }
0x2cc4   :  { %v6876_v13 = vmul.f32 -1.442695, %v6005_v33 }
0x2cc5   :  { %v6877_v51 = vmul.f32 -1.442695, %v6006_v23 }
0x2cc6   :  { %8054 = vpow2.f32 %v6876_v13 }
0x2cc7   :  { %8056 = vtanh.f32 %v6006_v23 }
0x2cd0   :  { %v8055_v48 = vpop.eup %8054 }
0x2cd1   :  { %v6010_v9 = vadd.f32 1.0, %v8055_v48  ;;  %v8057_v15 = vpop.eup %8056 }
0x2cd3   :  { %8058 = vrcp.f32 %v6010_v9 }
0x2cdd   :  { %v8059_v21 = vpop.eup %8058 }
0x2cde   :  { %v6025_v28 = vmul.f32 %v8059_v21, %v8057_v15  ;;  %v6024_v35 = vmul.f32 %v8059_v21, %v6022_v62 }
0x2ce0   :  { %6027 = vrot.lane.b32.xlu1 %v6025_v28, %s8336_s16 }
0x2ce1   :  { %v6547_v54 = vpop.f32.mrb[24].mxu0 }
0x2ce2   :  { %v6564_v58 = vadd.f32 %v6557_v27, %v6547_v54  ;;  %v6549_v60 = vpop.f32.mrb[25].mxu0  ;;  %v6586_v54 = vld [vmem:[%s9636_s14] sm:$0xff] }
0x2ce3   :  { %v6565_v5 = vadd.f32 %v6561_v3, %v6549_v60 }
0x2ce4   :  { %v6885_v61 = vmul.f32 -1.442695, %v6564_v58  ;;  %v6587_v58 = vld [vmem:[%s9636_s14 + $0x8] sm:$0xff] }
0x2ce5   :  { %v6886_v12 = vmul.f32 -1.442695, %v6565_v5  ;;  %v7695_v3 = vpack.c.bf16 %v6587_v58, %v6586_v54 }
0x2ce6   :  { %8060 = vpow2.f32 %v6885_v61 }
0x2ce7   :  { %8062 = vtanh.f32 %v6565_v5  ;;  %v6588_v5 = vld [vmem:[%s9636_s14 + $0x10] sm:$0xff] }
0x2cf0   :  { %v8061_v10 = vpop.eup %8060 }
0x2cf1   :  { %v6569_v17 = vadd.f32 1.0, %v8061_v10  ;;  %v8063_v20 = vpop.eup %8062  ;;  %v6589_v10 = vld [vmem:[%s9636_s14 + $0x18] sm:$0xff] }
0x2cf3   :  { %8064 = vrcp.f32 %v6569_v17 }
0x2cf4   :  { %8066 = vpow2.f32 %v6877_v51 }
0x2cfd   :  { %v8065_v14 = vpop.eup %8064 }
0x2cfe   :  { %v6579_v26 = vmul.f32 %v8065_v14, %v8063_v20  ;;  %v8067_v59 = vpop.eup %8066  ;;  %v7698_v20 = vpack.c.bf16 %v6589_v10, %v6588_v5  ;;  %v6590_v14 = vld [vmem:[%s9636_s14 + $0x20] sm:$0xff] }
0x2cff   :  { %v6017_v34 = vadd.f32 1.0, %v8067_v59  ;;  %v6592_v59 = vld [vmem:[%s9636_s14 + $0x30] sm:$0xff] }
0x2d01   :  { %8068 = vrcp.f32 %v6017_v34 }
0x2d0b   :  { %v8069_v45 = vpop.eup %8068 }
0x2d52   :  { %v6028_v41 = vpop.permute.xlu1 %6027 }
0x2d53   :  { %v6030_v42 = vadd.f32 %v6028_v41, %v6024_v35 }
0x2d55   :  { %8070 = vtanh.f32 %v6030_v42  ;;  %6039 = vrot.lane.b32.xlu1 %v6030_v42, %s8336_s16 }
0x2d56   :  { %8072 = vtanh.f32 %v6579_v26  ;;  %v6591_v26 = vld [vmem:[%s9636_s14 + $0x28] sm:$0xff] }
0x2d57   :  { %8074 = vpow2.f32 %v6886_v12  ;;  %v7701_v51 = vpack.c.bf16 %v6591_v26, %v6590_v14 }
0x2d5f   :  { %v8071_v4 = vpop.eup %8070 }
0x2d60   :  { %v6032_v53 = vmul.f32 %v8071_v4, %v8069_v45  ;;  %v8073_v40 = vpop.eup %8072 }
0x2d61   :  { %v8075_v18 = vpop.eup %8074 }
0x2d62   :  { %6034 = vrot.lane.b32.xlu0 %v6032_v53, %s8336_s16  ;;  %v6576_v33 = vadd.f32 1.0, %v8075_v18 }
0x2dc7   :  { %v6040_v57 = vpop.permute.xlu1 %6039 }
0x2dc8   :  { %6042 = vst.msk [vmem:[#allocation5] sm:$0x3] %vm179_vm0, %v6040_v57 }
0x2dcf   :  { %v6226_v37 = vld [vmem:[#allocation5] sm:$0x3] }
0x2dd0   :  { %6347 = vrot.lane.b32.xlu0 %v6226_v37, %s8336_s16 }
0x2dd4   :  { %6582 = vrot.lane.b32.xlu0 %v8073_v40, %s8336_s16  ;;  %v6035_v44 = vpop.permute.xlu0 %6034  ;;  %v6889_v40 = vld [vmem:[%s9649_s19] ss:$0 sm:$0xff] }
0x2dd5   :  { %6037 = vst.msk [vmem:[#allocation4] sm:$0x3] %vm179_vm0, %v6035_v44 }
0x2ddc   :  { %v6225_v47 = vld [vmem:[#allocation4] sm:$0x3] }
0x2ddd   :  { %6880 = vmatmul.mubr.msk.f32.vlgmr.msra.gmra.mrb[22].mxu1 %vm205_vm1, %v6225_v47 }
0x2dde   :  { %7684 = vmatpush3.bf16.msra.mxu1 %v7683_v24  ;;  %6924 = vmatprep.mubr.msk.f32.mxu1 %vm8338_vm3, %v8335_v0 }
0x2ddf   :  { %7685 = vmatprep.subr.bf16.mxu1 %v8337_v50 }
0x2de2   :  { %7687 = vmatpush3.bf16.msra.mxu1 %v7686_v7 }
0x2de3   :  { %7688 = vmatprep.subr.bf16.mxu1 %v8337_v50 }
0x2de6   :  { %7690 = vmatpush3.bf16.msra.mxu1 %v7689_v22 }
0x2de7   :  { %7691 = vmatprep.subr.bf16.mxu1 %v8337_v50 }
0x2dea   :  { %7693 = vmatpush3.bf16.msra.mxu1 %v7692_v63 }
0x2deb   :  { %7694 = vmatprep.subr.bf16.mxu1 %v8337_v50 }
0x2e42   :  { %v6348_v43 = vpop.permute.xlu0 %6347 }
0x2e46   :  { %v6583_v48 = vpop.permute.xlu0 %6582 }
0x2eb0   :  { %v6312_v8 = vpop.f32.mrb[22].mxu1 }
0x2eb1   :  { %v6331_v6 = vadd.f32 %v6324_v32, %v6312_v8  ;;  %v6314_v1 = vpop.f32.mrb[23].mxu1 }
0x2eb2   :  { %v6332_v29 = vadd.f32 %v6328_v30, %v6314_v1 }
0x2eb3   :  { %v6881_v11 = vmul.f32 -1.442695, %v6331_v6 }
0x2eb4   :  { %v6882_v15 = vmul.f32 -1.442695, %v6332_v29 }
0x2eb5   :  { %8076 = vpow2.f32 %v6881_v11 }
0x2eb6   :  { %8078 = vtanh.f32 %v6332_v29 }
0x2ebf   :  { %v8077_v25 = vpop.eup %8076 }
0x2ec0   :  { %v6336_v46 = vadd.f32 1.0, %v8077_v25  ;;  %v8079_v13 = vpop.eup %8078 }
0x2ec2   :  { %8080 = vrcp.f32 %v6336_v46 }
0x2ec3   :  { %8082 = vrcp.f32 %v6576_v33 }
0x2ec4   :  { %8084 = vpow2.f32 %v6882_v15 }
0x2ecc   :  { %v8081_v19 = vpop.eup %8080 }
0x2ecd   :  { %v6351_v23 = vmul.f32 %v8081_v19, %v8079_v13  ;;  %v8083_v9 = vpop.eup %8082  ;;  %v6350_v28 = vmul.f32 %v8081_v19, %v6348_v43 }
0x2ece   :  { %v6585_v49 = vmul.f32 %v8083_v9, %v6583_v48  ;;  %v8085_v21 = vpop.eup %8084 }
0x2ecf   :  { %6353 = vrot.lane.b32.xlu1 %v6351_v23, %s8336_s16  ;;  %v6343_v27 = vadd.f32 1.0, %v8085_v21 }
0x2ed1   :  { %8086 = vrcp.f32 %v6343_v27 }
0x2ed3   :  { %6603 = vrot.lane.b32.xlu1 %v6585_v49, %s8336_s16 }
0x2edb   :  { %v8087_v62 = vpop.eup %8086 }
0x2f41   :  { %v6354_v60 = vpop.permute.xlu1 %6353 }
0x2f42   :  { %v6356_v61 = vadd.f32 %v6354_v60, %v6350_v28 }
0x2f44   :  { %8088 = vtanh.f32 %v6356_v61  ;;  %6365 = vrot.lane.b32.xlu1 %v6356_v61, %s8336_s16 }
0x2f45   :  { %v6604_v17 = vpop.permute.xlu1 %6603 }
0x2f46   :  { %6925 = vmatmul.mubr.msk.f32.vlgmr.msra.gmra.mrb[24].mxu1 %vm205_vm1, %v6604_v17 }
0x2f47   :  { %7696 = vmatpush3.bf16.msra.mxu1 %v7695_v3  ;;  %6943 = vmatprep.mubr.msk.f32.mxu1 %vm8338_vm3, %v8335_v0  ;;  %v6593_v0 = vld [vmem:[%s9636_s14 + $0x38] sm:$0xff] }
0x2f48   :  { %7697 = vmatprep.subr.bf16.mxu1 %v8337_v50  ;;  %v7704_v41 = vpack.c.bf16 %v6593_v0, %v6592_v59 }
0x2f4b   :  { %7699 = vmatpush3.bf16.msra.mxu1 %v7698_v20 }
0x2f4c   :  { %7700 = vmatprep.subr.bf16.mxu1 %v8337_v50 }
0x2f4e   :  { %v8089_v34 = vpop.eup %8088 }
0x2f4f   :  { %v6358_v35 = vmul.f32 %v8089_v34, %v8087_v62  ;;  %7702 = vmatpush3.bf16.msra.mxu1 %v7701_v51 }
0x2f50   :  { %7703 = vmatprep.subr.bf16.mxu1 %v8337_v50 }
0x2f51   :  { %6360 = vrot.lane.b32.xlu0 %v6358_v35, %s8336_s16  ;;  %s8288_s16 = scalar_lea.vmem %s6767_s9, 32 }
0x2f52   :  { %p8289_p2 = scmp.ne.s32.totalorder %s6767_s9, %s8288_s16  ;;  %p8294_p4 = scmp.lt.s32.totalorder %s8288_s16, %s8288_s16 }
0x2f53   :  { %7705 = vmatpush3.bf16.msra.mxu1 %v7704_v41 }
0x2f54   :  { %p8295_p5 = por %p8294_p4, %p8293_p3 }
0x2f56   :  { %p8296_p6 = pnand %p8295_p5, %p8289_p2 }
0x2fb6   :  { %v6366_v42 = vpop.permute.xlu1 %6365 }
0x2fb7   :  { %6368 = vst.msk [vmem:[#allocation5] sm:$0x3] %vm179_vm0, %v6366_v42 }
0x2fc3   :  { %v6361_v45 = vpop.permute.xlu0 %6360 }
0x2fc4   :  { %6363 = vst.msk [vmem:[#allocation4] sm:$0x3] %vm179_vm0, %v6361_v45 }
0x2fcb   :  { %v6369_v4 = vld [vmem:[#allocation4] sm:$0x3] }
0x2fcc   :  { %6944 = vmatmul.mubr.msk.f32.vlgmr.msra.gmra.mrb[26].mxu1 %vm205_vm1, %v6369_v4 }
0x3019   :  { %v6673_v53 = vpop.f32.mrb[24].mxu1 }
0x301a   :  { %v6926_v57 = vpop.f32.mrb[25].mxu1 }
0x309f   :  { %v6746_v37 = vpop.f32.mrb[26].mxu1 }
0x30a0   :  { %v6747_v44 = vadd.f32 %v6746_v37, %v6673_v53  ;;  %v6945_v47 = vpop.f32.mrb[27].mxu1 }
0x30a2   :  { %v6757_v16 = vadd.f32 %v6889_v40, %v6747_v44 }
0x30a4   :  { %6759 = vst.msk [vmem:[#allocation21] sm:$0x3] %vm6758_vm4, %v6757_v16 }
0x30a5   :  { %8299 = shalt.err (!%p8296_p6)
}
0x30a6   :  { %s9650_s6 = sld [smem:[#allocation31_spill]] }
0x30ac   :  { %s8300_s20 = scalar_lea.hbm %s9650_s6, 32 }
0x30ad   :  { %p8301_p7 = scmp.ne.s32.totalorder %s9650_s6, %s8300_s20  ;;  %p8304_p8 = scmp.lt.u32.totalorder %s8300_s20, %s9650_s6 }
0x30af   :  { %p8306_p9 = pnand %p8304_p8, %p8301_p7 }
0x30b1   :  { %8309 = shalt.err (!%p8306_p9)
}
0x30b2   :  { %6769 = dma.vmem_to_hbm [thread:$0]  %s6767_s9, 32, %s9650_s6, [#allocation8]  }
0x30b3   :  { %8320 = dma.done.wait [#allocation8], 32  }
0x30b4   :  { %8321 = vsyncadd [#allocation8], 4294967264 }
0x30b5   :  { %6773 = vsyncpa [#allocation7], 1 }
0x30b6   :  { %6774 = vsyncpa [#allocation10], 1 }
0x30b7   :  { %6775 = vsyncpa [#allocation13], 1 }
0x30b8   :  { %6776 = vsyncpa [#allocation16], 1 }
0x30b9   :  { %6777 = vsyncpa [#allocation19], 1 }
0x30ba   :  { %6778 = vsyncpa [#allocation8], 1 }

</bundles_post_ra>
